<compile_context>
chip_gen: v7x
topology: tpu7x:2x2x1
jax: 0.10.0
libtpu: 0.0.40
codegen_flags: <defaults>
</compile_context>

<pallas_src>
import functools

import numpy as np

import jax
import jax.numpy as jnp
from jax import lax
from jax.experimental import pallas as pl
from jax.experimental.pallas import tpu as pltpu

_INF_BITS = 0x7F800000  # bit pattern of float32 +inf (masks already-picked cols)
_FAR = 1.0e15           # coordinate of padded xyz2 columns -> d ~ 3e30 (finite, never wins)


def _round_up(x, m):
    return (x + m - 1) // m * m


def _cdiv(a, b):
    return (a + b - 1) // b


# ----------------------------------------------------------------------------
# Kernel
# ----------------------------------------------------------------------------
def _fp_kernel(xyz1_ref, xyz2t_ref, points1_ref, points2_ref, *rest,
               num_layers, low_mask, scale_after):
    """rest = (w0_interp, w0_skip, b0, w1, b1, ..., out_ref)."""
    out_ref = rest[-1]

    xyz1 = xyz1_ref[0]                    # (tn1, 3)    f32
    xyz2t = xyz2t_ref[0]                  # (3,  N2p)   f32, lane-dense
    p1 = points1_ref[0]                   # (tn1, C1)   bf16
    p2 = points2_ref[0]                   # (N2p, C2)   bf16

    tn1 = xyz1.shape[0]
    n2p = xyz2t.shape[1]

    # --- exact f32 squared pairwise distances (VPU) --------------------------
    # Direct (x1 - x2)^2 form: no cancellation, no bf16 matmul pass, and the
    # ||xyz2||^2 term never exists, so nothing is recomputed across row tiles.
    d = jnp.zeros((tn1, n2p), jnp.float32)
    for k in range(3):
        diff = xyz1[:, k:k + 1] - xyz2t[k:k + 1, :]        # (tn1, N2p)
        d = d + diff * diff

    # --- top-3 nearest neighbours -> dense inverse-distance weights ----------
    # Pack (distance, column) into one monotonic int32 key: non-negative f32
    # bitcasts to a monotonically increasing int; the low ceil(log2(N2p))
    # mantissa bits are replaced by the column index.  One XLU min-reduce per
    # neighbour, exact ties break by lowest column (matches lax.top_k).
    d_bits = pltpu.bitcast(d, jnp.int32)
    col = lax.broadcasted_iota(jnp.int32, (tn1, n2p), 1)
    keys = (d_bits & (~low_mask)) | col

    w_dense = jnp.zeros((tn1, n2p), jnp.float32)
    for _ in range(3):   # padded / degenerate columns get ~0 weight gracefully
        kmin = jnp.min(keys, axis=1, keepdims=True)        # (tn1, 1)
        onehot = keys == kmin
        d_sel = pltpu.bitcast(kmin & (~low_mask), jnp.float32)
        recip = pl.reciprocal(d_sel + 1e-8, approx=True)   # EUP slot
        w_dense = w_dense + jnp.where(onehot, recip, 0.0)
        keys = jnp.where(onehot, _INF_BITS, keys)

    row_sum = jnp.sum(w_dense, axis=1, keepdims=True)
    inv_sum = pl.reciprocal(row_sum, approx=False)         # exact normalisation

    # --- interpolate: (tn1, N2p) @ (N2p, C2) on the MXU -----------------------
    # Normalise on the narrower side of the matmul (review: (tn1, C2) multiply
    # instead of (tn1, N2p) when C2 < N2p).
    if scale_after:
        interp = jnp.dot(w_dense.astype(jnp.bfloat16), p2,
                         preferred_element_type=jnp.float32) * inv_sum
    else:
        wn = (w_dense * inv_sum).astype(jnp.bfloat16)
        interp = jnp.dot(wn, p2, preferred_element_type=jnp.float32)

    # --- per-point MLP, concat-free (split first-layer weight) ---------------
    w0i = rest[0][...]                    # (C2, H0p)  bf16
    w0s = rest[1][...]                    # (C1, H0p)  bf16
    b0 = rest[2][...]                     # (1,  H0p)  f32
    h = jnp.dot(interp.astype(jnp.bfloat16), w0i,
                preferred_element_type=jnp.float32)
    h = h + jnp.dot(p1, w0s, preferred_element_type=jnp.float32)
    h = jnp.maximum(h + b0, 0.0)
    for li in range(1, num_layers):
        w = rest[3 + 2 * (li - 1)][...]   # (H_{l-1}p, H_lp) bf16
        b = rest[4 + 2 * (li - 1)][...]   # (1, H_lp)        f32
        h = jnp.dot(h.astype(jnp.bfloat16), w,
                    preferred_element_type=jnp.float32)
        h = jnp.maximum(h + b, 0.0)

    out_ref[0] = h.astype(out_ref.dtype)


# ----------------------------------------------------------------------------
# Parameter preparation (BN already folded by the caller)
# ----------------------------------------------------------------------------
def _prepare_params(weights, biases, c2):
    """Split layer-0 weight (interp/skip), zero-pad channels to 128, cast bf16."""
    params = []
    prev_pad = None
    for l, (w, b) in enumerate(zip(weights, biases)):
        cin, cout = w.shape
        cout_p = _round_up(cout, 128)
        b_p = jnp.pad(b, ((0, 0), (0, cout_p - cout))).astype(jnp.float32)
        if l == 0:
            w_i = jnp.pad(w[:c2, :], ((0, 0), (0, cout_p - cout)))
            w_s = jnp.pad(w[c2:, :], ((0, 0), (0, cout_p - cout)))
            params += [w_i.astype(jnp.bfloat16), w_s.astype(jnp.bfloat16), b_p]
        else:
            w_p = jnp.pad(w, ((0, prev_pad - cin), (0, cout_p - cout)))
            params += [w_p.astype(jnp.bfloat16), b_p]
        prev_pad = cout_p
    return params, prev_pad


# ----------------------------------------------------------------------------
# VMEM budget helpers
# ----------------------------------------------------------------------------
def _vmem_capacity_bytes():
    try:
        info = pltpu.get_tpu_info()
        for attr in ("vmem_capacity_bytes", "vmem_size_bytes", "vmem_bytes"):
            v = getattr(info, attr, None)
            if v:
                return int(v)
    except Exception:
        pass
    return 64 * 1024 * 1024   # conservative fallback (v7x per-TC size)


def _tile_bytes(shape, dtype):
    itemsize = int(np.dtype(dtype).itemsize)
    sub = 8 * (4 // itemsize)            # f32 -> 8 sublanes, bf16 -> 16
    lead = 1
    for s in shape[:-2]:
        lead *= int(s)
    rows = int(shape[-2]) if len(shape) >= 2 else 1
    return lead * _round_up(rows, sub) * _round_up(int(shape[-1]), 128) * itemsize


def _kernel_vmem_bytes(tn1, n2p, c1, c2, c_out_pad, max_wide, params):
    """Explicit per-step VMEM estimate: double-buffered blocks + live temps."""
    total = 0
    total += 2 * _tile_bytes((tn1, 3), jnp.float32)           # xyz1
    total += 2 * _tile_bytes((3, n2p), jnp.float32)           # xyz2_t
    total += 2 * _tile_bytes((tn1, c1), jnp.bfloat16)         # points1
    total += 2 * _tile_bytes((n2p, c2), jnp.bfloat16)         # points2
    total += 2 * _tile_bytes((tn1, c_out_pad), jnp.float32)   # output
    total += 2 * sum(_tile_bytes(p.shape, p.dtype) for p in params)  # weights (worst case)
    total += 8 * tn1 * n2p * 4                                # live (tn1, N2p) f32 temps
    total += 3 * tn1 * max_wide * 4                           # interp / activations
    return total


# ----------------------------------------------------------------------------
# Wrapper
# ----------------------------------------------------------------------------
def pointnet_fp_forward(xyz1, xyz2, points1, points2, weights, biases, *,
                        tn1=512, out_dtype=jnp.float32):
    """weights[i]: (C_in_i, C_out_i) BN-folded, biases[i]: (1, C_out_i).

    Layer 0's input channels must be [C2 interp channels, C1 skip channels],
    matching torch.cat([interpolated_points, points1], dim=-1).
    """
    B, N1, _ = xyz1.shape
    _, N2, C2 = points2.shape
    C1 = points1.shape[-1]
    num_layers = len(weights)
    c_out = weights[-1].shape[1]

    if N2 == 1:
        # PyTorch branch: interpolated_points = points2.repeat(1, N1, 1).
        # Replicating the single point 3x reproduces it through the
        # interpolation path (3 identical neighbours, weights sum to 1).
        xyz2 = jnp.tile(xyz2, (1, 3, 1))
        points2 = jnp.tile(points2, (1, 3, 1))
        N2 = 3

    # Pad N2 to a lane-dense multiple of 128.  Padded xyz2 columns are placed
    # ~1e15 away (d ~ 3e30, finite) so they never win the top-3 selection;
    # padded points2 rows are zero.
    n2_pad = _round_up(N2, 128)
    if n2_pad != N2:
        xyz2 = jnp.pad(xyz2, ((0, 0), (0, n2_pad - N2), (0, 0)),
                       constant_values=_FAR)
        points2 = jnp.pad(points2, ((0, 0), (0, n2_pad - N2), (0, 0)))

    # Lane-dense transposed xyz2 (B, 3, N2p); bf16 MXU operands for points.
    xyz2_t = jnp.transpose(xyz2.astype(jnp.float32), (0, 2, 1))
    xyz1 = xyz1.astype(jnp.float32)
    points1 = points1.astype(jnp.bfloat16)
    points2 = points2.astype(jnp.bfloat16)

    params, c_out_pad = _prepare_params(weights, biases, C2)
    max_wide = max(max(p.shape[-1] for p in params), n2_pad)

    # --- explicit VMEM budget -> largest tn1 that fits, vmem_limit_bytes -----
    vmem_cap = _vmem_capacity_bytes()
    budget = (vmem_cap * 3) // 4
    tn1 = max(16, min((tn1 // 16) * 16, _round_up(N1, 16)))
    while tn1 > 16 and _kernel_vmem_bytes(tn1, n2_pad, C1, C2, c_out_pad,
                                          max_wide, params) > budget:
        tn1 = max(16, (tn1 // 2 // 16) * 16)
    # v7x has 2 TensorCores sharding the "parallel" axes: keep >= 2 grid tiles.
    while B * _cdiv(N1, tn1) < 2 and tn1 > 16:
        tn1 = max(16, (tn1 // 2 // 16) * 16)

    n1_pad = _round_up(N1, tn1)
    if n1_pad != N1:
        pad = ((0, 0), (0, n1_pad - N1), (0, 0))
        xyz1 = jnp.pad(xyz1, pad)
        points1 = jnp.pad(points1, pad)

    nbits = max(1, (n2_pad - 1).bit_length())
    low_mask = (1 << nbits) - 1
    scale_after = C2 <= n2_pad            # normalise on the narrower matmul side

    grid = (B, n1_pad // tn1)

    kernel = functools.partial(_fp_kernel, num_layers=num_layers,
                               low_mask=low_mask, scale_after=scale_after)

    # Advisory cost estimate for XLA scheduling around the custom call.
    flops_row = 8 * n2_pad + 2 * n2_pad * C2
    k_prev = C1 + C2
    for w in weights:
        flops_row += 2 * k_prev * int(w.shape[1])
        k_prev = int(w.shape[1])
    cost = pl.CostEstimate(
        flops=int(B * n1_pad * flops_row),
        transcendentals=int(4 * B * n1_pad),
        bytes_accessed=int(xyz1.size * 4 + xyz2_t.size * 4 + points1.size * 2 +
                           points2.size * 2 + B * n1_pad * c_out_pad * 4 +
                           sum(p.size * p.dtype.itemsize for p in params)))

    def build(buffered_weights):
        wkw = dict(pipeline_mode=pl.Buffered(1)) if buffered_weights else {}
        in_specs = [
            pl.BlockSpec((1, tn1, 3), lambda b, i: (b, i, 0)),
            pl.BlockSpec((1, 3, n2_pad), lambda b, i: (b, 0, 0)),
            pl.BlockSpec((1, tn1, C1), lambda b, i: (b, i, 0)),
            pl.BlockSpec((1, n2_pad, C2), lambda b, i: (b, 0, 0)),
        ]
        for p in params:
            in_specs.append(pl.BlockSpec(p.shape, lambda b, i: (0, 0), **wkw))
        return pl.pallas_call(
            kernel,
            out_shape=jax.ShapeDtypeStruct((B, n1_pad, c_out_pad), out_dtype),
            grid=grid,
            in_specs=in_specs,
            out_specs=pl.BlockSpec((1, tn1, c_out_pad), lambda b, i: (b, i, 0)),
            compiler_params=pltpu.CompilerParams(
                dimension_semantics=("parallel", "parallel"),
                vmem_limit_bytes=int(budget)),
            cost_estimate=cost,
        )

    try:
        # Weight/bias blocks never change across grid steps -> single-buffer
        # them (halves their VMEM footprint; headroom for larger row tiles).
        out = build(True)(xyz1, xyz2_t, points1, points2, *params)
    except Exception:
        # pipeline_mode=pl.Buffered(1) unsupported on this jax/libtpu combo:
        # fall back to default double-buffered constant blocks.
        out = build(False)(xyz1, xyz2_t, points1, points2, *params)

    return out[:, :N1, :c_out]


# ----------------------------------------------------------------------------
# Pure-JAX reference (mirrors the PyTorch three_interpolate + MLP)
# ----------------------------------------------------------------------------
def _ref_forward(xyz1, xyz2, points1, points2, weights, biases):
    B, N1, _ = xyz1.shape
    _, N2, _ = points2.shape
    if N2 == 1:
        interp = jnp.tile(points2, (1, N1, 1))
    else:
        d = jnp.sum((xyz1[:, :, None, :] - xyz2[:, None, :, :]) ** 2, -1)
        neg_d, idx = lax.top_k(-d, 3)                      # 3 nearest
        dists = -neg_d
        recip = 1.0 / (dists + 1e-8)
        wgt = recip / jnp.sum(recip, -1, keepdims=True)    # (B, N1, 3)
        gathered = points2[jnp.arange(B)[:, None, None], idx]  # (B, N1, 3, C2)
        interp = jnp.sum(gathered * wgt[..., None], axis=2)
    x = jnp.concatenate([interp, points1], axis=-1)
    for w, b in zip(weights, biases):
        x = jnp.dot(x, w, precision=lax.Precision.HIGHEST) + b
        x = jnp.maximum(x, 0.0)
    return x


if __name__ == "__main__":
    B, N1, N2, C1, C2 = 2, 64, 16, 16, 32
    mlp = [32, 16]

    key = jax.random.PRNGKey(0)
    keys = jax.random.split(key, 16)
    xyz1 = jax.random.normal(keys[0], (B, N1, 3), jnp.float32)
    xyz2 = jax.random.normal(keys[1], (B, N2, 3), jnp.float32)
    points1 = jax.random.normal(keys[2], (B, N1, C1), jnp.float32)
    points2 = jax.random.normal(keys[3], (B, N2, C2), jnp.float32)

    # Conv2d(1x1, bias=False) + BatchNorm2d (eval mode, running stats) folded
    # into an effective (C_in, C_out) weight and (1, C_out) bias per layer.
    weights, biases = [], []
    cin = C1 + C2
    kidx = 4
    for cout in mlp:
        Wc = jax.random.normal(keys[kidx], (cout, cin), jnp.float32)
        Wc = Wc / jnp.sqrt(jnp.float32(cin)); kidx += 1
        gamma = 1.0 + 0.1 * jax.random.normal(keys[kidx], (cout,), jnp.float32); kidx += 1
        beta = 0.1 * jax.random.normal(keys[kidx], (cout,), jnp.float32); kidx += 1
        rmean = 0.1 * jax.random.normal(keys[kidx], (cout,), jnp.float32); kidx += 1
        rvar = 0.5 + 0.5 * jnp.abs(jax.random.normal(keys[kidx], (cout,), jnp.float32)); kidx += 1
        scale = gamma / jnp.sqrt(rvar + 1e-5)
        weights.append((Wc * scale[:, None]).T)           # (cin, cout)
        biases.append((beta - rmean * scale)[None, :])    # (1, cout)
        cin = cout

    out = pointnet_fp_forward(xyz1, xyz2, points1, points2, weights, biases)
    out = jax.block_until_ready(out)

    assert out.shape == (B, N1, mlp[-1]), out.shape
    ref = _ref_forward(xyz1, xyz2, points1, points2, weights, biases)
    err = jnp.max(jnp.abs(out - ref))
    # Kernel uses bf16 MXU operands (f32 accumulation) + EUP approx reciprocal
    # vs the f32 HIGHEST-precision reference -> relaxed absolute tolerance.
    if not bool(err < 5e-2):
        raise AssertionError(f"mismatch vs reference, max abs err = {err}")
    print("KERNEL_OK")
</pallas_src>

<mosaic_0001>
module attributes {stable_mosaic.version = 11 : i64} {
  func.func @_fp_kernel(%arg0: i32, %arg1: i32, %arg2: memref<1x64x3xf32, #tpu.memory_space<vmem>>, %arg3: memref<1x3x128xf32, #tpu.memory_space<vmem>>, %arg4: memref<1x64x16xbf16, #tpu.memory_space<vmem>>, %arg5: memref<1x128x32xbf16, #tpu.memory_space<vmem>>, %arg6: memref<32x128xbf16, #tpu.memory_space<vmem>>, %arg7: memref<16x128xbf16, #tpu.memory_space<vmem>>, %arg8: memref<1x128xf32, #tpu.memory_space<vmem>>, %arg9: memref<128x128xbf16, #tpu.memory_space<vmem>>, %arg10: memref<1x128xf32, #tpu.memory_space<vmem>>, %arg11: memref<1x64x128xf32, #tpu.memory_space<vmem>>) attributes {dimension_semantics = [#tpu.dimension_semantics<parallel>, #tpu.dimension_semantics<parallel>], iteration_bounds = array<i64: 2, 1>, scalar_prefetch = 0 : i64, scratch_operands = 0 : i64, tpu.core_type = #tpu.core_type<tc>, window_params = [{transform_indices = @transform_0, window_bounds = array<i64: 1, 64, 3>}, {transform_indices = @transform_1, window_bounds = array<i64: 1, 3, 128>}, {transform_indices = @transform_2, window_bounds = array<i64: 1, 64, 16>}, {transform_indices = @transform_3, window_bounds = array<i64: 1, 128, 32>}, {pipeline_mode = #tpu.pipeline_mode<synchronous>, transform_indices = @transform_4, window_bounds = array<i64: 32, 128>}, {pipeline_mode = #tpu.pipeline_mode<synchronous>, transform_indices = @transform_5, window_bounds = array<i64: 16, 128>}, {pipeline_mode = #tpu.pipeline_mode<synchronous>, transform_indices = @transform_6, window_bounds = array<i64: 1, 128>}, {pipeline_mode = #tpu.pipeline_mode<synchronous>, transform_indices = @transform_7, window_bounds = array<i64: 128, 128>}, {pipeline_mode = #tpu.pipeline_mode<synchronous>, transform_indices = @transform_8, window_bounds = array<i64: 1, 128>}, {transform_indices = @transform_9, window_bounds = array<i64: 1, 64, 128>}]} {
    %c0 = arith.constant 0 : index
    %c0_0 = arith.constant 0 : index
    %c0_1 = arith.constant 0 : index
    %0 = vector.load %arg2[%c0, %c0_0, %c0_1] : memref<1x64x3xf32, #tpu.memory_space<vmem>>, vector<1x64x3xf32>
    %1 = vector.shape_cast %0 : vector<1x64x3xf32> to vector<64x3xf32>
    %c0_2 = arith.constant 0 : index
    %c0_3 = arith.constant 0 : index
    %c0_4 = arith.constant 0 : index
    %2 = vector.load %arg3[%c0_2, %c0_3, %c0_4] : memref<1x3x128xf32, #tpu.memory_space<vmem>>, vector<1x3x128xf32>
    %3 = vector.shape_cast %2 : vector<1x3x128xf32> to vector<3x128xf32>
    %c0_5 = arith.constant 0 : index
    %c0_6 = arith.constant 0 : index
    %c0_7 = arith.constant 0 : index
    %4 = vector.load %arg4[%c0_5, %c0_6, %c0_7] : memref<1x64x16xbf16, #tpu.memory_space<vmem>>, vector<1x64x16xbf16>
    %5 = vector.shape_cast %4 : vector<1x64x16xbf16> to vector<64x16xbf16>
    %c0_8 = arith.constant 0 : index
    %c0_9 = arith.constant 0 : index
    %c0_10 = arith.constant 0 : index
    %6 = vector.load %arg5[%c0_8, %c0_9, %c0_10] : memref<1x128x32xbf16, #tpu.memory_space<vmem>>, vector<1x128x32xbf16>
    %7 = vector.shape_cast %6 : vector<1x128x32xbf16> to vector<128x32xbf16>
    %cst = arith.constant 0.000000e+00 : f32
    %8 = vector.broadcast %cst : f32 to vector<64x128xf32>
    %9 = vector.extract_strided_slice %1 {offsets = [0, 0], sizes = [64, 1], strides = [1, 1]} : vector<64x3xf32> to vector<64x1xf32>
    %10 = vector.extract_strided_slice %3 {offsets = [0, 0], sizes = [1, 128], strides = [1, 1]} : vector<3x128xf32> to vector<1x128xf32>
    %11 = vector.broadcast %9 : vector<64x1xf32> to vector<64x128xf32>
    %12 = vector.broadcast %10 : vector<1x128xf32> to vector<64x128xf32>
    %13 = arith.subf %11, %12 : vector<64x128xf32>
    %14 = arith.mulf %13, %13 : vector<64x128xf32>
    %15 = arith.addf %8, %14 : vector<64x128xf32>
    %16 = vector.extract_strided_slice %1 {offsets = [0, 1], sizes = [64, 1], strides = [1, 1]} : vector<64x3xf32> to vector<64x1xf32>
    %17 = vector.extract_strided_slice %3 {offsets = [1, 0], sizes = [1, 128], strides = [1, 1]} : vector<3x128xf32> to vector<1x128xf32>
    %18 = vector.broadcast %16 : vector<64x1xf32> to vector<64x128xf32>
    %19 = vector.broadcast %17 : vector<1x128xf32> to vector<64x128xf32>
    %20 = arith.subf %18, %19 : vector<64x128xf32>
    %21 = arith.mulf %20, %20 : vector<64x128xf32>
    %22 = arith.addf %15, %21 : vector<64x128xf32>
    %23 = vector.extract_strided_slice %1 {offsets = [0, 2], sizes = [64, 1], strides = [1, 1]} : vector<64x3xf32> to vector<64x1xf32>
    %24 = vector.extract_strided_slice %3 {offsets = [2, 0], sizes = [1, 128], strides = [1, 1]} : vector<3x128xf32> to vector<1x128xf32>
    %25 = vector.broadcast %23 : vector<64x1xf32> to vector<64x128xf32>
    %26 = vector.broadcast %24 : vector<1x128xf32> to vector<64x128xf32>
    %27 = arith.subf %25, %26 : vector<64x128xf32>
    %28 = arith.mulf %27, %27 : vector<64x128xf32>
    %29 = arith.addf %22, %28 : vector<64x128xf32>
    %30 = tpu.bitcast %29 : vector<64x128xf32> -> vector<64x128xi32>
    %31 = tpu.iota {dimensions = array<i32: 1>} : vector<64x128xi32>
    %c-128_i32 = arith.constant -128 : i32
    %32 = vector.broadcast %c-128_i32 : i32 to vector<64x128xi32>
    %33 = arith.andi %30, %32 : vector<64x128xi32>
    %34 = arith.ori %33, %31 : vector<64x128xi32>
    %cst_11 = arith.constant 0.000000e+00 : f32
    %35 = vector.broadcast %cst_11 : f32 to vector<64x128xf32>
    %cst_12 = arith.constant dense<2147483647> : vector<64xi32>
    %36 = vector.multi_reduction <minsi>, %34, %cst_12 [1] : vector<64x128xi32> to vector<64xi32>
    %37 = vector.shape_cast %36 : vector<64xi32> to vector<64x1xi32>
    %38 = vector.broadcast %37 : vector<64x1xi32> to vector<64x128xi32>
    %39 = arith.cmpi eq, %34, %38 : vector<64x128xi32>
    %c-128_i32_13 = arith.constant -128 : i32
    %40 = vector.broadcast %c-128_i32_13 : i32 to vector<64x1xi32>
    %41 = arith.andi %37, %40 : vector<64x1xi32>
    %42 = tpu.bitcast %41 : vector<64x1xi32> -> vector<64x1xf32>
    %cst_14 = arith.constant 9.99999993E-9 : f32
    %43 = vector.broadcast %cst_14 : f32 to vector<64x1xf32>
    %44 = arith.addf %42, %43 : vector<64x1xf32>
    %45 = tpu.reciprocal %44 {approx = true} : vector<64x1xf32> -> vector<64x1xf32>
    %cst_15 = arith.constant 0.000000e+00 : f32
    %46 = vector.shape_cast %45 : vector<64x1xf32> to vector<64x1xf32>
    %47 = vector.broadcast %46 : vector<64x1xf32> to vector<64x128xf32>
    %48 = vector.broadcast %cst_15 : f32 to vector<64x128xf32>
    %49 = arith.select %39, %47, %48 : vector<64x128xi1>, vector<64x128xf32>
    %50 = arith.addf %35, %49 : vector<64x128xf32>
    %c2139095040_i32 = arith.constant 2139095040 : i32
    %51 = vector.broadcast %c2139095040_i32 : i32 to vector<64x128xi32>
    %52 = arith.select %39, %51, %34 : vector<64x128xi1>, vector<64x128xi32>
    %cst_16 = arith.constant dense<2147483647> : vector<64xi32>
    %53 = vector.multi_reduction <minsi>, %52, %cst_16 [1] : vector<64x128xi32> to vector<64xi32>
    %54 = vector.shape_cast %53 : vector<64xi32> to vector<64x1xi32>
    %55 = vector.broadcast %54 : vector<64x1xi32> to vector<64x128xi32>
    %56 = arith.cmpi eq, %52, %55 : vector<64x128xi32>
    %c-128_i32_17 = arith.constant -128 : i32
    %57 = vector.broadcast %c-128_i32_17 : i32 to vector<64x1xi32>
    %58 = arith.andi %54, %57 : vector<64x1xi32>
    %59 = tpu.bitcast %58 : vector<64x1xi32> -> vector<64x1xf32>
    %cst_18 = arith.constant 9.99999993E-9 : f32
    %60 = vector.broadcast %cst_18 : f32 to vector<64x1xf32>
    %61 = arith.addf %59, %60 : vector<64x1xf32>
    %62 = tpu.reciprocal %61 {approx = true} : vector<64x1xf32> -> vector<64x1xf32>
    %cst_19 = arith.constant 0.000000e+00 : f32
    %63 = vector.shape_cast %62 : vector<64x1xf32> to vector<64x1xf32>
    %64 = vector.broadcast %63 : vector<64x1xf32> to vector<64x128xf32>
    %65 = vector.broadcast %cst_19 : f32 to vector<64x128xf32>
    %66 = arith.select %56, %64, %65 : vector<64x128xi1>, vector<64x128xf32>
    %67 = arith.addf %50, %66 : vector<64x128xf32>
    %c2139095040_i32_20 = arith.constant 2139095040 : i32
    %68 = vector.broadcast %c2139095040_i32_20 : i32 to vector<64x128xi32>
    %69 = arith.select %56, %68, %52 : vector<64x128xi1>, vector<64x128xi32>
    %cst_21 = arith.constant dense<2147483647> : vector<64xi32>
    %70 = vector.multi_reduction <minsi>, %69, %cst_21 [1] : vector<64x128xi32> to vector<64xi32>
    %71 = vector.shape_cast %70 : vector<64xi32> to vector<64x1xi32>
    %72 = vector.broadcast %71 : vector<64x1xi32> to vector<64x128xi32>
    %73 = arith.cmpi eq, %69, %72 : vector<64x128xi32>
    %c-128_i32_22 = arith.constant -128 : i32
    %74 = vector.broadcast %c-128_i32_22 : i32 to vector<64x1xi32>
    %75 = arith.andi %71, %74 : vector<64x1xi32>
    %76 = tpu.bitcast %75 : vector<64x1xi32> -> vector<64x1xf32>
    %cst_23 = arith.constant 9.99999993E-9 : f32
    %77 = vector.broadcast %cst_23 : f32 to vector<64x1xf32>
    %78 = arith.addf %76, %77 : vector<64x1xf32>
    %79 = tpu.reciprocal %78 {approx = true} : vector<64x1xf32> -> vector<64x1xf32>
    %cst_24 = arith.constant 0.000000e+00 : f32
    %80 = vector.shape_cast %79 : vector<64x1xf32> to vector<64x1xf32>
    %81 = vector.broadcast %80 : vector<64x1xf32> to vector<64x128xf32>
    %82 = vector.broadcast %cst_24 : f32 to vector<64x128xf32>
    %83 = arith.select %73, %81, %82 : vector<64x128xi1>, vector<64x128xf32>
    %84 = arith.addf %67, %83 : vector<64x128xf32>
    %cst_25 = arith.constant dense<0.000000e+00> : vector<64xf32>
    %85 = vector.multi_reduction <add>, %84, %cst_25 [1] : vector<64x128xf32> to vector<64xf32>
    %86 = vector.shape_cast %85 : vector<64xf32> to vector<64x1xf32>
    %87 = tpu.reciprocal %86 : vector<64x1xf32> -> vector<64x1xf32>
    %88 = arith.truncf %84 : vector<64x128xf32> to vector<64x128xbf16>
    %cst_26 = arith.constant dense<0.000000e+00> : vector<64x32xf32>
    %89 = tpu.matmul %88, %7, %cst_26 {dimension_numbers = #tpu.dot_dimension_numbers<[1], [0], [0], [1], [0, 0, 1, 1], [], []>} : vector<64x128xbf16>, vector<128x32xbf16>, vector<64x32xf32> -> vector<64x32xf32>
    %90 = vector.broadcast %87 : vector<64x1xf32> to vector<64x32xf32>
    %91 = arith.mulf %89, %90 : vector<64x32xf32>
    %c0_27 = arith.constant 0 : index
    %c0_28 = arith.constant 0 : index
    %92 = vector.load %arg6[%c0_27, %c0_28] : memref<32x128xbf16, #tpu.memory_space<vmem>>, vector<32x128xbf16>
    %c0_29 = arith.constant 0 : index
    %c0_30 = arith.constant 0 : index
    %93 = vector.load %arg7[%c0_29, %c0_30] : memref<16x128xbf16, #tpu.memory_space<vmem>>, vector<16x128xbf16>
    %c0_31 = arith.constant 0 : index
    %c0_32 = arith.constant 0 : index
    %94 = vector.load %arg8[%c0_31, %c0_32] : memref<1x128xf32, #tpu.memory_space<vmem>>, vector<1x128xf32>
    %95 = arith.truncf %91 : vector<64x32xf32> to vector<64x32xbf16>
    %cst_33 = arith.constant dense<0.000000e+00> : vector<64x128xf32>
    %96 = tpu.matmul %95, %92, %cst_33 {dimension_numbers = #tpu.dot_dimension_numbers<[1], [0], [0], [1], [0, 0, 1, 1], [], []>} : vector<64x32xbf16>, vector<32x128xbf16>, vector<64x128xf32> -> vector<64x128xf32>
    %cst_34 = arith.constant dense<0.000000e+00> : vector<64x128xf32>
    %97 = tpu.matmul %5, %93, %cst_34 {dimension_numbers = #tpu.dot_dimension_numbers<[1], [0], [0], [1], [0, 0, 1, 1], [], []>} : vector<64x16xbf16>, vector<16x128xbf16>, vector<64x128xf32> -> vector<64x128xf32>
    %98 = arith.addf %96, %97 : vector<64x128xf32>
    %99 = vector.broadcast %94 : vector<1x128xf32> to vector<64x128xf32>
    %100 = arith.addf %98, %99 : vector<64x128xf32>
    %cst_35 = arith.constant 0.000000e+00 : f32
    %101 = vector.broadcast %cst_35 : f32 to vector<64x128xf32>
    %102 = arith.maximumf %100, %101 : vector<64x128xf32>
    %c0_36 = arith.constant 0 : index
    %c0_37 = arith.constant 0 : index
    %103 = vector.load %arg9[%c0_36, %c0_37] : memref<128x128xbf16, #tpu.memory_space<vmem>>, vector<128x128xbf16>
    %c0_38 = arith.constant 0 : index
    %c0_39 = arith.constant 0 : index
    %104 = vector.load %arg10[%c0_38, %c0_39] : memref<1x128xf32, #tpu.memory_space<vmem>>, vector<1x128xf32>
    %105 = arith.truncf %102 : vector<64x128xf32> to vector<64x128xbf16>
    %cst_40 = arith.constant dense<0.000000e+00> : vector<64x128xf32>
    %106 = tpu.matmul %105, %103, %cst_40 {dimension_numbers = #tpu.dot_dimension_numbers<[1], [0], [0], [1], [0, 0, 1, 1], [], []>} : vector<64x128xbf16>, vector<128x128xbf16>, vector<64x128xf32> -> vector<64x128xf32>
    %107 = vector.broadcast %104 : vector<1x128xf32> to vector<64x128xf32>
    %108 = arith.addf %106, %107 : vector<64x128xf32>
    %cst_41 = arith.constant 0.000000e+00 : f32
    %109 = vector.broadcast %cst_41 : f32 to vector<64x128xf32>
    %110 = arith.maximumf %108, %109 : vector<64x128xf32>
    %c0_42 = arith.constant 0 : index
    %c0_43 = arith.constant 0 : index
    %c0_44 = arith.constant 0 : index
    %111 = vector.load %arg11[%c0_42, %c0_43, %c0_44] : memref<1x64x128xf32, #tpu.memory_space<vmem>>, vector<1x64x128xf32>
    %112 = vector.shape_cast %111 : vector<1x64x128xf32> to vector<64x128xf32>
    %113 = vector.shape_cast %110 : vector<64x128xf32> to vector<1x64x128xf32>
    tpu.vector_store %arg11[%c0_42, %c0_43, %c0_44], %113 {strides = array<i32>} : memref<1x64x128xf32, #tpu.memory_space<vmem>>, vector<1x64x128xf32>,
    return
  }
  func.func @transform_0(%arg0: i32, %arg1: i32) -> (i32, i32, i32) {
    %c0_i32 = arith.constant 0 : i32
    %c0_i32_0 = arith.constant 0 : i32
    return %arg0, %arg1, %c0_i32 : i32, i32, i32
  }
  func.func @transform_1(%arg0: i32, %arg1: i32) -> (i32, i32, i32) {
    %c0_i32 = arith.constant 0 : i32
    %c0_i32_0 = arith.constant 0 : i32
    %c0_i32_1 = arith.constant 0 : i32
    return %arg0, %c0_i32, %c0_i32_0 : i32, i32, i32
  }
  func.func @transform_2(%arg0: i32, %arg1: i32) -> (i32, i32, i32) {
    %c0_i32 = arith.constant 0 : i32
    %c0_i32_0 = arith.constant 0 : i32
    return %arg0, %arg1, %c0_i32 : i32, i32, i32
  }
  func.func @transform_3(%arg0: i32, %arg1: i32) -> (i32, i32, i32) {
    %c0_i32 = arith.constant 0 : i32
    %c0_i32_0 = arith.constant 0 : i32
    %c0_i32_1 = arith.constant 0 : i32
    return %arg0, %c0_i32, %c0_i32_0 : i32, i32, i32
  }
  func.func @transform_4(%arg0: i32, %arg1: i32) -> (i32, i32) {
    %c0_i32 = arith.constant 0 : i32
    %c0_i32_0 = arith.constant 0 : i32
    %c0_i32_1 = arith.constant 0 : i32
    return %c0_i32, %c0_i32_0 : i32, i32
  }
  func.func @transform_5(%arg0: i32, %arg1: i32) -> (i32, i32) {
    %c0_i32 = arith.constant 0 : i32
    %c0_i32_0 = arith.constant 0 : i32
    %c0_i32_1 = arith.constant 0 : i32
    return %c0_i32, %c0_i32_0 : i32, i32
  }
  func.func @transform_6(%arg0: i32, %arg1: i32) -> (i32, i32) {
    %c0_i32 = arith.constant 0 : i32
    %c0_i32_0 = arith.constant 0 : i32
    %c0_i32_1 = arith.constant 0 : i32
    return %c0_i32, %c0_i32_0 : i32, i32
  }
  func.func @transform_7(%arg0: i32, %arg1: i32) -> (i32, i32) {
    %c0_i32 = arith.constant 0 : i32
    %c0_i32_0 = arith.constant 0 : i32
    %c0_i32_1 = arith.constant 0 : i32
    return %c0_i32, %c0_i32_0 : i32, i32
  }
  func.func @transform_8(%arg0: i32, %arg1: i32) -> (i32, i32) {
    %c0_i32 = arith.constant 0 : i32
    %c0_i32_0 = arith.constant 0 : i32
    %c0_i32_1 = arith.constant 0 : i32
    return %c0_i32, %c0_i32_0 : i32, i32
  }
  func.func @transform_9(%arg0: i32, %arg1: i32) -> (i32, i32, i32) {
    %c0_i32 = arith.constant 0 : i32
    %c0_i32_0 = arith.constant 0 : i32
    return %arg0, %arg1, %c0_i32 : i32, i32, i32
  }
}

module attributes {stable_mosaic.version = 11 : i64} {
  func.func @_fp_kernel(%arg0: i32, %arg1: i32, %arg2: memref<1x64x3xf32, #tpu.memory_space<vmem>>, %arg3: memref<1x3x128xf32, #tpu.memory_space<vmem>>, %arg4: memref<1x64x16xbf16, #tpu.memory_space<vmem>>, %arg5: memref<1x128x32xbf16, #tpu.memory_space<vmem>>, %arg6: memref<32x128xbf16, #tpu.memory_space<vmem>>, %arg7: memref<16x128xbf16, #tpu.memory_space<vmem>>, %arg8: memref<1x128xf32, #tpu.memory_space<vmem>>, %arg9: memref<128x128xbf16, #tpu.memory_space<vmem>>, %arg10: memref<1x128xf32, #tpu.memory_space<vmem>>, %arg11: memref<1x64x128xf32, #tpu.memory_space<vmem>>) attributes {dimension_semantics = [#tpu.dimension_semantics<parallel>, #tpu.dimension_semantics<parallel>], iteration_bounds = array<i64: 2, 1>, scalar_prefetch = 0 : i64, scratch_operands = 0 : i64, tpu.core_type = #tpu.core_type<tc>, window_params = [{transform_indices = @transform_0, window_bounds = array<i64: 1, 64, 3>}, {transform_indices = @transform_1, window_bounds = array<i64: 1, 3, 128>}, {transform_indices = @transform_2, window_bounds = array<i64: 1, 64, 16>}, {transform_indices = @transform_3, window_bounds = array<i64: 1, 128, 32>}, {pipeline_mode = #tpu.pipeline_mode<synchronous>, transform_indices = @transform_4, window_bounds = array<i64: 32, 128>}, {pipeline_mode = #tpu.pipeline_mode<synchronous>, transform_indices = @transform_5, window_bounds = array<i64: 16, 128>}, {pipeline_mode = #tpu.pipeline_mode<synchronous>, transform_indices = @transform_6, window_bounds = array<i64: 1, 128>}, {pipeline_mode = #tpu.pipeline_mode<synchronous>, transform_indices = @transform_7, window_bounds = array<i64: 128, 128>}, {pipeline_mode = #tpu.pipeline_mode<synchronous>, transform_indices = @transform_8, window_bounds = array<i64: 1, 128>}, {transform_indices = @transform_9, window_bounds = array<i64: 1, 64, 128>}]} {
    %c0 = arith.constant 0 : index
    %c0_0 = arith.constant 0 : index
    %c0_1 = arith.constant 0 : index
    %0 = vector.load %arg2[%c0, %c0_0, %c0_1] : memref<1x64x3xf32, #tpu.memory_space<vmem>>, vector<1x64x3xf32>
    %1 = vector.shape_cast %0 : vector<1x64x3xf32> to vector<64x3xf32>
    %c0_2 = arith.constant 0 : index
    %c0_3 = arith.constant 0 : index
    %c0_4 = arith.constant 0 : index
    %2 = vector.load %arg3[%c0_2, %c0_3, %c0_4] : memref<1x3x128xf32, #tpu.memory_space<vmem>>, vector<1x3x128xf32>
    %3 = vector.shape_cast %2 : vector<1x3x128xf32> to vector<3x128xf32>
    %c0_5 = arith.constant 0 : index
    %c0_6 = arith.constant 0 : index
    %c0_7 = arith.constant 0 : index
    %4 = vector.load %arg4[%c0_5, %c0_6, %c0_7] : memref<1x64x16xbf16, #tpu.memory_space<vmem>>, vector<1x64x16xbf16>
    %5 = vector.shape_cast %4 : vector<1x64x16xbf16> to vector<64x16xbf16>
    %c0_8 = arith.constant 0 : index
    %c0_9 = arith.constant 0 : index
    %c0_10 = arith.constant 0 : index
    %6 = vector.load %arg5[%c0_8, %c0_9, %c0_10] : memref<1x128x32xbf16, #tpu.memory_space<vmem>>, vector<1x128x32xbf16>
    %7 = vector.shape_cast %6 : vector<1x128x32xbf16> to vector<128x32xbf16>
    %cst = arith.constant 0.000000e+00 : f32
    %8 = vector.broadcast %cst : f32 to vector<64x128xf32>
    %9 = vector.extract_strided_slice %1 {offsets = [0, 0], sizes = [64, 1], strides = [1, 1]} : vector<64x3xf32> to vector<64x1xf32>
    %10 = vector.extract_strided_slice %3 {offsets = [0, 0], sizes = [1, 128], strides = [1, 1]} : vector<3x128xf32> to vector<1x128xf32>
    %11 = vector.broadcast %9 : vector<64x1xf32> to vector<64x128xf32>
    %12 = vector.broadcast %10 : vector<1x128xf32> to vector<64x128xf32>
    %13 = arith.subf %11, %12 : vector<64x128xf32>
    %14 = arith.mulf %13, %13 : vector<64x128xf32>
    %15 = arith.addf %8, %14 : vector<64x128xf32>
    %16 = vector.extract_strided_slice %1 {offsets = [0, 1], sizes = [64, 1], strides = [1, 1]} : vector<64x3xf32> to vector<64x1xf32>
    %17 = vector.extract_strided_slice %3 {offsets = [1, 0], sizes = [1, 128], strides = [1, 1]} : vector<3x128xf32> to vector<1x128xf32>
    %18 = vector.broadcast %16 : vector<64x1xf32> to vector<64x128xf32>
    %19 = vector.broadcast %17 : vector<1x128xf32> to vector<64x128xf32>
    %20 = arith.subf %18, %19 : vector<64x128xf32>
    %21 = arith.mulf %20, %20 : vector<64x128xf32>
    %22 = arith.addf %15, %21 : vector<64x128xf32>
    %23 = vector.extract_strided_slice %1 {offsets = [0, 2], sizes = [64, 1], strides = [1, 1]} : vector<64x3xf32> to vector<64x1xf32>
    %24 = vector.extract_strided_slice %3 {offsets = [2, 0], sizes = [1, 128], strides = [1, 1]} : vector<3x128xf32> to vector<1x128xf32>
    %25 = vector.broadcast %23 : vector<64x1xf32> to vector<64x128xf32>
    %26 = vector.broadcast %24 : vector<1x128xf32> to vector<64x128xf32>
    %27 = arith.subf %25, %26 : vector<64x128xf32>
    %28 = arith.mulf %27, %27 : vector<64x128xf32>
    %29 = arith.addf %22, %28 : vector<64x128xf32>
    %30 = tpu.bitcast %29 : vector<64x128xf32> -> vector<64x128xi32>
    %31 = tpu.iota {dimensions = array<i32: 1>} : vector<64x128xi32>
    %c-128_i32 = arith.constant -128 : i32
    %32 = vector.broadcast %c-128_i32 : i32 to vector<64x128xi32>
    %33 = arith.andi %30, %32 : vector<64x128xi32>
    %34 = arith.ori %33, %31 : vector<64x128xi32>
    %cst_11 = arith.constant 0.000000e+00 : f32
    %35 = vector.broadcast %cst_11 : f32 to vector<64x128xf32>
    %cst_12 = arith.constant dense<2147483647> : vector<64xi32>
    %36 = vector.multi_reduction <minsi>, %34, %cst_12 [1] : vector<64x128xi32> to vector<64xi32>
    %37 = vector.shape_cast %36 : vector<64xi32> to vector<64x1xi32>
    %38 = vector.broadcast %37 : vector<64x1xi32> to vector<64x128xi32>
    %39 = arith.cmpi eq, %34, %38 : vector<64x128xi32>
    %c-128_i32_13 = arith.constant -128 : i32
    %40 = vector.broadcast %c-128_i32_13 : i32 to vector<64x1xi32>
    %41 = arith.andi %37, %40 : vector<64x1xi32>
    %42 = tpu.bitcast %41 : vector<64x1xi32> -> vector<64x1xf32>
    %cst_14 = arith.constant 9.99999993E-9 : f32
    %43 = vector.broadcast %cst_14 : f32 to vector<64x1xf32>
    %44 = arith.addf %42, %43 : vector<64x1xf32>
    %45 = tpu.reciprocal %44 {approx = true} : vector<64x1xf32> -> vector<64x1xf32>
    %cst_15 = arith.constant 0.000000e+00 : f32
    %46 = vector.shape_cast %45 : vector<64x1xf32> to vector<64x1xf32>
    %47 = vector.broadcast %46 : vector<64x1xf32> to vector<64x128xf32>
    %48 = vector.broadcast %cst_15 : f32 to vector<64x128xf32>
    %49 = arith.select %39, %47, %48 : vector<64x128xi1>, vector<64x128xf32>
    %50 = arith.addf %35, %49 : vector<64x128xf32>
    %c2139095040_i32 = arith.constant 2139095040 : i32
    %51 = vector.broadcast %c2139095040_i32 : i32 to vector<64x128xi32>
    %52 = arith.select %39, %51, %34 : vector<64x128xi1>, vector<64x128xi32>
    %cst_16 = arith.constant dense<2147483647> : vector<64xi32>
    %53 = vector.multi_reduction <minsi>, %52, %cst_16 [1] : vector<64x128xi32> to vector<64xi32>
    %54 = vector.shape_cast %53 : vector<64xi32> to vector<64x1xi32>
    %55 = vector.broadcast %54 : vector<64x1xi32> to vector<64x128xi32>
    %56 = arith.cmpi eq, %52, %55 : vector<64x128xi32>
    %c-128_i32_17 = arith.constant -128 : i32
    %57 = vector.broadcast %c-128_i32_17 : i32 to vector<64x1xi32>
    %58 = arith.andi %54, %57 : vector<64x1xi32>
    %59 = tpu.bitcast %58 : vector<64x1xi32> -> vector<64x1xf32>
    %cst_18 = arith.constant 9.99999993E-9 : f32
    %60 = vector.broadcast %cst_18 : f32 to vector<64x1xf32>
    %61 = arith.addf %59, %60 : vector<64x1xf32>
    %62 = tpu.reciprocal %61 {approx = true} : vector<64x1xf32> -> vector<64x1xf32>
    %cst_19 = arith.constant 0.000000e+00 : f32
    %63 = vector.shape_cast %62 : vector<64x1xf32> to vector<64x1xf32>
    %64 = vector.broadcast %63 : vector<64x1xf32> to vector<64x128xf32>
    %65 = vector.broadcast %cst_19 : f32 to vector<64x128xf32>
    %66 = arith.select %56, %64, %65 : vector<64x128xi1>, vector<64x128xf32>
    %67 = arith.addf %50, %66 : vector<64x128xf32>
    %c2139095040_i32_20 = arith.constant 2139095040 : i32
    %68 = vector.broadcast %c2139095040_i32_20 : i32 to vector<64x128xi32>
    %69 = arith.select %56, %68, %52 : vector<64x128xi1>, vector<64x128xi32>
    %cst_21 = arith.constant dense<2147483647> : vector<64xi32>
    %70 = vector.multi_reduction <minsi>, %69, %cst_21 [1] : vector<64x128xi32> to vector<64xi32>
    %71 = vector.shape_cast %70 : vector<64xi32> to vector<64x1xi32>
    %72 = vector.broadcast %71 : vector<64x1xi32> to vector<64x128xi32>
    %73 = arith.cmpi eq, %69, %72 : vector<64x128xi32>
    %c-128_i32_22 = arith.constant -128 : i32
    %74 = vector.broadcast %c-128_i32_22 : i32 to vector<64x1xi32>
    %75 = arith.andi %71, %74 : vector<64x1xi32>
    %76 = tpu.bitcast %75 : vector<64x1xi32> -> vector<64x1xf32>
    %cst_23 = arith.constant 9.99999993E-9 : f32
    %77 = vector.broadcast %cst_23 : f32 to vector<64x1xf32>
    %78 = arith.addf %76, %77 : vector<64x1xf32>
    %79 = tpu.reciprocal %78 {approx = true} : vector<64x1xf32> -> vector<64x1xf32>
    %cst_24 = arith.constant 0.000000e+00 : f32
    %80 = vector.shape_cast %79 : vector<64x1xf32> to vector<64x1xf32>
    %81 = vector.broadcast %80 : vector<64x1xf32> to vector<64x128xf32>
    %82 = vector.broadcast %cst_24 : f32 to vector<64x128xf32>
    %83 = arith.select %73, %81, %82 : vector<64x128xi1>, vector<64x128xf32>
    %84 = arith.addf %67, %83 : vector<64x128xf32>
    %cst_25 = arith.constant dense<0.000000e+00> : vector<64xf32>
    %85 = vector.multi_reduction <add>, %84, %cst_25 [1] : vector<64x128xf32> to vector<64xf32>
    %86 = vector.shape_cast %85 : vector<64xf32> to vector<64x1xf32>
    %87 = tpu.reciprocal %86 : vector<64x1xf32> -> vector<64x1xf32>
    %88 = arith.truncf %84 : vector<64x128xf32> to vector<64x128xbf16>
    %cst_26 = arith.constant dense<0.000000e+00> : vector<64x32xf32>
    %89 = tpu.matmul %88, %7, %cst_26 {dimension_numbers = #tpu.dot_dimension_numbers<[1], [0], [0], [1], [0, 0, 1, 1], [], []>} : vector<64x128xbf16>, vector<128x32xbf16>, vector<64x32xf32> -> vector<64x32xf32>
    %90 = vector.broadcast %87 : vector<64x1xf32> to vector<64x32xf32>
    %91 = arith.mulf %89, %90 : vector<64x32xf32>
    %c0_27 = arith.constant 0 : index
    %c0_28 = arith.constant 0 : index
    %92 = vector.load %arg6[%c0_27, %c0_28] : memref<32x128xbf16, #tpu.memory_space<vmem>>, vector<32x128xbf16>
    %c0_29 = arith.constant 0 : index
    %c0_30 = arith.constant 0 : index
    %93 = vector.load %arg7[%c0_29, %c0_30] : memref<16x128xbf16, #tpu.memory_space<vmem>>, vector<16x128xbf16>
    %c0_31 = arith.constant 0 : index
    %c0_32 = arith.constant 0 : index
    %94 = vector.load %arg8[%c0_31, %c0_32] : memref<1x128xf32, #tpu.memory_space<vmem>>, vector<1x128xf32>
    %95 = arith.truncf %91 : vector<64x32xf32> to vector<64x32xbf16>
    %cst_33 = arith.constant dense<0.000000e+00> : vector<64x128xf32>
    %96 = tpu.matmul %95, %92, %cst_33 {dimension_numbers = #tpu.dot_dimension_numbers<[1], [0], [0], [1], [0, 0, 1, 1], [], []>} : vector<64x32xbf16>, vector<32x128xbf16>, vector<64x128xf32> -> vector<64x128xf32>
    %cst_34 = arith.constant dense<0.000000e+00> : vector<64x128xf32>
    %97 = tpu.matmul %5, %93, %cst_34 {dimension_numbers = #tpu.dot_dimension_numbers<[1], [0], [0], [1], [0, 0, 1, 1], [], []>} : vector<64x16xbf16>, vector<16x128xbf16>, vector<64x128xf32> -> vector<64x128xf32>
    %98 = arith.addf %96, %97 : vector<64x128xf32>
    %99 = vector.broadcast %94 : vector<1x128xf32> to vector<64x128xf32>
    %100 = arith.addf %98, %99 : vector<64x128xf32>
    %cst_35 = arith.constant 0.000000e+00 : f32
    %101 = vector.broadcast %cst_35 : f32 to vector<64x128xf32>
    %102 = arith.maximumf %100, %101 : vector<64x128xf32>
    %c0_36 = arith.constant 0 : index
    %c0_37 = arith.constant 0 : index
    %103 = vector.load %arg9[%c0_36, %c0_37] : memref<128x128xbf16, #tpu.memory_space<vmem>>, vector<128x128xbf16>
    %c0_38 = arith.constant 0 : index
    %c0_39 = arith.constant 0 : index
    %104 = vector.load %arg10[%c0_38, %c0_39] : memref<1x128xf32, #tpu.memory_space<vmem>>, vector<1x128xf32>
    %105 = arith.truncf %102 : vector<64x128xf32> to vector<64x128xbf16>
    %cst_40 = arith.constant dense<0.000000e+00> : vector<64x128xf32>
    %106 = tpu.matmul %105, %103, %cst_40 {dimension_numbers = #tpu.dot_dimension_numbers<[1], [0], [0], [1], [0, 0, 1, 1], [], []>} : vector<64x128xbf16>, vector<128x128xbf16>, vector<64x128xf32> -> vector<64x128xf32>
    %107 = vector.broadcast %104 : vector<1x128xf32> to vector<64x128xf32>
    %108 = arith.addf %106, %107 : vector<64x128xf32>
    %cst_41 = arith.constant 0.000000e+00 : f32
    %109 = vector.broadcast %cst_41 : f32 to vector<64x128xf32>
    %110 = arith.maximumf %108, %109 : vector<64x128xf32>
    %c0_42 = arith.constant 0 : index
    %c0_43 = arith.constant 0 : index
    %c0_44 = arith.constant 0 : index
    %111 = vector.load %arg11[%c0_42, %c0_43, %c0_44] : memref<1x64x128xf32, #tpu.memory_space<vmem>>, vector<1x64x128xf32>
    %112 = vector.shape_cast %111 : vector<1x64x128xf32> to vector<64x128xf32>
    %113 = vector.shape_cast %110 : vector<64x128xf32> to vector<1x64x128xf32>
    tpu.vector_store %arg11[%c0_42, %c0_43, %c0_44], %113 {strides = array<i32>} : memref<1x64x128xf32, #tpu.memory_space<vmem>>, vector<1x64x128xf32>,
    return
  }
  func.func @transform_0(%arg0: i32, %arg1: i32) -> (i32, i32, i32) {
    %c0_i32 = arith.constant 0 : i32
    %c0_i32_0 = arith.constant 0 : i32
    return %arg0, %arg1, %c0_i32 : i32, i32, i32
  }
  func.func @transform_1(%arg0: i32, %arg1: i32) -> (i32, i32, i32) {
    %c0_i32 = arith.constant 0 : i32
    %c0_i32_0 = arith.constant 0 : i32
    %c0_i32_1 = arith.constant 0 : i32
    return %arg0, %c0_i32, %c0_i32_0 : i32, i32, i32
  }
  func.func @transform_2(%arg0: i32, %arg1: i32) -> (i32, i32, i32) {
    %c0_i32 = arith.constant 0 : i32
    %c0_i32_0 = arith.constant 0 : i32
    return %arg0, %arg1, %c0_i32 : i32, i32, i32
  }
  func.func @transform_3(%arg0: i32, %arg1: i32) -> (i32, i32, i32) {
    %c0_i32 = arith.constant 0 : i32
    %c0_i32_0 = arith.constant 0 : i32
    %c0_i32_1 = arith.constant 0 : i32
    return %arg0, %c0_i32, %c0_i32_0 : i32, i32, i32
  }
  func.func @transform_4(%arg0: i32, %arg1: i32) -> (i32, i32) {
    %c0_i32 = arith.constant 0 : i32
    %c0_i32_0 = arith.constant 0 : i32
    %c0_i32_1 = arith.constant 0 : i32
    return %c0_i32, %c0_i32_0 : i32, i32
  }
  func.func @transform_5(%arg0: i32, %arg1: i32) -> (i32, i32) {
    %c0_i32 = arith.constant 0 : i32
    %c0_i32_0 = arith.constant 0 : i32
    %c0_i32_1 = arith.constant 0 : i32
    return %c0_i32, %c0_i32_0 : i32, i32
  }
  func.func @transform_6(%arg0: i32, %arg1: i32) -> (i32, i32) {
    %c0_i32 = arith.constant 0 : i32
    %c0_i32_0 = arith.constant 0 : i32
    %c0_i32_1 = arith.constant 0 : i32
    return %c0_i32, %c0_i32_0 : i32, i32
  }
  func.func @transform_7(%arg0: i32, %arg1: i32) -> (i32, i32) {
    %c0_i32 = arith.constant 0 : i32
    %c0_i32_0 = arith.constant 0 : i32
    %c0_i32_1 = arith.constant 0 : i32
    return %c0_i32, %c0_i32_0 : i32, i32
  }
  func.func @transform_8(%arg0: i32, %arg1: i32) -> (i32, i32) {
    %c0_i32 = arith.constant 0 : i32
    %c0_i32_0 = arith.constant 0 : i32
    %c0_i32_1 = arith.constant 0 : i32
    return %c0_i32, %c0_i32_0 : i32, i32
  }
  func.func @transform_9(%arg0: i32, %arg1: i32) -> (i32, i32, i32) {
    %c0_i32 = arith.constant 0 : i32
    %c0_i32_0 = arith.constant 0 : i32
    return %arg0, %arg1, %c0_i32 : i32, i32, i32
  }
}

</mosaic_0001>

<bundles_post_ra>
// kernel: tpu_custom_call.1
= control target key start
LH: loop header
LB: loop body
LE: loop exit
PB: predicated region body
PF: predicated region fallthrough
CT: control target
= control target key end

     0   :  { %14 = vsyncpa [#allocation3], 0  ;;  %s2958_s0 = inlined_call_operand.vmem [shape: f32[2,64,3], index: 0, kind: input, shape index: {}]   ;;  %s2959_s1 = inlined_call_operand.vmem [shape: f32[2,3,128], index: 1, kind: input, shape index: {}]   ;;  %s2960_s2 = inlined_call_operand.vmem [shape: bf16[2,64,16], index: 2, kind: input, shape index: {}]   ;;  %s2961_s3 = inlined_call_operand.vmem [shape: bf16[2,128,32], index: 3, kind: input, shape index: {}]   ;;  %s2962_s4 = inlined_call_operand.vmem [shape: bf16[32,128], index: 4, kind: input, shape index: {}]   ;;  %s2963_s5 = inlined_call_operand.vmem [shape: bf16[16,128], index: 5, kind: input, shape index: {}]   ;;  %s2964_s6 = inlined_call_operand.vmem [shape: f32[1,128], index: 6, kind: input, shape index: {}]   ;;  %s2965_s7 = inlined_call_operand.vmem [shape: bf16[128,128], index: 7, kind: input, shape index: {}]   ;;  %s2966_s8 = inlined_call_operand.vmem [shape: f32[1,128], index: 8, kind: input, shape index: {}]   ;;  %s2967_s9 = inlined_call_operand.hbm [shape: f32[2,64,128], index: 9, kind: output, shape index: {}]  }
   0x1   :  { %16 = vsyncpa [#allocation3 + $0x1], 0  ;;  %s2338_s30 = smov 0   ;;  %s2340_s10 = smov 0  }
   0x2   :  { %s2342_s11 = smov 0   ;;  %s2344_s12 = smov 0  }
   0x3   :  { %s2346_s13 = smov 0   ;;  %s2348_s14 = smov 0  }
   0x4 LB: > { %s1872_s15 = sadd.s32 4294967295, %s2280_s14   ;;  %s1873_s16 = sadd.s32 4294967294, %s2280_s14   ;;  %s2280_s14 = sphi %s2348_s14, %s22_s14   ;;  %s2276_s13 = sphi %s2346_s13, %s2974_s13   ;;  %s2272_s12 = sphi %s2344_s12, %s2973_s12   ;;  %s2268_s11 = sphi %s2342_s11, %s2972_s11   ;;  %s2264_s10 = sphi %s2340_s10, %s2971_s10   ;;  %s2260_s30 = sphi %s2338_s30, %s2970_s30  }
   0x5   : > { %s34_s17 = sadd.s32 1, %s2276_s13  ;;  %s256_s18 = sadd.s32 1, %s2268_s11 }
   0x6   : > { %p36_p0 = scmp.ge.s32.totalorder %s34_s17, 2  ;;  %p266_p1 = scmp.ne.s32.totalorder %s2268_s11, %s2264_s10 }
   0x7   : > { %p267_p2 = scmp.eq.s32.totalorder %s1872_s15, 1  ;;  %p272_p3 = scmp.ne.s32.totalorder %s2264_s10, %s2260_s30 }
   0x8   : > { %s2976_s17 = smov (%p36_p0, %s34_s17), 0  ;;  %p273_p5 = scmp.eq.s32.totalorder %s1873_s16, 1 }
   0x9   : > { %p2378_p4 = por %p267_p2, %p266_p1  ;;  %s251_s20 = ssub.s32 %s2276_s13, %s2976_s17 }
   0xa   : > { %p1876_p6 = scmp.ge.s32.totalorder %s2280_s14, 1  ;;  %p254_p7 = scmp.eq.s32.totalorder %s251_s20, 0 }
   0xb   : > { %p2385_p8 = por %p273_p5, %p272_p3  ;;  %p347_p9 = scmp.lt.s32.totalorder %s2280_s14, 3 }
   0xc   : > { %s2391_s22 = scalar_select %p254_p7, %s2268_s11, %s256_s18  }
   0xd   : > { %p348_p10 = pnand %p1876_p6, %p347_p9 }
   0xe   : > { %p406_p11 = scmp.lt.s32.totalorder (!%p348_p10), %s2272_s12, 1  ;;  %v2282_v0 = vmov (!%p348_p10), 2   ;;  %v2283_v1 = vmov (!%p348_p10), 1   ;;  %v2284_v4 = vmov (!%p348_p10), 0   ;;  %v509_v11 = vlaneseq (!%p348_p10)  ;;  %s1926_s25 = sshll.u32 (!%p348_p10), %s2272_s12, 10 }
   0xf   : > { %351 = sbr.rel (%p348_p10) target bundleno = 1809 (0x711), region = 56  ;;  %2106 = vset.pattern.permute.xlu0 (!%p348_p10), %v2282_v0  ;;  %2102 = vset.pattern.permute.xlu1 (!%p348_p10), %v2283_v1  ;;  %s2906_s29 = scalar_lea.hbm (!%p348_p10), %s2967_s9, %s1926_s25 }
  0x10   : > { %v510_v12 = vshrl.u32 (!%p348_p10), %v509_v11, 7  ;;  %v2431_v37 = vand.u32 (!%p348_p10), 127, %v509_v11  ;;  %s2285_s18 = smov (!%p348_p10), [#allocation2]  }
  0x11   : > { %s2206_s20 = sshll.u32 (!%p348_p10), %s2285_s18, 4  ;;  %s2207_s20 = int_to_ptr.vmem [resolvable:$false] %s2206_s20 }
  0x12   : > { %v631_v13 = vsub.s32 (!%p348_p10), 2, %v510_v12  ;;  %v571_v16 = vsub.s32 (!%p348_p10), 1, %v510_v12  ;;  %v511_v18 = vsub.s32 (!%p348_p10), 0, %v510_v12 }
  0x16   : > { %s2395_s23 = scalar_select %p406_p11, %s2272_s12, 1 }
  0x18   : > { %s1923_s24 = sshll.u32 %s2395_s23, 6  ;;  %s1880_s16 = sshll.u32 %s2395_s23, 2 }
  0x19   : > { %s2401_s27 = scalar_lea.vmem %s2958_s0, %s1923_s24  ;;  %s2408_s15 = scalar_lea.vmem %s2961_s3, %s1923_s24 }
  0x1a   : > { %v437_v2 = vld [vmem:[%s2401_s27 + $0x8] sm:$0xff]  ;;  %v436_v3 = vld [vmem:[%s2401_s27] sm:$0xff]  ;;  %v439_v5 = vld [vmem:[%s2401_s27 + $0x18] sm:$0xff]  ;;  %s418_s24 = scalar_lea.vmem %s2959_s1, %s1880_s16  ;;  %s402_s16 = sand.u32 1, %s2264_s10  }
  0x1b   : > { %602 = vperm.xlu0 %2106, %v437_v2   ;;  %538 = vperm.xlu1 %2102, %v436_v3   ;;  %v438_v6 = vld [vmem:[%s2401_s27 + $0x10] sm:$0xff]  ;;  %v440_v7 = vld [vmem:[%s2401_s27 + $0x20] sm:$0xff]  ;;  %v441_v8 = vld [vmem:[%s2401_s27 + $0x28] sm:$0xff]  ;;  %s2912_s12 = scalar_lea.sflag [#allocation3], %s402_s16 }
  0x1c   : > { %v442_v9 = vld [vmem:[%s2401_s27 + $0x30] sm:$0xff]  ;;  %v443_v10 = vld [vmem:[%s2401_s27 + $0x38] sm:$0xff]  ;;  %v444_v17 = vld [vmem:[%s418_s24] sm:$0x7]  ;;  %s1924_s27 = sshll.u32 %s2395_s23, 5  ;;  %s1877_s24 = sshll.u32 %s402_s16, 6 }
  0x1d   : > { %v2420_v19 = vrot.slane %v444_v17, %v631_v13  ;;  %v2422_v22 = vrot.slane %v444_v17, %v571_v16  ;;  %v2424_v23 = vrot.slane %v444_v17, %v511_v18  ;;  %s404_s23 = scalar_lea.vmem [#allocation2], %s1877_s24  ;;  %s2208_s24 = scalar_lea.vmem %s2207_s20, 2048 }
  0x1e   : > { %s1751_s26 = sshll.u32 %s404_s23, 4  ;;  %s2908_s26 = int_to_ptr.vmem [resolvable:$true] %s1751_s26 }
  0x1f   : > { %2107 = vset.pattern.permute.xlu0 %v2284_v4  ;;  %542 = vperm.xlu1 %2102, %v437_v2   ;;  %p2209_p1 = scmp.lt.s32.totalorder %s2908_s26, %s2207_s20 }
  0x20   : > { %471 = vperm.xlu0 %2107, %v436_v3  }
  0x23   : > { %2103 = vset.pattern.permute.xlu1 %v2284_v4 }
  0x24   : > { %476 = vperm.xlu0 %2107, %v437_v2   ;;  %486 = vperm.xlu1 %2103, %v439_v5  }
  0x28   : > { %481 = vperm.xlu0 %2107, %v438_v6   ;;  %2104 = vset.pattern.permute.xlu1 %v2283_v1 }
  0x29   : > { %550 = vperm.xlu1 %2104, %v439_v5  }
  0x2c   : > { %491 = vperm.xlu0 %2107, %v440_v7  }
  0x2d   : > { %2105 = vset.pattern.permute.xlu1 %v2282_v0 }
  0x2e   : > { %598 = vperm.xlu1 %2105, %v436_v3  }
  0x30   : > { %2108 = vset.pattern.permute.xlu0 %v2283_v1 }
  0x31   : > { %546 = vperm.xlu0 %2108, %v438_v6  }
  0x32   : > { %606 = vperm.xlu1 %2105, %v438_v6  }
  0x35   : > { %558 = vperm.xlu0 %2108, %v441_v8  }
  0x36   : > { %610 = vperm.xlu1 %2105, %v439_v5  }
  0x39   : > { %562 = vperm.xlu0 %2108, %v442_v9  }
  0x3a   : > { %2109 = vset.pattern.permute.xlu1 %v2284_v4 }
  0x3b   : > { %496 = vperm.xlu1 %2109, %v441_v8  }
  0x3d   : > { %2113 = vset.pattern.permute.xlu0 %v2282_v0 }
  0x3e   : > { %614 = vperm.xlu0 %2113, %v440_v7  }
  0x3f   : > { %2110 = vset.pattern.permute.xlu1 %v2283_v1 }
  0x40   : > { %554 = vperm.xlu1 %2110, %v440_v7  }
  0x42   : > { %626 = vperm.xlu0 %2113, %v443_v10  }
  0x44   : > { %2111 = vset.pattern.permute.xlu1 %v2284_v4 }
  0x45   : > { %501 = vperm.xlu1 %2111, %v442_v9  }
  0x49   : > { %506 = vperm.xlu1 %2111, %v443_v10  }
  0x4d   : > { %2112 = vset.pattern.permute.xlu1 %v2283_v1 }
  0x4e   : > { %566 = vperm.xlu1 %2112, %v443_v10  }
  0x52   : > { %2114 = vset.pattern.permute.xlu1 %v2282_v0 }
  0x53   : > { %618 = vperm.xlu1 %2114, %v441_v8  }
  0x57   : > { %622 = vperm.xlu1 %2114, %v442_v9  }
  0x9a   : > { %v539_v14 = vpop.permute.xlu1 %538  ;;  %v603_v15 = vpop.permute.xlu0 %602 }
  0x9b   : > { %v634_v24 = vsub.f32 %v603_v15, %v2420_v19  ;;  %v573_v36 = vsub.f32 %v539_v14, %v2422_v22 }
  0x9d   : > { %v642_v29 = vmul.f32 %v634_v24, %v634_v24  ;;  %v581_v44 = vmul.f32 %v573_v36, %v573_v36 }
  0x9e   : > { %v543_v20 = vpop.permute.xlu1 %542 }
  0x9f   : > { %v472_v21 = vpop.permute.xlu0 %471  ;;  %v574_v25 = vsub.f32 %v543_v20, %v2422_v22 }
  0xa0   : > { %v513_v33 = vsub.f32 %v472_v21, %v2424_v23 }
  0xa1   : > { %v582_v30 = vmul.f32 %v574_v25, %v574_v25 }
  0xa2   : > { %v521_v40 = vmul.f32 %v513_v33, %v513_v33 }
  0xa3   : > { %v477_v26 = vpop.permute.xlu0 %476  ;;  %v487_v27 = vpop.permute.xlu1 %486 }
  0xa4   : > { %v514_v28 = vsub.f32 %v477_v26, %v2424_v23  ;;  %v589_v47 = vadd.f32 %v581_v44, %v521_v40  ;;  %v516_v55 = vsub.f32 %v487_v27, %v2424_v23 }
  0xa6   : > { %v522_v31 = vmul.f32 %v514_v28, %v514_v28  ;;  %v524_v2 = vmul.f32 %v516_v55, %v516_v55 }
  0xa7   : > { %v482_v32 = vpop.permute.xlu0 %481 }
  0xa8   : > { %v590_v34 = vadd.f32 %v582_v30, %v522_v31  ;;  %v551_v35 = vpop.permute.xlu1 %550  ;;  %v515_v42 = vsub.f32 %v482_v32, %v2424_v23 }
  0xa9   : > { %v576_v48 = vsub.f32 %v551_v35, %v2422_v22 }
  0xaa   : > { %v650_v38 = vadd.f32 %v642_v29, %v590_v34  ;;  %v523_v52 = vmul.f32 %v515_v42, %v515_v42 }
  0xab   : > { %v492_v39 = vpop.permute.xlu0 %491  ;;  %v584_v60 = vmul.f32 %v576_v48, %v576_v48 }
  0xac   : > { %v668_v41 = vand.u32 4294967168, %v650_v38  ;;  %v517_v18 = vsub.f32 %v492_v39, %v2424_v23 }
  0xad   : > { %v599_v43 = vpop.permute.xlu1 %598  ;;  %v592_v6 = vadd.f32 %v584_v60, %v524_v2 }
  0xae   : > { %v2435_v45 = vor.u32 %v668_v41, %v2431_v37  ;;  %v633_v46 = vsub.f32 %v599_v43, %v2420_v19  ;;  %v525_v28 = vmul.f32 %v517_v18, %v517_v18 }
  0xb0   : > { %v641_v49 = vmul.f32 %v633_v46, %v633_v46  ;;  %v547_v50 = vpop.permute.xlu0 %546  ;;  %v698_v51 = vshra.s32 %v2435_v45, 16 }
  0xb1   : > { %v575_v53 = vsub.f32 %v547_v50, %v2422_v22  ;;  %v607_v54 = vpop.permute.xlu1 %606 }
  0xb2   : > { %v649_v56 = vadd.f32 %v641_v49, %v589_v47  ;;  %v635_v57 = vsub.f32 %v607_v54, %v2420_v19  ;;  %v2443_v58 = vcvt.s32.f32 %v698_v51 }
  0xb3   : > { %v583_v59 = vmul.f32 %v575_v53, %v575_v53 }
  0xb4   : > { %v667_v61 = vand.u32 4294967168, %v649_v56  ;;  %v643_v62 = vmul.f32 %v635_v57, %v635_v57  ;;  %701 = vmin.xlane.f32.xlu0 %v2443_v58  ;;  %v559_v63 = vpop.permute.xlu0 %558 }
  0xb5   : > { %v591_v0 = vadd.f32 %v583_v59, %v523_v52  ;;  %v611_v1 = vpop.permute.xlu1 %610  ;;  %v578_v43 = vsub.f32 %v559_v63, %v2422_v22 }
  0xb6   : > { %v2447_v3 = vor.u32 %v667_v61, %v2431_v37  ;;  %v636_v4 = vsub.f32 %v611_v1, %v2420_v19 }
  0xb7   : > { %v651_v5 = vadd.f32 %v643_v62, %v591_v0  ;;  %v586_v52 = vmul.f32 %v578_v43, %v578_v43 }
  0xb8   : > { %v644_v7 = vmul.f32 %v636_v4, %v636_v4  ;;  %v684_v8 = vshra.s32 %v2447_v3, 16  ;;  %v563_v9 = vpop.permute.xlu0 %562 }
  0xb9   : > { %v669_v10 = vand.u32 4294967168, %v651_v5  ;;  %v579_v54 = vsub.f32 %v563_v9, %v2422_v22 }
  0xba   : > { %v652_v11 = vadd.f32 %v644_v7, %v592_v6  ;;  %v497_v12 = vpop.permute.xlu1 %496  ;;  %v2451_v13 = vcvt.s32.f32 %v684_v8 }
  0xbb   : > { %v2454_v14 = vor.u32 %v669_v10, %v2431_v37  ;;  %v518_v44 = vsub.f32 %v497_v12, %v2424_v23  ;;  %v587_v62 = vmul.f32 %v579_v54, %v579_v54 }
  0xbc   : > { %v670_v15 = vand.u32 4294967168, %v652_v11  ;;  %687 = vmin.xlane.f32.xlu1 %v2451_v13 }
  0xbd   : > { %v615_v16 = vpop.permute.xlu0 %614  ;;  %v712_v17 = vshra.s32 %v2454_v14, 16  ;;  %v526_v53 = vmul.f32 %v518_v44, %v518_v44 }
  0xbe   : > { %v2460_v20 = vor.u32 %v670_v15, %v2431_v37  ;;  %v637_v21 = vsub.f32 %v615_v16, %v2420_v19 }
  0xbf   : > { %v555_v24 = vpop.permute.xlu1 %554  ;;  %v2463_v25 = vcvt.s32.f32 %v712_v17  ;;  %v594_v61 = vadd.f32 %v586_v52, %v526_v53 }
  0xc0   : > { %v577_v26 = vsub.f32 %v555_v24, %v2422_v22  ;;  %v726_v27 = vshra.s32 %v2460_v20, 16  ;;  %v645_v30 = vmul.f32 %v637_v21, %v637_v21  ;;  %v697_v21 = vand.u32 65535, %v2435_v45 }
  0xc1   : > { %715 = vmin.xlane.f32.xlu0 %v2463_v25  ;;  %v627_v38 = vpop.permute.xlu0 %626 }
  0xc2   : > { %v585_v29 = vmul.f32 %v577_v26, %v577_v26  ;;  %v2468_v31 = vcvt.s32.f32 %v726_v27  ;;  %v640_v41 = vsub.f32 %v627_v38, %v2420_v19  ;;  %v699_v26 = vcvt.s32.f32 %v697_v21 }
  0xc4   : > { %v593_v32 = vadd.f32 %v585_v29, %v525_v28  ;;  %729 = vmin.xlane.f32.xlu1 %v2468_v31  ;;  %v502_v33 = vpop.permute.xlu1 %501  ;;  %v648_v51 = vmul.f32 %v640_v41, %v640_v41 }
  0xc5   : > { %v519_v55 = vsub.f32 %v502_v33, %v2424_v23  ;;  %v725_v33 = vand.u32 65535, %v2460_v20 }
  0xc6   : > { %v653_v34 = vadd.f32 %v645_v30, %v593_v32  ;;  %v711_v30 = vand.u32 65535, %v2454_v14 }
  0xc7   : > { %v527_v63 = vmul.f32 %v519_v55, %v519_v55  ;;  %v727_v38 = vcvt.s32.f32 %v725_v33 }
  0xc8   : > { %v671_v35 = vand.u32 4294967168, %v653_v34  ;;  %v507_v36 = vpop.permute.xlu1 %506 }
  0xc9   : > { %v520_v40 = vsub.f32 %v507_v36, %v2424_v23  ;;  %v595_v6 = vadd.f32 %v587_v62, %v527_v63 }
  0xca   : > { %v2472_v39 = vor.u32 %v671_v35, %v2431_v37  ;;  %v713_v35 = vcvt.s32.f32 %v711_v30 }
  0xcb   : > { %v528_v49 = vmul.f32 %v520_v40, %v520_v40 }
  0xcc   : > { %v740_v42 = vshra.s32 %v2472_v39, 16 }
  0xcd   : > { %v567_v46 = vpop.permute.xlu1 %566 }
  0xce   : > { %v580_v47 = vsub.f32 %v567_v46, %v2422_v22  ;;  %v2480_v48 = vcvt.s32.f32 %v740_v42 }
  0xd0   : > { %v588_v50 = vmul.f32 %v580_v47, %v580_v47  ;;  %743 = vmin.xlane.f32.xlu0 %v2480_v48 }
  0xd2   : > { %v596_v56 = vadd.f32 %v588_v50, %v528_v49  ;;  %v619_v57 = vpop.permute.xlu1 %618 }
  0xd3   : > { %v638_v59 = vsub.f32 %v619_v57, %v2420_v19 }
  0xd4   : > { %v656_v60 = vadd.f32 %v648_v51, %v596_v56 }
  0xd5   : > { %v646_v0 = vmul.f32 %v638_v59, %v638_v59 }
  0xd6   : > { %v623_v1 = vpop.permute.xlu1 %622  ;;  %v674_v2 = vand.u32 4294967168, %v656_v60 }
  0xd7   : > { %v654_v4 = vadd.f32 %v646_v0, %v594_v61  ;;  %v639_v5 = vsub.f32 %v623_v1, %v2420_v19 }
  0xd8   : > { %v2488_v22 = vor.u32 %v674_v2, %v2431_v37 }
  0xd9   : > { %v672_v7 = vand.u32 4294967168, %v654_v4  ;;  %v647_v8 = vmul.f32 %v639_v5, %v639_v5 }
  0xda   : > { %v782_v16 = vshra.s32 %v2488_v22, 16 }
  0xdb   : > { %v2491_v23 = vor.u32 %v672_v7, %v2431_v37  ;;  %v655_v9 = vadd.f32 %v647_v8, %v595_v6 }
  0xdc   : > { %v784_v17 = vcvt.s32.f32 %v782_v16 }
  0xdd   : > { %v673_v10 = vand.u32 4294967168, %v655_v9  ;;  %v754_v11 = vshra.s32 %v2491_v23, 16 }
  0xdf   : > { %v2495_v12 = vor.u32 %v673_v10, %v2431_v37  ;;  %v756_v15 = vcvt.s32.f32 %v754_v11  ;;  %v683_v37 = vand.u32 65535, %v2447_v3 }
  0xe1   : > { %757 = vmin.xlane.f32.xlu1 %v756_v15  ;;  %v768_v19 = vshra.s32 %v2495_v12, 16  ;;  %v685_v29 = vcvt.s32.f32 %v683_v37  ;;  %v767_v47 = vand.u32 65535, %v2495_v12 }
  0xe3   : > { %v770_v18 = vcvt.s32.f32 %v768_v19 }
  0xe5   : > { %785 = vmin.xlane.f32.xlu1 %v784_v17  ;;  %771 = vmin.xlane.f32.xlu0 %v770_v18 }
 0x141   : > { %v702_v24 = vpop.xlane.xlu0 %701 }
 0x142   : > { %vm703_vm0 = vcmp.eq.f32.partialorder %v2443_v58, %v702_v24  ;;  %v708_v55 = vcvt.f32.s32 %v702_v24 }
 0x143   : > { %v704_v27 = vsel %vm703_vm0, %v699_v26, inf }
 0x144   : > { %705 = vmin.xlane.f32.xlu1 %v704_v27  ;;  %v709_v57 = vshll.u32 %v708_v55, 16 }
 0x149   : > { %v688_v28 = vpop.xlane.xlu1 %687 }
 0x14a   : > { %vm689_vm1 = vcmp.eq.f32.partialorder %v2451_v13, %v688_v28  ;;  %v739_v13 = vand.u32 65535, %v2472_v39  ;;  %v694_v61 = vcvt.f32.s32 %v688_v28 }
 0x14b   : > { %v690_v32 = vsel %vm689_vm1, %v685_v29, inf }
 0x14c   : > { %691 = vmin.xlane.f32.xlu0 %v690_v32  ;;  %v741_v42 = vcvt.s32.f32 %v739_v13  ;;  %v695_v4 = vshll.u32 %v694_v61, 16 }
 0x14e   : > { %v716_v34 = vpop.xlane.xlu0 %715 }
 0x14f   : > { %vm717_vm2 = vcmp.eq.f32.partialorder %v2463_v25, %v716_v34  ;;  %v753_v25 = vand.u32 65535, %v2491_v23  ;;  %v722_v7 = vcvt.f32.s32 %v716_v34 }
 0x150   : > { %v718_v36 = vsel %vm717_vm2, %v713_v35, inf }
 0x151   : > { %719 = vmin.xlane.f32.xlu0 %v718_v36  ;;  %v730_v58 = vpop.xlane.xlu1 %729  ;;  %v755_v46 = vcvt.s32.f32 %v753_v25 }
 0x152   : > { %vm731_vm3 = vcmp.eq.f32.partialorder %v2468_v31, %v730_v58  ;;  %v781_v31 = vand.u32 65535, %v2488_v22  ;;  %v736_v9 = vcvt.f32.s32 %v730_v58 }
 0x153   : > { %v732_v40 = vsel %vm731_vm3, %v727_v38, inf }
 0x154   : > { %733 = vmin.xlane.f32.xlu1 %v732_v40  ;;  %v783_v52 = vcvt.s32.f32 %v781_v31  ;;  %v737_v26 = vshll.u32 %v736_v9, 16 }
 0x15d   : > { %v2508_v41 = vpop.xlane.xlu0 %743 }
 0x15e   : > { %vm745_vm4 = vcmp.eq.f32.partialorder %v2480_v48, %v2508_v41  ;;  %v769_v48 = vcvt.s32.f32 %v767_v47 }
 0x15f   : > { %v746_v43 = vsel %vm745_vm4, %v741_v42, inf }
 0x160   : > { %747 = vmin.xlane.f32.xlu0 %v746_v43 }
 0x16e   : > { %v2513_v44 = vpop.xlane.xlu1 %757 }
 0x16f   : > { %vm759_vm5 = vcmp.eq.f32.partialorder %v756_v15, %v2513_v44  ;;  %v723_v15 = vshll.u32 %v722_v7, 16 }
 0x170   : > { %v760_v49 = vsel %vm759_vm5, %v755_v46, inf }
 0x171   : > { %761 = vmin.xlane.f32.xlu1 %v760_v49 }
 0x172   : > { %v2518_v50 = vpop.xlane.xlu0 %771  ;;  %v2520_v51 = vpop.xlane.xlu1 %785 }
 0x173   : > { %vm773_vm6 = vcmp.eq.f32.partialorder %v770_v18, %v2518_v50  ;;  %vm787_vm7 = vcmp.eq.f32.partialorder %v784_v17, %v2520_v51 }
 0x174   : > { %v774_v53 = vsel %vm773_vm6, %v769_v48, inf  ;;  %v788_v54 = vsel %vm787_vm7, %v783_v52, inf }
 0x175   : > { %775 = vmin.xlane.f32.xlu0 %v774_v53  ;;  %789 = vmin.xlane.f32.xlu1 %v788_v54 }
 0x1d1   : > { %v706_v56 = vpop.xlane.xlu1 %705 }
 0x1d2   : > { %v707_v59 = vcvt.f32.s32 %v706_v56 }
 0x1d4   : > { %v710_v60 = vadd.s32 %v709_v57, %v707_v59  ;;  %v778_v59 = vcvt.f32.s32 %v2518_v50 }
 0x1d6   : > { %vm796_vm8 = vcmp.eq.s32.totalorder %v2435_v45, %v710_v60  ;;  %v804_v62 = vand.u32 4294967168, %v710_v60  ;;  %v792_v60 = vcvt.f32.s32 %v2520_v51 }
 0x1d7   : > { %v2528_v63 = vsel %vm796_vm8, 2139095040, %v2435_v45  ;;  %v750_v45 = vcvt.f32.s32 %v2508_v41 }
 0x1d8   : > { %v820_v0 = vadd.f32 1e-08, %v804_v62  ;;  %v874_v1 = vshra.s32 %v2528_v63, 16 }
 0x1d9   : > { %v692_v2 = vpop.xlane.xlu0 %691  ;;  %v751_v47 = vshll.u32 %v750_v45, 16 }
 0x1da   : > { %2138 = vrcp.f32 %v820_v0  ;;  %v693_v5 = vcvt.f32.s32 %v692_v2  ;;  %v2531_v6 = vcvt.s32.f32 %v874_v1 }
 0x1dc   : > { %v696_v8 = vadd.s32 %v695_v4, %v693_v5  ;;  %877 = vmin.xlane.f32.xlu1 %v2531_v6  ;;  %v779_v4 = vshll.u32 %v778_v59, 16  ;;  %v793_v5 = vshll.u32 %v792_v60, 16 }
 0x1de   : > { %vm795_vm9 = vcmp.eq.s32.totalorder %v2447_v3, %v696_v8  ;;  %v803_v10 = vand.u32 4294967168, %v696_v8  ;;  %v720_v11 = vpop.xlane.xlu0 %719 }
 0x1df   : > { %v2538_v16 = vsel %vm795_vm9, 2139095040, %v2447_v3  ;;  %v721_v19 = vcvt.f32.s32 %v720_v11 }
 0x1e0   : > { %v819_v17 = vadd.f32 1e-08, %v803_v10  ;;  %v860_v18 = vshra.s32 %v2538_v16, 16 }
 0x1e1   : > { %v724_v21 = vadd.s32 %v723_v15, %v721_v19  ;;  %v734_v24 = vpop.xlane.xlu1 %733 }
 0x1e2   : > { %2140 = vrcp.f32 %v819_v17  ;;  %v735_v27 = vcvt.f32.s32 %v734_v24  ;;  %v2541_v37 = vcvt.s32.f32 %v860_v18 }
 0x1e3   : > { %vm797_vm10 = vcmp.eq.s32.totalorder %v2454_v14, %v724_v21  ;;  %v805_v28 = vand.u32 4294967168, %v724_v21 }
 0x1e4   : > { %v2139_v29 = vpop.eup %2138  ;;  %v2547_v30 = vsel %vm797_vm10, 2139095040, %v2454_v14  ;;  %v738_v32 = vadd.s32 %v737_v26, %v735_v27  ;;  %863 = vmin.xlane.f32.xlu0 %v2541_v37  ;;  %v764_v14 = vcvt.f32.s32 %v2513_v44 }
 0x1e5   : > { %v821_v33 = vadd.f32 1e-08, %v805_v28  ;;  %v888_v34 = vshra.s32 %v2547_v30, 16  ;;  %v2553_v35 = vsel %vm796_vm8, %v2139_v29, 0.0 }
 0x1e6   : > { %vm798_vm11 = vcmp.eq.s32.totalorder %v2460_v20, %v738_v32  ;;  %v806_v36 = vand.u32 4294967168, %v738_v32  ;;  %v765_v62 = vshll.u32 %v764_v14, 16 }
 0x1e7   : > { %2142 = vrcp.f32 %v821_v33  ;;  %v2559_v58 = vsel %vm798_vm11, 2139095040, %v2460_v20  ;;  %v2561_v38 = vcvt.s32.f32 %v888_v34 }
 0x1e8   : > { %v822_v40 = vadd.f32 1e-08, %v806_v36  ;;  %v902_v13 = vshra.s32 %v2559_v58, 16 }
 0x1e9   : > { %891 = vmin.xlane.f32.xlu0 %v2561_v38 }
 0x1ea   : > { %2144 = vrcp.f32 %v822_v40  ;;  %v2566_v42 = vcvt.s32.f32 %v902_v13 }
 0x1ec   : > { %v2141_v43 = vpop.eup %2140  ;;  %905 = vmin.xlane.f32.xlu1 %v2566_v42 }
 0x1ed   : > { %v748_v25 = vpop.xlane.xlu0 %747  ;;  %v2571_v46 = vsel %vm795_vm9, %v2141_v43, 0.0 }
 0x1ee   : > { %v749_v31 = vcvt.f32.s32 %v748_v25  ;;  %v873_v25 = vand.u32 65535, %v2528_v63 }
 0x1f0   : > { %v752_v49 = vadd.s32 %v751_v47, %v749_v31  ;;  %v875_v31 = vcvt.s32.f32 %v873_v25 }
 0x1f1   : > { %v2143_v48 = vpop.eup %2142 }
 0x1f2   : > { %vm799_vm12 = vcmp.eq.s32.totalorder %v2472_v39, %v752_v49  ;;  %v807_v52 = vand.u32 4294967168, %v752_v49  ;;  %v2576_v41 = vsel %vm797_vm10, %v2143_v48, 0.0 }
 0x1f3   : > { %v2581_v53 = vsel %vm799_vm12, 2139095040, %v2472_v39 }
 0x1f4   : > { %v2145_v54 = vpop.eup %2144  ;;  %v823_v3 = vadd.f32 1e-08, %v807_v52  ;;  %v916_v55 = vshra.s32 %v2581_v53, 16 }
 0x1f5   : > { %v2586_v56 = vsel %vm798_vm11, %v2145_v54, 0.0 }
 0x1f6   : > { %2146 = vrcp.f32 %v823_v3  ;;  %v2588_v57 = vcvt.s32.f32 %v916_v55 }
 0x1f8   : > { %919 = vmin.xlane.f32.xlu0 %v2588_v57 }
 0x1fe   : > { %v762_v61 = vpop.xlane.xlu1 %761 }
 0x1ff   : > { %v763_v0 = vcvt.f32.s32 %v762_v61 }
 0x200   : > { %v2147_v1 = vpop.eup %2146 }
 0x201   : > { %v766_v2 = vadd.s32 %v765_v62, %v763_v0  ;;  %v2596_v20 = vsel %vm799_vm12, %v2147_v1, 0.0 }
 0x202   : > { %v776_v7 = vpop.xlane.xlu0 %775  ;;  %v790_v8 = vpop.xlane.xlu1 %789 }
 0x203   : > { %vm800_vm13 = vcmp.eq.s32.totalorder %v2491_v23, %v766_v2  ;;  %v808_v44 = vand.u32 4294967168, %v766_v2  ;;  %v777_v9 = vcvt.f32.s32 %v776_v7  ;;  %v791_v50 = vcvt.f32.s32 %v790_v8 }
 0x204   : > { %v2602_v51 = vsel %vm800_vm13, 2139095040, %v2491_v23  ;;  %v859_v23 = vand.u32 65535, %v2538_v16 }
 0x205   : > { %v824_v10 = vadd.f32 1e-08, %v808_v44  ;;  %v780_v11 = vadd.s32 %v779_v4, %v777_v9  ;;  %v794_v15 = vadd.s32 %v793_v5, %v791_v50  ;;  %v930_v39 = vshra.s32 %v2602_v51, 16 }
 0x206   : > { %v861_v52 = vcvt.s32.f32 %v859_v23 }
 0x207   : > { %2148 = vrcp.f32 %v824_v10  ;;  %vm801_vm14 = vcmp.eq.s32.totalorder %v2495_v12, %v780_v11  ;;  %v809_v19 = vand.u32 4294967168, %v780_v11  ;;  %vm802_vm15 = vcmp.eq.s32.totalorder %v2488_v22, %v794_v15 }
 0x208   : > { %v2610_v17 = vsel %vm801_vm14, 2139095040, %v2495_v12  ;;  %v810_v18 = vand.u32 4294967168, %v794_v15  ;;  %v2615_v21 = vsel %vm802_vm15, 2139095040, %v2488_v22  ;;  %v932_v24 = vcvt.s32.f32 %v930_v39 }
 0x209   : > { %v825_v26 = vadd.f32 1e-08, %v809_v19  ;;  %v944_v27 = vshra.s32 %v2610_v17, 16  ;;  %v958_v28 = vshra.s32 %v2615_v21, 16  ;;  %v887_v12 = vand.u32 65535, %v2547_v30 }
 0x20a   : > { %v826_v29 = vadd.f32 1e-08, %v810_v18  ;;  %933 = vmin.xlane.f32.xlu1 %v932_v24  ;;  %v901_v22 = vand.u32 65535, %v2559_v58  ;;  %v943_v1 = vand.u32 65535, %v2610_v17 }
 0x20b   : > { %2150 = vrcp.f32 %v825_v26  ;;  %v946_v32 = vcvt.s32.f32 %v944_v27  ;;  %v960_v33 = vcvt.s32.f32 %v958_v28  ;;  %v889_v55 = vcvt.s32.f32 %v887_v12 }
 0x20c   : > { %2152 = vrcp.f32 %v826_v29  ;;  %v903_v59 = vcvt.s32.f32 %v901_v22  ;;  %v945_v8 = vcvt.s32.f32 %v943_v1 }
 0x20d   : > { %947 = vmin.xlane.f32.xlu0 %v946_v32 }
 0x20e   : > { %961 = vmin.xlane.f32.xlu1 %v960_v33 }
 0x211   : > { %v2149_v34 = vpop.eup %2148 }
 0x212   : > { %v2621_v36 = vsel %vm800_vm13, %v2149_v34, 0.0 }
 0x215   : > { %v2151_v40 = vpop.eup %2150 }
 0x216   : > { %v2153_v13 = vpop.eup %2152  ;;  %v2625_v45 = vsel %vm801_vm14, %v2151_v40, 0.0 }
 0x217   : > { %v2629_v43 = vsel %vm802_vm15, %v2153_v13, 0.0 }
 0x269   : > { %v878_v47 = vpop.xlane.xlu1 %877 }
 0x26a   : > { %vm879_vm0 = vcmp.eq.f32.partialorder %v2531_v6, %v878_v47  ;;  %v884_v10 = vcvt.f32.s32 %v878_v47 }
 0x26b   : > { %v880_v49 = vsel %vm879_vm0, %v875_v31, inf }
 0x26c   : > { %881 = vmin.xlane.f32.xlu1 %v880_v49  ;;  %v885_v15 = vshll.u32 %v884_v10, 16 }
 0x271   : > { %v864_v48 = vpop.xlane.xlu0 %863 }
 0x272   : > { %vm865_vm1 = vcmp.eq.f32.partialorder %v2541_v37, %v864_v48  ;;  %v915_v37 = vand.u32 65535, %v2581_v53  ;;  %v870_v18 = vcvt.f32.s32 %v864_v48 }
 0x273   : > { %v866_v54 = vsel %vm865_vm1, %v861_v52, inf }
 0x274   : > { %867 = vmin.xlane.f32.xlu0 %v866_v54  ;;  %v917_v62 = vcvt.s32.f32 %v915_v37 }
 0x276   : > { %v892_v3 = vpop.xlane.xlu0 %891 }
 0x277   : > { %vm893_vm2 = vcmp.eq.f32.partialorder %v2561_v38, %v892_v3  ;;  %v929_v38 = vand.u32 65535, %v2602_v51  ;;  %v898_v40 = vcvt.f32.s32 %v892_v3 }
 0x278   : > { %v894_v14 = vsel %vm893_vm2, %v889_v55, inf }
 0x279   : > { %895 = vmin.xlane.f32.xlu0 %v894_v14  ;;  %v906_v6 = vpop.xlane.xlu1 %905  ;;  %v931_v4 = vcvt.s32.f32 %v929_v38  ;;  %v899_v49 = vshll.u32 %v898_v40, 16 }
 0x27a   : > { %vm907_vm3 = vcmp.eq.f32.partialorder %v2566_v42, %v906_v6  ;;  %v957_v42 = vand.u32 65535, %v2615_v21  ;;  %v912_v25 = vcvt.f32.s32 %v906_v6 }
 0x27b   : > { %v908_v60 = vsel %vm907_vm3, %v903_v59, inf }
 0x27c   : > { %909 = vmin.xlane.f32.xlu1 %v908_v60  ;;  %v913_v3 = vshll.u32 %v912_v25, 16 }
 0x285   : > { %v2640_v61 = vpop.xlane.xlu0 %919 }
 0x286   : > { %vm921_vm4 = vcmp.eq.f32.partialorder %v2588_v57, %v2640_v61  ;;  %v959_v57 = vcvt.s32.f32 %v957_v42 }
 0x287   : > { %v922_v0 = vsel %vm921_vm4, %v917_v62, inf }
 0x288   : > { %923 = vmin.xlane.f32.xlu0 %v922_v0 }
 0x297   : > { %v2646_v2 = vpop.xlane.xlu1 %933 }
 0x298   : > { %vm935_vm5 = vcmp.eq.f32.partialorder %v932_v24, %v2646_v2  ;;  %v940_v40 = vcvt.f32.s32 %v2646_v2 }
 0x299   : > { %v936_v5 = vsel %vm935_vm5, %v931_v4, inf }
 0x29a   : > { %937 = vmin.xlane.f32.xlu1 %v936_v5  ;;  %v2650_v7 = vpop.xlane.xlu0 %947 }
 0x29b   : > { %v2652_v44 = vpop.xlane.xlu1 %961  ;;  %vm949_vm6 = vcmp.eq.f32.partialorder %v946_v32, %v2650_v7  ;;  %v871_v32 = vshll.u32 %v870_v18, 16 }
 0x29c   : > { %v950_v9 = vsel %vm949_vm6, %v945_v8, inf  ;;  %vm963_vm7 = vcmp.eq.f32.partialorder %v960_v33, %v2652_v44 }
 0x29d   : > { %951 = vmin.xlane.f32.xlu0 %v950_v9  ;;  %v964_v50 = vsel %vm963_vm7, %v959_v57, inf }
 0x29e   : > { %965 = vmin.xlane.f32.xlu1 %v964_v50 }
 0x2f9   : > { %v882_v11 = vpop.xlane.xlu1 %881 }
 0x2fa   : > { %v883_v39 = vcvt.f32.s32 %v882_v11 }
 0x2fc   : > { %v886_v19 = vadd.s32 %v885_v15, %v883_v39 }
 0x2fe   : > { %vm972_vm8 = vcmp.eq.s32.totalorder %v2528_v63, %v886_v19  ;;  %v980_v24 = vand.u32 4294967168, %v886_v19 }
 0x2ff   : > { %v2660_v26 = vsel %vm972_vm8, 2139095040, %v2528_v63  ;;  %v926_v63 = vcvt.f32.s32 %v2640_v61 }
 0x300   : > { %v996_v27 = vadd.f32 1e-08, %v980_v24  ;;  %v1050_v28 = vshra.s32 %v2660_v26, 16 }
 0x301   : > { %v868_v29 = vpop.xlane.xlu0 %867  ;;  %v927_v11 = vshll.u32 %v926_v63, 16 }
 0x302   : > { %2154 = vrcp.f32 %v996_v27  ;;  %v869_v33 = vcvt.f32.s32 %v868_v29  ;;  %v2663_v34 = vcvt.s32.f32 %v1050_v28 }
 0x304   : > { %v872_v13 = vadd.s32 %v871_v32, %v869_v33  ;;  %1053 = vmin.xlane.f32.xlu1 %v2663_v34 }
 0x306   : > { %vm971_vm9 = vcmp.eq.s32.totalorder %v2538_v16, %v872_v13  ;;  %v979_v47 = vand.u32 4294967168, %v872_v13  ;;  %v896_v31 = vpop.xlane.xlu0 %895 }
 0x307   : > { %v897_v23 = vcvt.f32.s32 %v896_v31  ;;  %v2670_v48 = vsel %vm971_vm9, 2139095040, %v2538_v16  ;;  %v968_v31 = vcvt.f32.s32 %v2652_v44 }
 0x308   : > { %v995_v52 = vadd.f32 1e-08, %v979_v47  ;;  %v1036_v12 = vshra.s32 %v2670_v48, 16  ;;  %v941_v47 = vshll.u32 %v940_v40, 16 }
 0x309   : > { %v900_v54 = vadd.s32 %v899_v49, %v897_v23  ;;  %v910_v22 = vpop.xlane.xlu1 %909  ;;  %v969_v2 = vshll.u32 %v968_v31, 16 }
 0x30a   : > { %2156 = vrcp.f32 %v995_v52  ;;  %v911_v55 = vcvt.f32.s32 %v910_v22  ;;  %v2673_v14 = vcvt.s32.f32 %v1036_v12 }
 0x30b   : > { %vm973_vm10 = vcmp.eq.s32.totalorder %v2547_v30, %v900_v54  ;;  %v981_v6 = vand.u32 4294967168, %v900_v54 }
 0x30c   : > { %v2155_v59 = vpop.eup %2154  ;;  %v914_v60 = vadd.s32 %v913_v3, %v911_v55  ;;  %1039 = vmin.xlane.f32.xlu0 %v2673_v14  ;;  %v2680_v37 = vsel %vm973_vm10, 2139095040, %v2547_v30 }
 0x30d   : > { %v997_v62 = vadd.f32 1e-08, %v981_v6  ;;  %v1064_v0 = vshra.s32 %v2680_v37, 16  ;;  %v1012_v38 = vsel %vm972_vm8, %v2155_v59, 0.0 }
 0x30e   : > { %vm974_vm11 = vcmp.eq.s32.totalorder %v2559_v58, %v914_v60  ;;  %v982_v1 = vand.u32 4294967168, %v914_v60  ;;  %v2687_v4 = vadd.f32 %v1012_v38, %v2553_v35 }
 0x30f   : > { %2158 = vrcp.f32 %v997_v62  ;;  %v2689_v42 = vcvt.s32.f32 %v1064_v0  ;;  %v2694_v5 = vsel %vm974_vm11, 2139095040, %v2559_v58 }
 0x310   : > { %v998_v8 = vadd.f32 1e-08, %v982_v1  ;;  %v1078_v57 = vshra.s32 %v2694_v5, 16 }
 0x311   : > { %1067 = vmin.xlane.f32.xlu0 %v2689_v42 }
 0x312   : > { %2160 = vrcp.f32 %v998_v8  ;;  %v2699_v9 = vcvt.s32.f32 %v1078_v57 }
 0x314   : > { %v2157_v35 = vpop.eup %2156  ;;  %1081 = vmin.xlane.f32.xlu1 %v2699_v9 }
 0x315   : > { %v924_v50 = vpop.xlane.xlu0 %923  ;;  %v1011_v10 = vsel %vm971_vm9, %v2157_v35, 0.0 }
 0x316   : > { %v925_v15 = vcvt.f32.s32 %v924_v50  ;;  %v2705_v39 = vadd.f32 %v1011_v10, %v2571_v46 }
 0x318   : > { %v928_v19 = vadd.s32 %v927_v11, %v925_v15 }
 0x319   : > { %v2159_v18 = vpop.eup %2158 }
 0x31a   : > { %vm975_vm12 = vcmp.eq.s32.totalorder %v2581_v53, %v928_v19  ;;  %v983_v61 = vand.u32 4294967168, %v928_v19  ;;  %v1013_v24 = vsel %vm973_vm10, %v2159_v18, 0.0 }
 0x31b   : > { %v2713_v27 = vsel %vm975_vm12, 2139095040, %v2581_v53  ;;  %v2716_v16 = vadd.f32 %v1013_v24, %v2576_v41  ;;  %v954_v41 = vcvt.f32.s32 %v2650_v7 }
 0x31c   : > { %v2161_v28 = vpop.eup %2160  ;;  %v999_v29 = vadd.f32 1e-08, %v983_v61  ;;  %v1092_v46 = vshra.s32 %v2713_v27, 16 }
 0x31d   : > { %v1014_v32 = vsel %vm974_vm11, %v2161_v28, 0.0  ;;  %v955_v12 = vshll.u32 %v954_v41, 16  ;;  %v1077_v41 = vand.u32 65535, %v2694_v5 }
 0x31e   : > { %2162 = vrcp.f32 %v999_v29  ;;  %v2721_v33 = vcvt.s32.f32 %v1092_v46  ;;  %v2724_v30 = vadd.f32 %v1014_v32, %v2586_v56 }
 0x31f   : > { %v1079_v31 = vcvt.s32.f32 %v1077_v41 }
 0x320   : > { %1095 = vmin.xlane.f32.xlu0 %v2721_v33 }
 0x327   : > { %v938_v13 = vpop.xlane.xlu1 %937 }
 0x328   : > { %v2163_v25 = vpop.eup %2162  ;;  %v939_v49 = vcvt.f32.s32 %v938_v13 }
 0x329   : > { %v1015_v58 = vsel %vm975_vm12, %v2163_v25, 0.0 }
 0x32a   : > { %v942_v23 = vadd.s32 %v941_v47, %v939_v49  ;;  %v952_v52 = vpop.xlane.xlu0 %951  ;;  %v2733_v56 = vadd.f32 %v1015_v58, %v2596_v20  ;;  %v1091_v49 = vand.u32 65535, %v2713_v27  ;;  %v2115_v58 = vld [vmem:[%s2408_s15] sm:$0xff]  }
 0x32b   : > { %v953_v54 = vcvt.f32.s32 %v952_v52  ;;  %v966_v22 = vpop.xlane.xlu1 %965  ;;  %1962 = vmatprep.subr.bf16.mxu0 %v2115_v58  ;;  %v2116_v52 = vld [vmem:[%s2408_s15 + $0x8] sm:$0xff]  }
 0x32c   : > { %vm976_vm13 = vcmp.eq.s32.totalorder %v2602_v51, %v942_v23  ;;  %v984_v7 = vand.u32 4294967168, %v942_v23  ;;  %v967_v3 = vcvt.f32.s32 %v966_v22  ;;  %1963 = vmatpush3.bf16.msra.mxu0 %v2115_v58  ;;  %v2119_v22 = vld [vmem:[%s2408_s15 + $0x20] sm:$0xff]  }
 0x32d   : > { %v956_v55 = vadd.s32 %v955_v12, %v953_v54  ;;  %v2739_v44 = vsel %vm976_vm13, 2139095040, %v2602_v51  ;;  %v1049_v51 = vand.u32 65535, %v2660_v26  ;;  %1964 = vmatprep.subr.bf16.mxu0 %v2116_v52  ;;  %v2118_v54 = vld [vmem:[%s2408_s15 + $0x18] sm:$0xff]  }
 0x32e   : > { %v1000_v53 = vadd.f32 1e-08, %v984_v7  ;;  %v970_v6 = vadd.s32 %v969_v2, %v967_v3  ;;  %v1106_v59 = vshra.s32 %v2739_v44, 16  ;;  %v1105_v2 = vand.u32 65535, %v2739_v44  ;;  %v2120_v7 = vld [vmem:[%s2408_s15 + $0x28] sm:$0xff]  }
 0x32f   : > { %vm977_vm14 = vcmp.eq.s32.totalorder %v2610_v17, %v956_v55  ;;  %v985_v20 = vand.u32 4294967168, %v956_v55 }
 0x330   : > { %2164 = vrcp.f32 %v1000_v53  ;;  %vm978_vm15 = vcmp.eq.s32.totalorder %v2615_v21, %v970_v6  ;;  %v986_v60 = vand.u32 4294967168, %v970_v6  ;;  %v2744_v62 = vcvt.s32.f32 %v1106_v59  ;;  %1965 = vmatpush3.bf16.msra.mxu0 %v2116_v52  ;;  %v2121_v59 = vld [vmem:[%s2408_s15 + $0x30] sm:$0xff]  }
 0x331   : > { %v1001_v0 = vadd.f32 1e-08, %v985_v20  ;;  %v2749_v38 = vsel %vm977_vm14, 2139095040, %v2610_v17  ;;  %v2754_v1 = vsel %vm978_vm15, 2139095040, %v2615_v21  ;;  %v1035_v17 = vand.u32 65535, %v2670_v48 }
 0x332   : > { %v1002_v8 = vadd.f32 1e-08, %v986_v60  ;;  %1109 = vmin.xlane.f32.xlu1 %v2744_v62  ;;  %v1120_v57 = vshra.s32 %v2749_v38, 16  ;;  %v1134_v63 = vshra.s32 %v2754_v1, 16  ;;  %v1063_v21 = vand.u32 65535, %v2680_v37 }
 0x333   : > { %2166 = vrcp.f32 %v1001_v0  ;;  %v1037_v40 = vcvt.s32.f32 %v1035_v17  ;;  %v1107_v3 = vcvt.s32.f32 %v1105_v2  ;;  %v1119_v55 = vand.u32 65535, %v2749_v38 }
 0x334   : > { %2168 = vrcp.f32 %v1002_v8  ;;  %v2759_v35 = vcvt.s32.f32 %v1120_v57  ;;  %v2761_v50 = vcvt.s32.f32 %v1134_v63  ;;  %v1133_v53 = vand.u32 65535, %v2754_v1  ;;  %v2122_v63 = vld [vmem:[%s2408_s15 + $0x38] sm:$0xff]  }
 0x335   : > { %v1121_v0 = vcvt.s32.f32 %v1119_v55 }
 0x336   : > { %1123 = vmin.xlane.f32.xlu0 %v2759_v35  ;;  %1137 = vmin.xlane.f32.xlu1 %v2761_v50  ;;  %v1135_v8 = vcvt.s32.f32 %v1133_v53 }
 0x33a   : > { %v2165_v10 = vpop.eup %2164 }
 0x33b   : > { %v1016_v11 = vsel %vm976_vm13, %v2165_v10, 0.0 }
 0x33c   : > { %v2768_v15 = vadd.f32 %v1016_v11, %v2621_v36  ;;  %v1051_v36 = vcvt.s32.f32 %v1049_v51 }
 0x33d   : > { %v2167_v19 = vpop.eup %2166 }
 0x33e   : > { %v2169_v18 = vpop.eup %2168  ;;  %v1017_v61 = vsel %vm977_vm14, %v2167_v19, 0.0 }
 0x33f   : > { %v2773_v24 = vadd.f32 %v1017_v61, %v2625_v45  ;;  %v1018_v28 = vsel %vm978_vm15, %v2169_v18, 0.0 }
 0x340   : > { %v2778_v29 = vadd.f32 %v1018_v28, %v2629_v43 }
 0x391   : > { %v2781_v46 = vpop.xlane.xlu1 %1053 }
 0x392   : > { %vm1055_vm0 = vcmp.eq.f32.partialorder %v2663_v34, %v2781_v46  ;;  %v1065_v34 = vcvt.s32.f32 %v1063_v21  ;;  %v1060_v10 = vcvt.f32.s32 %v2781_v46 }
 0x393   : > { %v1056_v32 = vsel %vm1055_vm0, %v1051_v36, inf  ;;  %vm1389_vm0 = vcmask 130048  }
 0x394   : > { %1057 = vmin.xlane.f32.xlu1 %v1056_v32  ;;  %v1061_v19 = vshll.u32 %v1060_v10, 16 }
 0x399   : > { %v2786_v45 = vpop.xlane.xlu0 %1039 }
 0x39a   : > { %vm1041_vm1 = vcmp.eq.f32.partialorder %v2673_v14, %v2786_v45 }
 0x39b   : > { %v1042_v43 = vsel %vm1041_vm1, %v1037_v40, inf  ;;  %vm1479_vm1 = vcmask 261120  }
 0x39c   : > { %1043 = vmin.xlane.f32.xlu0 %v1042_v43 }
 0x39e   : > { %v2792_v13 = vpop.xlane.xlu0 %1067 }
 0x39f   : > { %vm1069_vm2 = vcmp.eq.f32.partialorder %v2689_v42, %v2792_v13  ;;  %v1093_v42 = vcvt.s32.f32 %v1091_v49  ;;  %v1074_v17 = vcvt.f32.s32 %v2792_v13 }
 0x3a0   : > { %v1070_v25 = vsel %vm1069_vm2, %v1065_v34, inf }
 0x3a1   : > { %1071 = vmin.xlane.f32.xlu0 %v1070_v25  ;;  %v2796_v47 = vpop.xlane.xlu1 %1081  ;;  %v1075_v46 = vshll.u32 %v1074_v17, 16 }
 0x3a2   : > { %vm1083_vm3 = vcmp.eq.f32.partialorder %v2699_v9, %v2796_v47  ;;  %v2117_v9 = vld [vmem:[%s2408_s15 + $0x10] sm:$0xff]   ;;  %v1088_v21 = vcvt.f32.s32 %v2796_v47  ;;  %s427_s15 = scalar_lea.vmem %s2960_s2, %s1924_s27 }
 0x3a3   : > { %v1084_v14 = vsel %vm1083_vm3, %v1079_v31, inf  ;;  %1966 = vmatprep.subr.bf16.mxu0 %v2117_v9 }
 0x3a4   : > { %1085 = vmin.xlane.f32.xlu1 %v1084_v14  ;;  %1967 = vmatpush3.bf16.msra.mxu0 %v2117_v9  ;;  %v1089_v49 = vshll.u32 %v1088_v21, 16 }
 0x3a5   : > { %1968 = vmatprep.subr.bf16.mxu0 %v2118_v54 }
 0x3a8   : > { %1969 = vmatpush3.bf16.msra.mxu0 %v2118_v54 }
 0x3a9   : > { %1970 = vmatprep.subr.bf16.mxu0 %v2119_v22 }
 0x3ac   : > { %1971 = vmatpush3.bf16.msra.mxu0 %v2119_v22 }
 0x3ad   : > { %v2802_v23 = vpop.xlane.xlu0 %1095  ;;  %1972 = vmatprep.subr.bf16.mxu0 %v2120_v7 }
 0x3ae   : > { %vm1097_vm4 = vcmp.eq.f32.partialorder %v2721_v33, %v2802_v23  ;;  %v1102_v22 = vcvt.f32.s32 %v2802_v23 }
 0x3af   : > { %v1098_v12 = vsel %vm1097_vm4, %v1093_v42, inf }
 0x3b0   : > { %1099 = vmin.xlane.f32.xlu0 %v1098_v12  ;;  %1973 = vmatpush3.bf16.msra.mxu0 %v2120_v7  ;;  %v1103_v55 = vshll.u32 %v1102_v22, 16 }
 0x3b1   : > { %1974 = vmatprep.subr.bf16.mxu0 %v2121_v59 }
 0x3b4   : > { %1975 = vmatpush3.bf16.msra.mxu0 %v2121_v59 }
 0x3b5   : > { %1976 = vmatprep.subr.bf16.mxu0 %v2122_v63 }
 0x3b8   : > { %1977 = vmatpush3.bf16.msra.mxu0 %v2122_v63 }
 0x3bf   : > { %v2812_v33 = vpop.xlane.xlu1 %1109 }
 0x3c0   : > { %vm1111_vm5 = vcmp.eq.f32.partialorder %v2744_v62, %v2812_v33  ;;  %v1116_v10 = vcvt.f32.s32 %v2812_v33 }
 0x3c1   : > { %v1112_v6 = vsel %vm1111_vm5, %v1107_v3, inf }
 0x3c2   : > { %1113 = vmin.xlane.f32.xlu1 %v1112_v6 }
 0x3c3   : > { %v2819_v20 = vpop.xlane.xlu0 %1123  ;;  %v2821_v60 = vpop.xlane.xlu1 %1137 }
 0x3c4   : > { %vm1125_vm6 = vcmp.eq.f32.partialorder %v2759_v35, %v2819_v20  ;;  %vm1139_vm7 = vcmp.eq.f32.partialorder %v2761_v50, %v2821_v60  ;;  %v1046_v35 = vcvt.f32.s32 %v2786_v45 }
 0x3c5   : > { %v1126_v62 = vsel %vm1125_vm6, %v1121_v0, inf  ;;  %v1140_v57 = vsel %vm1139_vm7, %v1135_v8, inf }
 0x3c6   : > { %1127 = vmin.xlane.f32.xlu0 %v1126_v62  ;;  %1141 = vmin.xlane.f32.xlu1 %v1140_v57  ;;  %v1047_v36 = vshll.u32 %v1046_v35, 16 }
 0x421   : > { %v1058_v11 = vpop.xlane.xlu1 %1057 }
 0x422   : > { %v1059_v18 = vcvt.f32.s32 %v1058_v11 }
 0x424   : > { %v1062_v61 = vadd.s32 %v1061_v19, %v1059_v18  ;;  %v1117_v18 = vshll.u32 %v1116_v10, 16 }
 0x426   : > { %v1156_v28 = vand.u32 4294967168, %v1062_v61  ;;  %vm1148_vm8 = vcmp.eq.s32.totalorder %v2660_v26, %v1062_v61 }
 0x428   : > { %v1172_v51 = vadd.f32 1e-08, %v1156_v28 }
 0x429   : > { %v1044_v50 = vpop.xlane.xlu0 %1043 }
 0x42a   : > { %2170 = vrcp.f32 %v1172_v51  ;;  %v1045_v32 = vcvt.f32.s32 %v1044_v50 }
 0x42c   : > { %v1048_v40 = vadd.s32 %v1047_v36, %v1045_v32 }
 0x42e   : > { %v1155_v43 = vand.u32 4294967168, %v1048_v40  ;;  %v1072_v41 = vpop.xlane.xlu0 %1071  ;;  %vm1147_vm9 = vcmp.eq.s32.totalorder %v2670_v48, %v1048_v40 }
 0x42f   : > { %v1073_v34 = vcvt.f32.s32 %v1072_v41 }
 0x430   : > { %v1171_v25 = vadd.f32 1e-08, %v1155_v43 }
 0x431   : > { %v1076_v31 = vadd.s32 %v1075_v46, %v1073_v34  ;;  %v1086_v14 = vpop.xlane.xlu1 %1085 }
 0x432   : > { %2172 = vrcp.f32 %v1171_v25  ;;  %v1087_v45 = vcvt.f32.s32 %v1086_v14 }
 0x433   : > { %v1157_v58 = vand.u32 4294967168, %v1076_v31  ;;  %vm1149_vm10 = vcmp.eq.s32.totalorder %v2680_v37, %v1076_v31  ;;  %v1130_v37 = vcvt.f32.s32 %v2819_v20 }
 0x434   : > { %v2171_v42 = vpop.eup %2170  ;;  %v1090_v52 = vadd.s32 %v1089_v49, %v1087_v45 }
 0x435   : > { %v1173_v12 = vadd.f32 1e-08, %v1157_v58  ;;  %v1188_v13 = vsel %vm1148_vm8, %v2171_v42, 0.0 }
 0x436   : > { %v1158_v9 = vand.u32 4294967168, %v1090_v52  ;;  %v1196_v47 = vadd.f32 %v1188_v13, %v2687_v4  ;;  %vm1150_vm11 = vcmp.eq.s32.totalorder %v2694_v5, %v1090_v52  ;;  %v2128_v52 = vld [vmem:[%s427_s15] sm:$0xff]  }
 0x437   : > { %2174 = vrcp.f32 %v1173_v12  ;;  %v2129_v12 = vld [vmem:[%s427_s15 + $0x8] sm:$0xff]   ;;  %v2130_v13 = vld [vmem:[%s2965_s7] sm:$0xff]  }
 0x438   : > { %v1174_v54 = vadd.f32 1e-08, %v1158_v9  ;;  %1205 = vadd.xlane.f32.xlu1 %v1196_v47 }
 0x43a   : > { %2176 = vrcp.f32 %v1174_v54 }
 0x43c   : > { %v2173_v2 = vpop.eup %2172 }
 0x43d   : > { %v1100_v7 = vpop.xlane.xlu0 %1099  ;;  %v1187_v3 = vsel %vm1147_vm9, %v2173_v2, 0.0 }
 0x43e   : > { %v1101_v53 = vcvt.f32.s32 %v1100_v7  ;;  %v1195_v26 = vadd.f32 %v1187_v3, %v2705_v39 }
 0x440   : > { %v1104_v6 = vadd.s32 %v1103_v55, %v1101_v53  ;;  %1203 = vadd.xlane.f32.xlu0 %v1195_v26  ;;  %v1227_v59 = vpack.c.bf16 %v1196_v47, %v1195_v26 }
 0x441   : > { %v2175_v0 = vpop.eup %2174 }
 0x442   : > { %v1159_v4 = vand.u32 4294967168, %v1104_v6  ;;  %1978 = vmatprep.mubr.bf16.mxu0 %v1227_v59  ;;  %v1189_v8 = vsel %vm1149_vm10, %v2175_v0, 0.0  ;;  %vm1151_vm12 = vcmp.eq.s32.totalorder %v2713_v27, %v1104_v6 }
 0x443   : > { %v1197_v23 = vadd.f32 %v1189_v8, %v2716_v16  ;;  %v1144_v16 = vcvt.f32.s32 %v2821_v60 }
 0x444   : > { %v2177_v62 = vpop.eup %2176  ;;  %v1175_v57 = vadd.f32 1e-08, %v1159_v4 }
 0x445   : > { %1207 = vadd.xlane.f32.xlu0 %v1197_v23  ;;  %v1190_v48 = vsel %vm1150_vm11, %v2177_v62, 0.0  ;;  %v1145_v36 = vshll.u32 %v1144_v16, 16 }
 0x446   : > { %2178 = vrcp.f32 %v1175_v57  ;;  %v1198_v39 = vadd.f32 %v1190_v48, %v2724_v30  ;;  %v1131_v30 = vshll.u32 %v1130_v37, 16  ;;  %v2131_v48 = vld [vmem:[%s2965_s7 + $0x8] sm:$0xff]  }
 0x448   : > { %1209 = vadd.xlane.f32.xlu1 %v1198_v39  ;;  %v1228_v63 = vpack.c.bf16 %v1198_v39, %v1197_v23  ;;  %v2132_v39 = vld [vmem:[%s2965_s7 + $0x10] sm:$0xff]  }
 0x44a   : > { %1979 = vmatmul.mubr.bf16.vlgmr.msra.gmra.mrb[0].mxu0 %v1228_v63  ;;  %v2133_v63 = vld [vmem:[%s2965_s7 + $0x18] sm:$0xff]  }
 0x44f   : > { %v1114_v11 = vpop.xlane.xlu1 %1113 }
 0x450   : > { %v2179_v19 = vpop.eup %2178  ;;  %v1115_v61 = vcvt.f32.s32 %v1114_v11  ;;  %v2134_v11 = vld [vmem:[%s2965_s7 + $0x20] sm:$0xff]  }
 0x451   : > { %v1191_v5 = vsel %vm1151_vm12, %v2179_v19, 0.0 }
 0x452   : > { %v1118_v35 = vadd.s32 %v1117_v18, %v1115_v61  ;;  %v1199_v28 = vadd.f32 %v1191_v5, %v2733_v56 }
 0x453   : > { %v1128_v51 = vpop.xlane.xlu0 %1127  ;;  %v1142_v50 = vpop.xlane.xlu1 %1141 }
 0x454   : > { %v1160_v32 = vand.u32 4294967168, %v1118_v35  ;;  %v1129_v33 = vcvt.f32.s32 %v1128_v51  ;;  %v1143_v17 = vcvt.f32.s32 %v1142_v50  ;;  %1211 = vadd.xlane.f32.xlu0 %v1199_v28  ;;  %vm1152_vm13 = vcmp.eq.s32.totalorder %v2739_v44, %v1118_v35 }
 0x456   : > { %v1176_v20 = vadd.f32 1e-08, %v1160_v32  ;;  %v1132_v40 = vadd.s32 %v1131_v30, %v1129_v33  ;;  %v1146_v21 = vadd.s32 %v1145_v36, %v1143_v17 }
 0x458   : > { %2180 = vrcp.f32 %v1176_v20  ;;  %v1161_v60 = vand.u32 4294967168, %v1132_v40  ;;  %v1162_v43 = vand.u32 4294967168, %v1146_v21  ;;  %vm1153_vm14 = vcmp.eq.s32.totalorder %v2749_v38, %v1132_v40  ;;  %v2124_v38 = vld [vmem:[%s427_s15 + $0x10] sm:$0xff]  }
 0x459   : > { %vm1154_vm15 = vcmp.eq.s32.totalorder %v2754_v1, %v1146_v21  ;;  %v2125_v1 = vld [vmem:[%s427_s15 + $0x18] sm:$0xff]   ;;  %1992 = vmatprep.mubr.msk.bf16.mxu1 %vm1389_vm0, %v2124_v38  ;;  %s2202_s15 = scalar_lea.vmem %s2908_s26, 1024 }
 0x45a   : > { %v1177_v41 = vadd.f32 1e-08, %v1161_v60  ;;  %v1178_v27 = vadd.f32 1e-08, %v1162_v43  ;;  %v2135_v60 = vld [vmem:[%s2965_s7 + $0x28] sm:$0xff]   ;;  %p2203_p12 = scmp.ne.s32.totalorder %s2908_s26, %s2202_s15  ;;  %p2210_p2 = scmp.lt.s32.totalorder %s2208_s24, %s2202_s15 }
 0x45c   : > { %2182 = vrcp.f32 %v1177_v41  ;;  %p2204_p13 = pnand %p2203_p12, %p2378_p4  ;;  %p2211_p3 = por %p2210_p2, %p2209_p1 }
 0x45d   : > { %2184 = vrcp.f32 %v1178_v27 }
 0x45e   : > { %p2205_p0 = pneg %p2204_p13 }
 0x460   : > { %p2212_p5 = pnand %p2211_p3, %p2205_p0 }
 0x462   : > { %v2181_v46 = vpop.eup %2180 }
 0x463   : > { %v1192_v56 = vsel %vm1152_vm13, %v2181_v46, 0.0  ;;  %v2136_v46 = vld [vmem:[%s2965_s7 + $0x30] sm:$0xff]  }
 0x464   : > { %v1200_v34 = vadd.f32 %v1192_v56, %v2768_v15  ;;  %v2123_v15 = vld [vmem:[%s2963_s5] sm:$0xff]   ;;  %v2137_v56 = vld [vmem:[%s2965_s7 + $0x38] sm:$0xff]  }
 0x465   : > { %2032 = vmatprep.subr.bf16.mxu1 %v2123_v15  ;;  %1986 = vmatprep.subr.bf16.mxu0 %v2123_v15 }
 0x466   : > { %v2183_v25 = vpop.eup %2182  ;;  %1213 = vadd.xlane.f32.xlu1 %v1200_v34  ;;  %v1229_v31 = vpack.c.bf16 %v1200_v34, %v1199_v28  ;;  %2033 = vmatpush3.bf16.msra.mxu1 %v2123_v15  ;;  %v1908_v34 = vld [vmem:[%s2964_s6] ss:$0 sm:$0xff] }
 0x467   : > { %v2185_v14 = vpop.eup %2184  ;;  %v1193_v49 = vsel %vm1153_vm14, %v2183_v25, 0.0  ;;  %1987 = vmatpush3.bf16.msra.mxu0 %v2123_v15 }
 0x468   : > { %1982 = vmatprep.mubr.bf16.mxu0 %v1229_v31  ;;  %v1201_v45 = vadd.f32 %v1193_v49, %v2773_v24  ;;  %v1194_v58 = vsel %vm1154_vm15, %v2185_v14, 0.0  ;;  %v2126_v24 = vld [vmem:[%s2962_s4] sm:$0xff]  }
 0x469   : > { %v1202_v42 = vadd.f32 %v1194_v58, %v2778_v29  ;;  %1993 = vmatmul.mubr.msk.bf16.vlgmr.msra.gmra.mrb[0].mxu1 %vm1389_vm0, %v2125_v1  ;;  %1996 = vmatprep.subr.bf16.mxu1 %v2126_v24  ;;  %v2127_v29 = vld [vmem:[%s2962_s4 + $0x8] sm:$0xff]  }
 0x46a   : > { %1215 = vadd.xlane.f32.xlu0 %v1201_v45  ;;  %1997 = vmatpush3.bf16.msra.mxu1 %v2126_v24 }
 0x46b   : > { %1217 = vadd.xlane.f32.xlu1 %v1202_v42  ;;  %v1230_v44 = vpack.c.bf16 %v1202_v42, %v1201_v45  ;;  %1998 = vmatprep.subr.bf16.mxu1 %v2127_v29 }
 0x46d   : > { %1983 = vmatmul.mubr.bf16.gmra.mrb[4].mxu0 %v1230_v44 }
 0x46e   : > { %1988 = vmatprep.mubr.msk.bf16.mxu0 %vm1389_vm0, %v2128_v52  ;;  %1999 = vmatpush3.bf16.msra.mxu1 %v2127_v29 }
 0x46f   : > { %2008 = vmatprep.subr.bf16.mxu1 %v2130_v13 }
 0x475   : > { %1989 = vmatmul.mubr.msk.bf16.vlgmr.msra.gmra.mrb[8].mxu0 %vm1389_vm0, %v2129_v12 }
 0x4c5   : > { %v1206_v47 = vpop.xlane.xlu1 %1205 }
 0x4c6   : > { %2186 = vrcp.f32 %v1206_v47 }
 0x4cd   : > { %v1204_v9 = vpop.xlane.xlu0 %1203 }
 0x4d0   : > { %v2187_v2 = vpop.eup %2186 }
 0x4d2   : > { %v1208_v54 = vpop.xlane.xlu0 %1207 }
 0x4d3   : > { %2188 = vrcp.f32 %v1208_v54 }
 0x4d5   : > { %v1210_v22 = vpop.xlane.xlu1 %1209 }
 0x4d6   : > { %2190 = vrcp.f32 %v1210_v22 }
 0x4d7   : > { %2192 = vrcp.f32 %v1204_v9 }
 0x4dd   : > { %v2189_v3 = vpop.eup %2188 }
 0x4e0   : > { %v2191_v53 = vpop.eup %2190 }
 0x4e1   : > { %v2193_v6 = vpop.eup %2192  ;;  %v1212_v37 = vpop.xlane.xlu0 %1211 }
 0x4e2   : > { %2194 = vrcp.f32 %v1212_v37 }
 0x4ec   : > { %v2195_v16 = vpop.eup %2194 }
 0x4f3   : > { %v1214_v10 = vpop.xlane.xlu1 %1213 }
 0x4f7   : > { %v1216_v19 = vpop.xlane.xlu0 %1215 }
 0x4f8   : > { %v1218_v18 = vpop.xlane.xlu1 %1217  ;;  %2196 = vrcp.f32 %v1216_v19 }
 0x4f9   : > { %2198 = vrcp.f32 %v1218_v18 }
 0x4fa   : > { %2200 = vrcp.f32 %v1214_v10 }
 0x502   : > { %v2197_v5 = vpop.eup %2196 }
 0x503   : > { %v2199_v28 = vpop.eup %2198 }
 0x504   : > { %v2201_v51 = vpop.eup %2200 }
 0x51d   : > { %v1980_v7 = vpop.f32.mrb[0].mxu0 }
 0x51e   : > { %v1313_v55 = vpop.f32.mrb[1].mxu0  ;;  %v1346_v59 = vmul.f32 %v2189_v3, %v1980_v7 }
 0x51f   : > { %v1981_v26 = vpop.f32.mrb[2].mxu0  ;;  %v1344_v8 = vmul.f32 %v2193_v6, %v1313_v55 }
 0x520   : > { %v1347_v0 = vmul.f32 %v2191_v53, %v1981_v26  ;;  %v1316_v4 = vpop.f32.mrb[3].mxu0 }
 0x521   : > { %v1345_v23 = vmul.f32 %v2187_v2, %v1316_v4 }
 0x522   : > { %v1360_v62 = vpack.c.bf16 %v1347_v0, %v1346_v59 }
 0x523   : > { %v1359_v57 = vpack.c.bf16 %v1345_v23, %v1344_v8 }
 0x525   : > { %2000 = vmatprep.mubr.msk.bf16.mxu1 %vm1479_vm1, %v1359_v57 }
 0x526   : > { %2001 = vmatmul.mubr.msk.bf16.vlgmr.msra.gmra.mrb[4].mxu1 %vm1479_vm1, %v1360_v62  ;;  %v1909_v62 = vld [vmem:[%s2966_s8] ss:$0 sm:$0xff] }
 0x527   : > { %2009 = vmatpush3.bf16.msra.mxu1 %v2130_v13 }
 0x528   : > { %2010 = vmatprep.subr.bf16.mxu1 %v2131_v48 }
 0x52b   : > { %2011 = vmatpush3.bf16.msra.mxu1 %v2131_v48 }
 0x52c   : > { %2012 = vmatprep.subr.bf16.mxu1 %v2132_v39 }
 0x52f   : > { %2013 = vmatpush3.bf16.msra.mxu1 %v2132_v39 }
 0x530   : > { %2014 = vmatprep.subr.bf16.mxu1 %v2133_v63 }
 0x533   : > { %2015 = vmatpush3.bf16.msra.mxu1 %v2133_v63 }
 0x534   : > { %2016 = vmatprep.subr.bf16.mxu1 %v2134_v11 }
 0x537   : > { %2017 = vmatpush3.bf16.msra.mxu1 %v2134_v11 }
 0x538   : > { %2018 = vmatprep.subr.bf16.mxu1 %v2135_v60 }
 0x53b   : > { %2019 = vmatpush3.bf16.msra.mxu1 %v2135_v60 }
 0x53c   : > { %2020 = vmatprep.subr.bf16.mxu1 %v2136_v46 }
 0x53f   : > { %2021 = vmatpush3.bf16.msra.mxu1 %v2136_v46 }
 0x540   : > { %v1984_v61 = vpop.f32.mrb[4].mxu0  ;;  %2022 = vmatprep.subr.bf16.mxu1 %v2137_v56 }
 0x541   : > { %v1329_v35 = vpop.f32.mrb[5].mxu0  ;;  %v1350_v50 = vmul.f32 %v2197_v5, %v1984_v61 }
 0x542   : > { %v1985_v30 = vpop.f32.mrb[6].mxu0  ;;  %v1348_v33 = vmul.f32 %v2195_v16, %v1329_v35 }
 0x543   : > { %v1351_v36 = vmul.f32 %v2199_v28, %v1985_v30  ;;  %v1332_v32 = vpop.f32.mrb[7].mxu0  ;;  %2023 = vmatpush3.bf16.msra.mxu1 %v2137_v56 }
 0x544   : > { %v1349_v17 = vmul.f32 %v2201_v51, %v1332_v32 }
 0x545   : > { %v1362_v20 = vpack.c.bf16 %v1351_v36, %v1350_v50 }
 0x546   : > { %v1361_v40 = vpack.c.bf16 %v1349_v17, %v1348_v33 }
 0x548   : > { %2004 = vmatprep.mubr.msk.bf16.mxu1 %vm1479_vm1, %v1361_v40  ;;  %v1990_v21 = vpop.f32.mrb[8].mxu0 }
 0x549   : > { %2005 = vmatmul.mubr.msk.bf16.gmra.mrb[0].mxu1 %vm1479_vm1, %v1362_v20  ;;  %v1436_v43 = vpop.f32.mrb[9].mxu0 }
 0x54a   : > { %v1991_v41 = vpop.f32.mrb[10].mxu0 }
 0x54b   : > { %v1439_v27 = vpop.f32.mrb[11].mxu0 }
 0x5f9   : > { %v2002_v25 = vpop.f32.mrb[4].mxu1 }
 0x5fa   : > { %v1535_v31 = vadd.f32 %v2002_v25, %v1990_v21  ;;  %v1526_v14 = vpop.f32.mrb[5].mxu1 }
 0x5fb   : > { %v1527_v49 = vadd.f32 %v1526_v14, %v1436_v43  ;;  %v2003_v45 = vpop.f32.mrb[6].mxu1 }
 0x5fc   : > { %v1565_v58 = vadd.f32 %v1908_v34, %v1535_v31  ;;  %v1538_v42 = vadd.f32 %v2003_v45, %v1991_v41  ;;  %v1529_v44 = vpop.f32.mrb[7].mxu1 }
 0x5fd   : > { %v1563_v15 = vadd.f32 %v1908_v34, %v1527_v49  ;;  %v1530_v38 = vadd.f32 %v1529_v44, %v1439_v27 }
 0x5fe   : > { %v1566_v1 = vadd.f32 %v1908_v34, %v1538_v42  ;;  %v1573_v29 = vmax.f32 %v1565_v58, 0.0 }
 0x5ff   : > { %v1564_v24 = vadd.f32 %v1908_v34, %v1530_v38  ;;  %v1571_v12 = vmax.f32 %v1563_v15, 0.0 }
 0x600   : > { %v1574_v52 = vmax.f32 %v1566_v1, 0.0 }
 0x601   : > { %v1572_v13 = vmax.f32 %v1564_v24, 0.0 }
 0x602   : > { %v1597_v9 = vpack.c.bf16 %v1574_v52, %v1573_v29 }
 0x603   : > { %v1596_v47 = vpack.c.bf16 %v1572_v13, %v1571_v12 }
 0x605   : > { %2024 = vmatprep.mubr.bf16.mxu1 %v1596_v47 }
 0x606   : > { %2025 = vmatmul.mubr.bf16.vlgmr.msra.gmra.mrb[8].mxu1 %v1597_v9 }
 0x61c   : > { %v2006_v54 = vpop.f32.mrb[0].mxu1 }
 0x61d   : > { %v1569_v22 = vadd.f32 %v2006_v54, %v1908_v34  ;;  %v1542_v2 = vpop.f32.mrb[1].mxu1 }
 0x61e   : > { %v1567_v7 = vadd.f32 %v1908_v34, %v1542_v2  ;;  %v2007_v3 = vpop.f32.mrb[2].mxu1 }
 0x61f   : > { %v1570_v55 = vadd.f32 %v2007_v3, %v1908_v34  ;;  %v1545_v53 = vpop.f32.mrb[3].mxu1  ;;  %v1577_v6 = vmax.f32 %v1569_v22, 0.0 }
 0x620   : > { %v1568_v26 = vadd.f32 %v1908_v34, %v1545_v53  ;;  %v1575_v0 = vmax.f32 %v1567_v7, 0.0 }
 0x621   : > { %v1578_v59 = vmax.f32 %v1570_v55, 0.0 }
 0x622   : > { %v1576_v4 = vmax.f32 %v1568_v26, 0.0 }
 0x623   : > { %v1599_v8 = vpack.c.bf16 %v1578_v59, %v1577_v6 }
 0x624   : > { %v1598_v23 = vpack.c.bf16 %v1576_v4, %v1575_v0 }
 0x626   : > { %2028 = vmatprep.mubr.bf16.mxu1 %v1598_v23 }
 0x627   : > { %2029 = vmatmul.mubr.bf16.gmra.mrb[12].mxu1 %v1599_v8 }
 0x6d9   : > { %v2026_v57 = vpop.f32.mrb[8].mxu1 }
 0x6da   : > { %v1697_v48 = vadd.f32 %v2026_v57, %v1909_v62  ;;  %v1688_v39 = vpop.f32.mrb[9].mxu1 }
 0x6db   : > { %v1689_v63 = vadd.f32 %v1909_v62, %v1688_v39  ;;  %v2027_v10 = vpop.f32.mrb[10].mxu1 }
 0x6dc   : > { %v1721_v37 = vmax.f32 %v1697_v48, 0.0  ;;  %v1700_v11 = vadd.f32 %v2027_v10, %v1909_v62  ;;  %v1691_v19 = vpop.f32.mrb[11].mxu1 }
 0x6dd   : > { %v1719_v18 = vmax.f32 %v1689_v63, 0.0  ;;  %v1692_v16 = vadd.f32 %v1909_v62, %v1691_v19 }
 0x6de   : > { %1729 = vst [vmem:[%s404_s23 + $0x10] sm:$0xff] %v1721_v37  ;;  %v1722_v61 = vmax.f32 %v1700_v11, 0.0 }
 0x6df   : > { %1727 = vst [vmem:[%s404_s23] sm:$0xff] %v1719_v18  ;;  %v1720_v5 = vmax.f32 %v1692_v16, 0.0 }
 0x6e0   : > { %1730 = vst [vmem:[%s404_s23 + $0x18] sm:$0xff] %v1722_v61 }
 0x6e1   : > { %1728 = vst [vmem:[%s404_s23 + $0x8] sm:$0xff] %v1720_v5 }
 0x6fa   : > { %v2030_v35 = vpop.f32.mrb[12].mxu1 }
 0x6fb   : > { %v1713_v28 = vadd.f32 %v2030_v35, %v1909_v62  ;;  %v1704_v30 = vpop.f32.mrb[13].mxu1 }
 0x6fc   : > { %v1705_v51 = vadd.f32 %v1909_v62, %v1704_v30  ;;  %v2031_v50 = vpop.f32.mrb[14].mxu1 }
 0x6fd   : > { %v1725_v36 = vmax.f32 %v1713_v28, 0.0  ;;  %v1716_v32 = vadd.f32 %v2031_v50, %v1909_v62  ;;  %v1707_v33 = vpop.f32.mrb[15].mxu1 }
 0x6fe   : > { %v1723_v17 = vmax.f32 %v1705_v51, 0.0  ;;  %v1708_v20 = vadd.f32 %v1909_v62, %v1707_v33 }
 0x6ff   : > { %1733 = vst [vmem:[%s404_s23 + $0x30] sm:$0xff] %v1725_v36  ;;  %v1726_v40 = vmax.f32 %v1716_v32, 0.0 }
 0x700   : > { %1731 = vst [vmem:[%s404_s23 + $0x20] sm:$0xff] %v1723_v17  ;;  %v1724_v21 = vmax.f32 %v1708_v20, 0.0 }
 0x701   : > { %1734 = vst [vmem:[%s404_s23 + $0x38] sm:$0xff] %v1726_v40 }
 0x702   : > { %1732 = vst [vmem:[%s404_s23 + $0x28] sm:$0xff] %v1724_v21 }
 0x703   : > { %2215 = shalt.err (!%p2212_p5)
}
 0x704   : > { %s2216_s16 = scalar_lea.hbm %s2906_s29, 1024  ;;  %s2220_s27 = scalar_lea.hbm %s2967_s9, 2048 }
 0x705   : > { %p2217_p6 = scmp.ne.s32.totalorder %s2906_s29, %s2216_s16  ;;  %p2221_p10 = scmp.lt.u32.totalorder %s2906_s29, %s2967_s9 }
 0x706   : > { %p2222_p11 = scmp.lt.u32.totalorder %s2220_s27, %s2216_s16  ;;  %p2224_p13 = scmp.lt.u32.totalorder %s2216_s16, %s2906_s29 }
 0x707   : > { %p2218_p7 = pnand %p2217_p6, %p2378_p4 }
 0x708   : > { %p2223_p12 = por %p2222_p11, %p2221_p10 }
 0x709   : > { %p2219_p9 = pneg %p2218_p7 }
 0x70a   : > { %p2225_p0 = por %p2224_p13, %p2223_p12 }
 0x70c   : > { %p2226_p1 = pnand %p2225_p0, %p2219_p9 }
 0x70e   : > { %2229 = shalt.err (!%p2226_p1)
}
 0x70f   : > { %s2286_s15 = smov 128   ;;  %s2287_s20 = smov 8  }
 0x710   : > { %2042 = dma.vmem_to_hbm [thread:$0]  (%p2378_p4), %s2908_s26, 1024, %s2906_s29, %s2912_s12, %s2286_s15, %s2286_s15, %s2287_s20  }
 0x711 PF: > { %p2048_p2 = scmp.ge.s32.totalorder %s2280_s14, 2  ;;  %s1766_s24 = sand.u32 1, %s2260_s30  }
 0x712   : > { %s1767_s16 = scalar_lea.sflag [#allocation3], %s1766_s24 }
 0x713   : > { %p2045_p3 = pnand %p2048_p2, %p2385_p8 }
 0x715   : > { %2255 = dma.done.wait (!%p2045_p3), %s1767_s16, 1024  }
 0x716   : > { %2257 = vsyncadd (!%p2045_p3), %s1767_s16, 4294966272  ;;  %s22_s14 = sadd.s32 1, %s2280_s14   ;;  %s2970_s30 = smov %s2264_s10 }
 0x717   : > { %p19_p5 = scmp.ge.s32.totalorder %s22_s14, 4   ;;  %s2971_s10 = smov %s2268_s11 }
 0x718   : > { %s2972_s11 = smov %s2391_s22  ;;  %s2973_s12 = smov %s2276_s13 }
 0x719   : > { %s2974_s13 = smov %s2976_s17  ;;  %21 = sbr.rel (!%p19_p5) target bundleno = 4 (0x4), region = 100 }
 0x720   :  { %1772 = vsyncpa [#allocation3], 1 }
 0x721   :  { %1774 = vsyncpa [#allocation3 + $0x1], 1 }

// kernel: tpu_custom_call.1
= control target key start
LH: loop header
LB: loop body
LE: loop exit
PB: predicated region body
PF: predicated region fallthrough
CT: control target
= control target key end

     0   :  { %14 = vsyncpa [#allocation3], 0  ;;  %s2958_s0 = inlined_call_operand.vmem [shape: f32[2,64,3], index: 0, kind: input, shape index: {}]   ;;  %s2959_s1 = inlined_call_operand.vmem [shape: f32[2,3,128], index: 1, kind: input, shape index: {}]   ;;  %s2960_s2 = inlined_call_operand.vmem [shape: bf16[2,64,16], index: 2, kind: input, shape index: {}]   ;;  %s2961_s3 = inlined_call_operand.vmem [shape: bf16[2,128,32], index: 3, kind: input, shape index: {}]   ;;  %s2962_s4 = inlined_call_operand.vmem [shape: bf16[32,128], index: 4, kind: input, shape index: {}]   ;;  %s2963_s5 = inlined_call_operand.vmem [shape: bf16[16,128], index: 5, kind: input, shape index: {}]   ;;  %s2964_s6 = inlined_call_operand.vmem [shape: f32[1,128], index: 6, kind: input, shape index: {}]   ;;  %s2965_s7 = inlined_call_operand.vmem [shape: bf16[128,128], index: 7, kind: input, shape index: {}]   ;;  %s2966_s8 = inlined_call_operand.vmem [shape: f32[1,128], index: 8, kind: input, shape index: {}]   ;;  %s2967_s9 = inlined_call_operand.hbm [shape: f32[2,64,128], index: 9, kind: output, shape index: {}]  }
   0x1   :  { %16 = vsyncpa [#allocation3 + $0x1], 0  ;;  %s2338_s30 = smov 0   ;;  %s2340_s10 = smov 0  }
   0x2   :  { %s2342_s11 = smov 0   ;;  %s2344_s12 = smov 0  }
   0x3   :  { %s2346_s13 = smov 0   ;;  %s2348_s14 = smov 0  }
   0x4 LB: > { %s1872_s15 = sadd.s32 4294967295, %s2280_s14   ;;  %s1873_s16 = sadd.s32 4294967294, %s2280_s14   ;;  %s2280_s14 = sphi %s2348_s14, %s22_s14   ;;  %s2276_s13 = sphi %s2346_s13, %s2974_s13   ;;  %s2272_s12 = sphi %s2344_s12, %s2973_s12   ;;  %s2268_s11 = sphi %s2342_s11, %s2972_s11   ;;  %s2264_s10 = sphi %s2340_s10, %s2971_s10   ;;  %s2260_s30 = sphi %s2338_s30, %s2970_s30  }
   0x5   : > { %s34_s17 = sadd.s32 1, %s2276_s13  ;;  %s256_s18 = sadd.s32 1, %s2268_s11 }
   0x6   : > { %p36_p0 = scmp.ge.s32.totalorder %s34_s17, 2  ;;  %p266_p1 = scmp.ne.s32.totalorder %s2268_s11, %s2264_s10 }
   0x7   : > { %p267_p2 = scmp.eq.s32.totalorder %s1872_s15, 1  ;;  %p272_p3 = scmp.ne.s32.totalorder %s2264_s10, %s2260_s30 }
   0x8   : > { %s2976_s17 = smov (%p36_p0, %s34_s17), 0  ;;  %p273_p5 = scmp.eq.s32.totalorder %s1873_s16, 1 }
   0x9   : > { %p2378_p4 = por %p267_p2, %p266_p1  ;;  %s251_s20 = ssub.s32 %s2276_s13, %s2976_s17 }
   0xa   : > { %p1876_p6 = scmp.ge.s32.totalorder %s2280_s14, 1  ;;  %p254_p7 = scmp.eq.s32.totalorder %s251_s20, 0 }
   0xb   : > { %p2385_p8 = por %p273_p5, %p272_p3  ;;  %p347_p9 = scmp.lt.s32.totalorder %s2280_s14, 3 }
   0xc   : > { %s2391_s22 = scalar_select %p254_p7, %s2268_s11, %s256_s18  }
   0xd   : > { %p348_p10 = pnand %p1876_p6, %p347_p9 }
   0xe   : > { %p406_p11 = scmp.lt.s32.totalorder (!%p348_p10), %s2272_s12, 1  ;;  %v2282_v0 = vmov (!%p348_p10), 2   ;;  %v2283_v1 = vmov (!%p348_p10), 1   ;;  %v2284_v4 = vmov (!%p348_p10), 0   ;;  %v509_v11 = vlaneseq (!%p348_p10)  ;;  %s1926_s25 = sshll.u32 (!%p348_p10), %s2272_s12, 10 }
   0xf   : > { %351 = sbr.rel (%p348_p10) target bundleno = 1809 (0x711), region = 56  ;;  %2106 = vset.pattern.permute.xlu0 (!%p348_p10), %v2282_v0  ;;  %2102 = vset.pattern.permute.xlu1 (!%p348_p10), %v2283_v1  ;;  %s2906_s29 = scalar_lea.hbm (!%p348_p10), %s2967_s9, %s1926_s25 }
  0x10   : > { %v510_v12 = vshrl.u32 (!%p348_p10), %v509_v11, 7  ;;  %v2431_v37 = vand.u32 (!%p348_p10), 127, %v509_v11  ;;  %s2285_s18 = smov (!%p348_p10), [#allocation2]  }
  0x11   : > { %s2206_s20 = sshll.u32 (!%p348_p10), %s2285_s18, 4  ;;  %s2207_s20 = int_to_ptr.vmem [resolvable:$false] %s2206_s20 }
  0x12   : > { %v631_v13 = vsub.s32 (!%p348_p10), 2, %v510_v12  ;;  %v571_v16 = vsub.s32 (!%p348_p10), 1, %v510_v12  ;;  %v511_v18 = vsub.s32 (!%p348_p10), 0, %v510_v12 }
  0x16   : > { %s2395_s23 = scalar_select %p406_p11, %s2272_s12, 1 }
  0x18   : > { %s1923_s24 = sshll.u32 %s2395_s23, 6  ;;  %s1880_s16 = sshll.u32 %s2395_s23, 2 }
  0x19   : > { %s2401_s27 = scalar_lea.vmem %s2958_s0, %s1923_s24  ;;  %s2408_s15 = scalar_lea.vmem %s2961_s3, %s1923_s24 }
  0x1a   : > { %v437_v2 = vld [vmem:[%s2401_s27 + $0x8] sm:$0xff]  ;;  %v436_v3 = vld [vmem:[%s2401_s27] sm:$0xff]  ;;  %v439_v5 = vld [vmem:[%s2401_s27 + $0x18] sm:$0xff]  ;;  %s418_s24 = scalar_lea.vmem %s2959_s1, %s1880_s16  ;;  %s402_s16 = sand.u32 1, %s2264_s10  }
  0x1b   : > { %602 = vperm.xlu0 %2106, %v437_v2   ;;  %538 = vperm.xlu1 %2102, %v436_v3   ;;  %v438_v6 = vld [vmem:[%s2401_s27 + $0x10] sm:$0xff]  ;;  %v440_v7 = vld [vmem:[%s2401_s27 + $0x20] sm:$0xff]  ;;  %v441_v8 = vld [vmem:[%s2401_s27 + $0x28] sm:$0xff]  ;;  %s2912_s12 = scalar_lea.sflag [#allocation3], %s402_s16 }
  0x1c   : > { %v442_v9 = vld [vmem:[%s2401_s27 + $0x30] sm:$0xff]  ;;  %v443_v10 = vld [vmem:[%s2401_s27 + $0x38] sm:$0xff]  ;;  %v444_v17 = vld [vmem:[%s418_s24] sm:$0x7]  ;;  %s1924_s27 = sshll.u32 %s2395_s23, 5  ;;  %s1877_s24 = sshll.u32 %s402_s16, 6 }
  0x1d   : > { %v2420_v19 = vrot.slane %v444_v17, %v631_v13  ;;  %v2422_v22 = vrot.slane %v444_v17, %v571_v16  ;;  %v2424_v23 = vrot.slane %v444_v17, %v511_v18  ;;  %s404_s23 = scalar_lea.vmem [#allocation2], %s1877_s24  ;;  %s2208_s24 = scalar_lea.vmem %s2207_s20, 2048 }
  0x1e   : > { %s1751_s26 = sshll.u32 %s404_s23, 4  ;;  %s2908_s26 = int_to_ptr.vmem [resolvable:$true] %s1751_s26 }
  0x1f   : > { %2107 = vset.pattern.permute.xlu0 %v2284_v4  ;;  %542 = vperm.xlu1 %2102, %v437_v2   ;;  %p2209_p1 = scmp.lt.s32.totalorder %s2908_s26, %s2207_s20 }
  0x20   : > { %471 = vperm.xlu0 %2107, %v436_v3  }
  0x23   : > { %2103 = vset.pattern.permute.xlu1 %v2284_v4 }
  0x24   : > { %476 = vperm.xlu0 %2107, %v437_v2   ;;  %486 = vperm.xlu1 %2103, %v439_v5  }
  0x28   : > { %481 = vperm.xlu0 %2107, %v438_v6   ;;  %2104 = vset.pattern.permute.xlu1 %v2283_v1 }
  0x29   : > { %550 = vperm.xlu1 %2104, %v439_v5  }
  0x2c   : > { %491 = vperm.xlu0 %2107, %v440_v7  }
  0x2d   : > { %2105 = vset.pattern.permute.xlu1 %v2282_v0 }
  0x2e   : > { %598 = vperm.xlu1 %2105, %v436_v3  }
  0x30   : > { %2108 = vset.pattern.permute.xlu0 %v2283_v1 }
  0x31   : > { %546 = vperm.xlu0 %2108, %v438_v6  }
  0x32   : > { %606 = vperm.xlu1 %2105, %v438_v6  }
  0x35   : > { %558 = vperm.xlu0 %2108, %v441_v8  }
  0x36   : > { %610 = vperm.xlu1 %2105, %v439_v5  }
  0x39   : > { %562 = vperm.xlu0 %2108, %v442_v9  }
  0x3a   : > { %2109 = vset.pattern.permute.xlu1 %v2284_v4 }
  0x3b   : > { %496 = vperm.xlu1 %2109, %v441_v8  }
  0x3d   : > { %2113 = vset.pattern.permute.xlu0 %v2282_v0 }
  0x3e   : > { %614 = vperm.xlu0 %2113, %v440_v7  }
  0x3f   : > { %2110 = vset.pattern.permute.xlu1 %v2283_v1 }
  0x40   : > { %554 = vperm.xlu1 %2110, %v440_v7  }
  0x42   : > { %626 = vperm.xlu0 %2113, %v443_v10  }
  0x44   : > { %2111 = vset.pattern.permute.xlu1 %v2284_v4 }
  0x45   : > { %501 = vperm.xlu1 %2111, %v442_v9  }
  0x49   : > { %506 = vperm.xlu1 %2111, %v443_v10  }
  0x4d   : > { %2112 = vset.pattern.permute.xlu1 %v2283_v1 }
  0x4e   : > { %566 = vperm.xlu1 %2112, %v443_v10  }
  0x52   : > { %2114 = vset.pattern.permute.xlu1 %v2282_v0 }
  0x53   : > { %618 = vperm.xlu1 %2114, %v441_v8  }
  0x57   : > { %622 = vperm.xlu1 %2114, %v442_v9  }
  0x9a   : > { %v539_v14 = vpop.permute.xlu1 %538  ;;  %v603_v15 = vpop.permute.xlu0 %602 }
  0x9b   : > { %v634_v24 = vsub.f32 %v603_v15, %v2420_v19  ;;  %v573_v36 = vsub.f32 %v539_v14, %v2422_v22 }
  0x9d   : > { %v642_v29 = vmul.f32 %v634_v24, %v634_v24  ;;  %v581_v44 = vmul.f32 %v573_v36, %v573_v36 }
  0x9e   : > { %v543_v20 = vpop.permute.xlu1 %542 }
  0x9f   : > { %v472_v21 = vpop.permute.xlu0 %471  ;;  %v574_v25 = vsub.f32 %v543_v20, %v2422_v22 }
  0xa0   : > { %v513_v33 = vsub.f32 %v472_v21, %v2424_v23 }
  0xa1   : > { %v582_v30 = vmul.f32 %v574_v25, %v574_v25 }
  0xa2   : > { %v521_v40 = vmul.f32 %v513_v33, %v513_v33 }
  0xa3   : > { %v477_v26 = vpop.permute.xlu0 %476  ;;  %v487_v27 = vpop.permute.xlu1 %486 }
  0xa4   : > { %v514_v28 = vsub.f32 %v477_v26, %v2424_v23  ;;  %v589_v47 = vadd.f32 %v581_v44, %v521_v40  ;;  %v516_v55 = vsub.f32 %v487_v27, %v2424_v23 }
  0xa6   : > { %v522_v31 = vmul.f32 %v514_v28, %v514_v28  ;;  %v524_v2 = vmul.f32 %v516_v55, %v516_v55 }
  0xa7   : > { %v482_v32 = vpop.permute.xlu0 %481 }
  0xa8   : > { %v590_v34 = vadd.f32 %v582_v30, %v522_v31  ;;  %v551_v35 = vpop.permute.xlu1 %550  ;;  %v515_v42 = vsub.f32 %v482_v32, %v2424_v23 }
  0xa9   : > { %v576_v48 = vsub.f32 %v551_v35, %v2422_v22 }
  0xaa   : > { %v650_v38 = vadd.f32 %v642_v29, %v590_v34  ;;  %v523_v52 = vmul.f32 %v515_v42, %v515_v42 }
  0xab   : > { %v492_v39 = vpop.permute.xlu0 %491  ;;  %v584_v60 = vmul.f32 %v576_v48, %v576_v48 }
  0xac   : > { %v668_v41 = vand.u32 4294967168, %v650_v38  ;;  %v517_v18 = vsub.f32 %v492_v39, %v2424_v23 }
  0xad   : > { %v599_v43 = vpop.permute.xlu1 %598  ;;  %v592_v6 = vadd.f32 %v584_v60, %v524_v2 }
  0xae   : > { %v2435_v45 = vor.u32 %v668_v41, %v2431_v37  ;;  %v633_v46 = vsub.f32 %v599_v43, %v2420_v19  ;;  %v525_v28 = vmul.f32 %v517_v18, %v517_v18 }
  0xb0   : > { %v641_v49 = vmul.f32 %v633_v46, %v633_v46  ;;  %v547_v50 = vpop.permute.xlu0 %546  ;;  %v698_v51 = vshra.s32 %v2435_v45, 16 }
  0xb1   : > { %v575_v53 = vsub.f32 %v547_v50, %v2422_v22  ;;  %v607_v54 = vpop.permute.xlu1 %606 }
  0xb2   : > { %v649_v56 = vadd.f32 %v641_v49, %v589_v47  ;;  %v635_v57 = vsub.f32 %v607_v54, %v2420_v19  ;;  %v2443_v58 = vcvt.s32.f32 %v698_v51 }
  0xb3   : > { %v583_v59 = vmul.f32 %v575_v53, %v575_v53 }
  0xb4   : > { %v667_v61 = vand.u32 4294967168, %v649_v56  ;;  %v643_v62 = vmul.f32 %v635_v57, %v635_v57  ;;  %701 = vmin.xlane.f32.xlu0 %v2443_v58  ;;  %v559_v63 = vpop.permute.xlu0 %558 }
  0xb5   : > { %v591_v0 = vadd.f32 %v583_v59, %v523_v52  ;;  %v611_v1 = vpop.permute.xlu1 %610  ;;  %v578_v43 = vsub.f32 %v559_v63, %v2422_v22 }
  0xb6   : > { %v2447_v3 = vor.u32 %v667_v61, %v2431_v37  ;;  %v636_v4 = vsub.f32 %v611_v1, %v2420_v19 }
  0xb7   : > { %v651_v5 = vadd.f32 %v643_v62, %v591_v0  ;;  %v586_v52 = vmul.f32 %v578_v43, %v578_v43 }
  0xb8   : > { %v644_v7 = vmul.f32 %v636_v4, %v636_v4  ;;  %v684_v8 = vshra.s32 %v2447_v3, 16  ;;  %v563_v9 = vpop.permute.xlu0 %562 }
  0xb9   : > { %v669_v10 = vand.u32 4294967168, %v651_v5  ;;  %v579_v54 = vsub.f32 %v563_v9, %v2422_v22 }
  0xba   : > { %v652_v11 = vadd.f32 %v644_v7, %v592_v6  ;;  %v497_v12 = vpop.permute.xlu1 %496  ;;  %v2451_v13 = vcvt.s32.f32 %v684_v8 }
  0xbb   : > { %v2454_v14 = vor.u32 %v669_v10, %v2431_v37  ;;  %v518_v44 = vsub.f32 %v497_v12, %v2424_v23  ;;  %v587_v62 = vmul.f32 %v579_v54, %v579_v54 }
  0xbc   : > { %v670_v15 = vand.u32 4294967168, %v652_v11  ;;  %687 = vmin.xlane.f32.xlu1 %v2451_v13 }
  0xbd   : > { %v615_v16 = vpop.permute.xlu0 %614  ;;  %v712_v17 = vshra.s32 %v2454_v14, 16  ;;  %v526_v53 = vmul.f32 %v518_v44, %v518_v44 }
  0xbe   : > { %v2460_v20 = vor.u32 %v670_v15, %v2431_v37  ;;  %v637_v21 = vsub.f32 %v615_v16, %v2420_v19 }
  0xbf   : > { %v555_v24 = vpop.permute.xlu1 %554  ;;  %v2463_v25 = vcvt.s32.f32 %v712_v17  ;;  %v594_v61 = vadd.f32 %v586_v52, %v526_v53 }
  0xc0   : > { %v577_v26 = vsub.f32 %v555_v24, %v2422_v22  ;;  %v726_v27 = vshra.s32 %v2460_v20, 16  ;;  %v645_v30 = vmul.f32 %v637_v21, %v637_v21  ;;  %v697_v21 = vand.u32 65535, %v2435_v45 }
  0xc1   : > { %715 = vmin.xlane.f32.xlu0 %v2463_v25  ;;  %v627_v38 = vpop.permute.xlu0 %626 }
  0xc2   : > { %v585_v29 = vmul.f32 %v577_v26, %v577_v26  ;;  %v2468_v31 = vcvt.s32.f32 %v726_v27  ;;  %v640_v41 = vsub.f32 %v627_v38, %v2420_v19  ;;  %v699_v26 = vcvt.s32.f32 %v697_v21 }
  0xc4   : > { %v593_v32 = vadd.f32 %v585_v29, %v525_v28  ;;  %729 = vmin.xlane.f32.xlu1 %v2468_v31  ;;  %v502_v33 = vpop.permute.xlu1 %501  ;;  %v648_v51 = vmul.f32 %v640_v41, %v640_v41 }
  0xc5   : > { %v519_v55 = vsub.f32 %v502_v33, %v2424_v23  ;;  %v725_v33 = vand.u32 65535, %v2460_v20 }
  0xc6   : > { %v653_v34 = vadd.f32 %v645_v30, %v593_v32  ;;  %v711_v30 = vand.u32 65535, %v2454_v14 }
  0xc7   : > { %v527_v63 = vmul.f32 %v519_v55, %v519_v55  ;;  %v727_v38 = vcvt.s32.f32 %v725_v33 }
  0xc8   : > { %v671_v35 = vand.u32 4294967168, %v653_v34  ;;  %v507_v36 = vpop.permute.xlu1 %506 }
  0xc9   : > { %v520_v40 = vsub.f32 %v507_v36, %v2424_v23  ;;  %v595_v6 = vadd.f32 %v587_v62, %v527_v63 }
  0xca   : > { %v2472_v39 = vor.u32 %v671_v35, %v2431_v37  ;;  %v713_v35 = vcvt.s32.f32 %v711_v30 }
  0xcb   : > { %v528_v49 = vmul.f32 %v520_v40, %v520_v40 }
  0xcc   : > { %v740_v42 = vshra.s32 %v2472_v39, 16 }
  0xcd   : > { %v567_v46 = vpop.permute.xlu1 %566 }
  0xce   : > { %v580_v47 = vsub.f32 %v567_v46, %v2422_v22  ;;  %v2480_v48 = vcvt.s32.f32 %v740_v42 }
  0xd0   : > { %v588_v50 = vmul.f32 %v580_v47, %v580_v47  ;;  %743 = vmin.xlane.f32.xlu0 %v2480_v48 }
  0xd2   : > { %v596_v56 = vadd.f32 %v588_v50, %v528_v49  ;;  %v619_v57 = vpop.permute.xlu1 %618 }
  0xd3   : > { %v638_v59 = vsub.f32 %v619_v57, %v2420_v19 }
  0xd4   : > { %v656_v60 = vadd.f32 %v648_v51, %v596_v56 }
  0xd5   : > { %v646_v0 = vmul.f32 %v638_v59, %v638_v59 }
  0xd6   : > { %v623_v1 = vpop.permute.xlu1 %622  ;;  %v674_v2 = vand.u32 4294967168, %v656_v60 }
  0xd7   : > { %v654_v4 = vadd.f32 %v646_v0, %v594_v61  ;;  %v639_v5 = vsub.f32 %v623_v1, %v2420_v19 }
  0xd8   : > { %v2488_v22 = vor.u32 %v674_v2, %v2431_v37 }
  0xd9   : > { %v672_v7 = vand.u32 4294967168, %v654_v4  ;;  %v647_v8 = vmul.f32 %v639_v5, %v639_v5 }
  0xda   : > { %v782_v16 = vshra.s32 %v2488_v22, 16 }
  0xdb   : > { %v2491_v23 = vor.u32 %v672_v7, %v2431_v37  ;;  %v655_v9 = vadd.f32 %v647_v8, %v595_v6 }
  0xdc   : > { %v784_v17 = vcvt.s32.f32 %v782_v16 }
  0xdd   : > { %v673_v10 = vand.u32 4294967168, %v655_v9  ;;  %v754_v11 = vshra.s32 %v2491_v23, 16 }
  0xdf   : > { %v2495_v12 = vor.u32 %v673_v10, %v2431_v37  ;;  %v756_v15 = vcvt.s32.f32 %v754_v11  ;;  %v683_v37 = vand.u32 65535, %v2447_v3 }
  0xe1   : > { %757 = vmin.xlane.f32.xlu1 %v756_v15  ;;  %v768_v19 = vshra.s32 %v2495_v12, 16  ;;  %v685_v29 = vcvt.s32.f32 %v683_v37  ;;  %v767_v47 = vand.u32 65535, %v2495_v12 }
  0xe3   : > { %v770_v18 = vcvt.s32.f32 %v768_v19 }
  0xe5   : > { %785 = vmin.xlane.f32.xlu1 %v784_v17  ;;  %771 = vmin.xlane.f32.xlu0 %v770_v18 }
 0x141   : > { %v702_v24 = vpop.xlane.xlu0 %701 }
 0x142   : > { %vm703_vm0 = vcmp.eq.f32.partialorder %v2443_v58, %v702_v24  ;;  %v708_v55 = vcvt.f32.s32 %v702_v24 }
 0x143   : > { %v704_v27 = vsel %vm703_vm0, %v699_v26, inf }
 0x144   : > { %705 = vmin.xlane.f32.xlu1 %v704_v27  ;;  %v709_v57 = vshll.u32 %v708_v55, 16 }
 0x149   : > { %v688_v28 = vpop.xlane.xlu1 %687 }
 0x14a   : > { %vm689_vm1 = vcmp.eq.f32.partialorder %v2451_v13, %v688_v28  ;;  %v739_v13 = vand.u32 65535, %v2472_v39  ;;  %v694_v61 = vcvt.f32.s32 %v688_v28 }
 0x14b   : > { %v690_v32 = vsel %vm689_vm1, %v685_v29, inf }
 0x14c   : > { %691 = vmin.xlane.f32.xlu0 %v690_v32  ;;  %v741_v42 = vcvt.s32.f32 %v739_v13  ;;  %v695_v4 = vshll.u32 %v694_v61, 16 }
 0x14e   : > { %v716_v34 = vpop.xlane.xlu0 %715 }
 0x14f   : > { %vm717_vm2 = vcmp.eq.f32.partialorder %v2463_v25, %v716_v34  ;;  %v753_v25 = vand.u32 65535, %v2491_v23  ;;  %v722_v7 = vcvt.f32.s32 %v716_v34 }
 0x150   : > { %v718_v36 = vsel %vm717_vm2, %v713_v35, inf }
 0x151   : > { %719 = vmin.xlane.f32.xlu0 %v718_v36  ;;  %v730_v58 = vpop.xlane.xlu1 %729  ;;  %v755_v46 = vcvt.s32.f32 %v753_v25 }
 0x152   : > { %vm731_vm3 = vcmp.eq.f32.partialorder %v2468_v31, %v730_v58  ;;  %v781_v31 = vand.u32 65535, %v2488_v22  ;;  %v736_v9 = vcvt.f32.s32 %v730_v58 }
 0x153   : > { %v732_v40 = vsel %vm731_vm3, %v727_v38, inf }
 0x154   : > { %733 = vmin.xlane.f32.xlu1 %v732_v40  ;;  %v783_v52 = vcvt.s32.f32 %v781_v31  ;;  %v737_v26 = vshll.u32 %v736_v9, 16 }
 0x15d   : > { %v2508_v41 = vpop.xlane.xlu0 %743 }
 0x15e   : > { %vm745_vm4 = vcmp.eq.f32.partialorder %v2480_v48, %v2508_v41  ;;  %v769_v48 = vcvt.s32.f32 %v767_v47 }
 0x15f   : > { %v746_v43 = vsel %vm745_vm4, %v741_v42, inf }
 0x160   : > { %747 = vmin.xlane.f32.xlu0 %v746_v43 }
 0x16e   : > { %v2513_v44 = vpop.xlane.xlu1 %757 }
 0x16f   : > { %vm759_vm5 = vcmp.eq.f32.partialorder %v756_v15, %v2513_v44  ;;  %v723_v15 = vshll.u32 %v722_v7, 16 }
 0x170   : > { %v760_v49 = vsel %vm759_vm5, %v755_v46, inf }
 0x171   : > { %761 = vmin.xlane.f32.xlu1 %v760_v49 }
 0x172   : > { %v2518_v50 = vpop.xlane.xlu0 %771  ;;  %v2520_v51 = vpop.xlane.xlu1 %785 }
 0x173   : > { %vm773_vm6 = vcmp.eq.f32.partialorder %v770_v18, %v2518_v50  ;;  %vm787_vm7 = vcmp.eq.f32.partialorder %v784_v17, %v2520_v51 }
 0x174   : > { %v774_v53 = vsel %vm773_vm6, %v769_v48, inf  ;;  %v788_v54 = vsel %vm787_vm7, %v783_v52, inf }
 0x175   : > { %775 = vmin.xlane.f32.xlu0 %v774_v53  ;;  %789 = vmin.xlane.f32.xlu1 %v788_v54 }
 0x1d1   : > { %v706_v56 = vpop.xlane.xlu1 %705 }
 0x1d2   : > { %v707_v59 = vcvt.f32.s32 %v706_v56 }
 0x1d4   : > { %v710_v60 = vadd.s32 %v709_v57, %v707_v59  ;;  %v778_v59 = vcvt.f32.s32 %v2518_v50 }
 0x1d6   : > { %vm796_vm8 = vcmp.eq.s32.totalorder %v2435_v45, %v710_v60  ;;  %v804_v62 = vand.u32 4294967168, %v710_v60  ;;  %v792_v60 = vcvt.f32.s32 %v2520_v51 }
 0x1d7   : > { %v2528_v63 = vsel %vm796_vm8, 2139095040, %v2435_v45  ;;  %v750_v45 = vcvt.f32.s32 %v2508_v41 }
 0x1d8   : > { %v820_v0 = vadd.f32 1e-08, %v804_v62  ;;  %v874_v1 = vshra.s32 %v2528_v63, 16 }
 0x1d9   : > { %v692_v2 = vpop.xlane.xlu0 %691  ;;  %v751_v47 = vshll.u32 %v750_v45, 16 }
 0x1da   : > { %2138 = vrcp.f32 %v820_v0  ;;  %v693_v5 = vcvt.f32.s32 %v692_v2  ;;  %v2531_v6 = vcvt.s32.f32 %v874_v1 }
 0x1dc   : > { %v696_v8 = vadd.s32 %v695_v4, %v693_v5  ;;  %877 = vmin.xlane.f32.xlu1 %v2531_v6  ;;  %v779_v4 = vshll.u32 %v778_v59, 16  ;;  %v793_v5 = vshll.u32 %v792_v60, 16 }
 0x1de   : > { %vm795_vm9 = vcmp.eq.s32.totalorder %v2447_v3, %v696_v8  ;;  %v803_v10 = vand.u32 4294967168, %v696_v8  ;;  %v720_v11 = vpop.xlane.xlu0 %719 }
 0x1df   : > { %v2538_v16 = vsel %vm795_vm9, 2139095040, %v2447_v3  ;;  %v721_v19 = vcvt.f32.s32 %v720_v11 }
 0x1e0   : > { %v819_v17 = vadd.f32 1e-08, %v803_v10  ;;  %v860_v18 = vshra.s32 %v2538_v16, 16 }
 0x1e1   : > { %v724_v21 = vadd.s32 %v723_v15, %v721_v19  ;;  %v734_v24 = vpop.xlane.xlu1 %733 }
 0x1e2   : > { %2140 = vrcp.f32 %v819_v17  ;;  %v735_v27 = vcvt.f32.s32 %v734_v24  ;;  %v2541_v37 = vcvt.s32.f32 %v860_v18 }
 0x1e3   : > { %vm797_vm10 = vcmp.eq.s32.totalorder %v2454_v14, %v724_v21  ;;  %v805_v28 = vand.u32 4294967168, %v724_v21 }
 0x1e4   : > { %v2139_v29 = vpop.eup %2138  ;;  %v2547_v30 = vsel %vm797_vm10, 2139095040, %v2454_v14  ;;  %v738_v32 = vadd.s32 %v737_v26, %v735_v27  ;;  %863 = vmin.xlane.f32.xlu0 %v2541_v37  ;;  %v764_v14 = vcvt.f32.s32 %v2513_v44 }
 0x1e5   : > { %v821_v33 = vadd.f32 1e-08, %v805_v28  ;;  %v888_v34 = vshra.s32 %v2547_v30, 16  ;;  %v2553_v35 = vsel %vm796_vm8, %v2139_v29, 0.0 }
 0x1e6   : > { %vm798_vm11 = vcmp.eq.s32.totalorder %v2460_v20, %v738_v32  ;;  %v806_v36 = vand.u32 4294967168, %v738_v32  ;;  %v765_v62 = vshll.u32 %v764_v14, 16 }
 0x1e7   : > { %2142 = vrcp.f32 %v821_v33  ;;  %v2559_v58 = vsel %vm798_vm11, 2139095040, %v2460_v20  ;;  %v2561_v38 = vcvt.s32.f32 %v888_v34 }
 0x1e8   : > { %v822_v40 = vadd.f32 1e-08, %v806_v36  ;;  %v902_v13 = vshra.s32 %v2559_v58, 16 }
 0x1e9   : > { %891 = vmin.xlane.f32.xlu0 %v2561_v38 }
 0x1ea   : > { %2144 = vrcp.f32 %v822_v40  ;;  %v2566_v42 = vcvt.s32.f32 %v902_v13 }
 0x1ec   : > { %v2141_v43 = vpop.eup %2140  ;;  %905 = vmin.xlane.f32.xlu1 %v2566_v42 }
 0x1ed   : > { %v748_v25 = vpop.xlane.xlu0 %747  ;;  %v2571_v46 = vsel %vm795_vm9, %v2141_v43, 0.0 }
 0x1ee   : > { %v749_v31 = vcvt.f32.s32 %v748_v25  ;;  %v873_v25 = vand.u32 65535, %v2528_v63 }
 0x1f0   : > { %v752_v49 = vadd.s32 %v751_v47, %v749_v31  ;;  %v875_v31 = vcvt.s32.f32 %v873_v25 }
 0x1f1   : > { %v2143_v48 = vpop.eup %2142 }
 0x1f2   : > { %vm799_vm12 = vcmp.eq.s32.totalorder %v2472_v39, %v752_v49  ;;  %v807_v52 = vand.u32 4294967168, %v752_v49  ;;  %v2576_v41 = vsel %vm797_vm10, %v2143_v48, 0.0 }
 0x1f3   : > { %v2581_v53 = vsel %vm799_vm12, 2139095040, %v2472_v39 }
 0x1f4   : > { %v2145_v54 = vpop.eup %2144  ;;  %v823_v3 = vadd.f32 1e-08, %v807_v52  ;;  %v916_v55 = vshra.s32 %v2581_v53, 16 }
 0x1f5   : > { %v2586_v56 = vsel %vm798_vm11, %v2145_v54, 0.0 }
 0x1f6   : > { %2146 = vrcp.f32 %v823_v3  ;;  %v2588_v57 = vcvt.s32.f32 %v916_v55 }
 0x1f8   : > { %919 = vmin.xlane.f32.xlu0 %v2588_v57 }
 0x1fe   : > { %v762_v61 = vpop.xlane.xlu1 %761 }
 0x1ff   : > { %v763_v0 = vcvt.f32.s32 %v762_v61 }
 0x200   : > { %v2147_v1 = vpop.eup %2146 }
 0x201   : > { %v766_v2 = vadd.s32 %v765_v62, %v763_v0  ;;  %v2596_v20 = vsel %vm799_vm12, %v2147_v1, 0.0 }
 0x202   : > { %v776_v7 = vpop.xlane.xlu0 %775  ;;  %v790_v8 = vpop.xlane.xlu1 %789 }
 0x203   : > { %vm800_vm13 = vcmp.eq.s32.totalorder %v2491_v23, %v766_v2  ;;  %v808_v44 = vand.u32 4294967168, %v766_v2  ;;  %v777_v9 = vcvt.f32.s32 %v776_v7  ;;  %v791_v50 = vcvt.f32.s32 %v790_v8 }
 0x204   : > { %v2602_v51 = vsel %vm800_vm13, 2139095040, %v2491_v23  ;;  %v859_v23 = vand.u32 65535, %v2538_v16 }
 0x205   : > { %v824_v10 = vadd.f32 1e-08, %v808_v44  ;;  %v780_v11 = vadd.s32 %v779_v4, %v777_v9  ;;  %v794_v15 = vadd.s32 %v793_v5, %v791_v50  ;;  %v930_v39 = vshra.s32 %v2602_v51, 16 }
 0x206   : > { %v861_v52 = vcvt.s32.f32 %v859_v23 }
 0x207   : > { %2148 = vrcp.f32 %v824_v10  ;;  %vm801_vm14 = vcmp.eq.s32.totalorder %v2495_v12, %v780_v11  ;;  %v809_v19 = vand.u32 4294967168, %v780_v11  ;;  %vm802_vm15 = vcmp.eq.s32.totalorder %v2488_v22, %v794_v15 }
 0x208   : > { %v2610_v17 = vsel %vm801_vm14, 2139095040, %v2495_v12  ;;  %v810_v18 = vand.u32 4294967168, %v794_v15  ;;  %v2615_v21 = vsel %vm802_vm15, 2139095040, %v2488_v22  ;;  %v932_v24 = vcvt.s32.f32 %v930_v39 }
 0x209   : > { %v825_v26 = vadd.f32 1e-08, %v809_v19  ;;  %v944_v27 = vshra.s32 %v2610_v17, 16  ;;  %v958_v28 = vshra.s32 %v2615_v21, 16  ;;  %v887_v12 = vand.u32 65535, %v2547_v30 }
 0x20a   : > { %v826_v29 = vadd.f32 1e-08, %v810_v18  ;;  %933 = vmin.xlane.f32.xlu1 %v932_v24  ;;  %v901_v22 = vand.u32 65535, %v2559_v58  ;;  %v943_v1 = vand.u32 65535, %v2610_v17 }
 0x20b   : > { %2150 = vrcp.f32 %v825_v26  ;;  %v946_v32 = vcvt.s32.f32 %v944_v27  ;;  %v960_v33 = vcvt.s32.f32 %v958_v28  ;;  %v889_v55 = vcvt.s32.f32 %v887_v12 }
 0x20c   : > { %2152 = vrcp.f32 %v826_v29  ;;  %v903_v59 = vcvt.s32.f32 %v901_v22  ;;  %v945_v8 = vcvt.s32.f32 %v943_v1 }
 0x20d   : > { %947 = vmin.xlane.f32.xlu0 %v946_v32 }
 0x20e   : > { %961 = vmin.xlane.f32.xlu1 %v960_v33 }
 0x211   : > { %v2149_v34 = vpop.eup %2148 }
 0x212   : > { %v2621_v36 = vsel %vm800_vm13, %v2149_v34, 0.0 }
 0x215   : > { %v2151_v40 = vpop.eup %2150 }
 0x216   : > { %v2153_v13 = vpop.eup %2152  ;;  %v2625_v45 = vsel %vm801_vm14, %v2151_v40, 0.0 }
 0x217   : > { %v2629_v43 = vsel %vm802_vm15, %v2153_v13, 0.0 }
 0x269   : > { %v878_v47 = vpop.xlane.xlu1 %877 }
 0x26a   : > { %vm879_vm0 = vcmp.eq.f32.partialorder %v2531_v6, %v878_v47  ;;  %v884_v10 = vcvt.f32.s32 %v878_v47 }
 0x26b   : > { %v880_v49 = vsel %vm879_vm0, %v875_v31, inf }
 0x26c   : > { %881 = vmin.xlane.f32.xlu1 %v880_v49  ;;  %v885_v15 = vshll.u32 %v884_v10, 16 }
 0x271   : > { %v864_v48 = vpop.xlane.xlu0 %863 }
 0x272   : > { %vm865_vm1 = vcmp.eq.f32.partialorder %v2541_v37, %v864_v48  ;;  %v915_v37 = vand.u32 65535, %v2581_v53  ;;  %v870_v18 = vcvt.f32.s32 %v864_v48 }
 0x273   : > { %v866_v54 = vsel %vm865_vm1, %v861_v52, inf }
 0x274   : > { %867 = vmin.xlane.f32.xlu0 %v866_v54  ;;  %v917_v62 = vcvt.s32.f32 %v915_v37 }
 0x276   : > { %v892_v3 = vpop.xlane.xlu0 %891 }
 0x277   : > { %vm893_vm2 = vcmp.eq.f32.partialorder %v2561_v38, %v892_v3  ;;  %v929_v38 = vand.u32 65535, %v2602_v51  ;;  %v898_v40 = vcvt.f32.s32 %v892_v3 }
 0x278   : > { %v894_v14 = vsel %vm893_vm2, %v889_v55, inf }
 0x279   : > { %895 = vmin.xlane.f32.xlu0 %v894_v14  ;;  %v906_v6 = vpop.xlane.xlu1 %905  ;;  %v931_v4 = vcvt.s32.f32 %v929_v38  ;;  %v899_v49 = vshll.u32 %v898_v40, 16 }
 0x27a   : > { %vm907_vm3 = vcmp.eq.f32.partialorder %v2566_v42, %v906_v6  ;;  %v957_v42 = vand.u32 65535, %v2615_v21  ;;  %v912_v25 = vcvt.f32.s32 %v906_v6 }
 0x27b   : > { %v908_v60 = vsel %vm907_vm3, %v903_v59, inf }
 0x27c   : > { %909 = vmin.xlane.f32.xlu1 %v908_v60  ;;  %v913_v3 = vshll.u32 %v912_v25, 16 }
 0x285   : > { %v2640_v61 = vpop.xlane.xlu0 %919 }
 0x286   : > { %vm921_vm4 = vcmp.eq.f32.partialorder %v2588_v57, %v2640_v61  ;;  %v959_v57 = vcvt.s32.f32 %v957_v42 }
 0x287   : > { %v922_v0 = vsel %vm921_vm4, %v917_v62, inf }
 0x288   : > { %923 = vmin.xlane.f32.xlu0 %v922_v0 }
 0x297   : > { %v2646_v2 = vpop.xlane.xlu1 %933 }
 0x298   : > { %vm935_vm5 = vcmp.eq.f32.partialorder %v932_v24, %v2646_v2  ;;  %v940_v40 = vcvt.f32.s32 %v2646_v2 }
 0x299   : > { %v936_v5 = vsel %vm935_vm5, %v931_v4, inf }
 0x29a   : > { %937 = vmin.xlane.f32.xlu1 %v936_v5  ;;  %v2650_v7 = vpop.xlane.xlu0 %947 }
 0x29b   : > { %v2652_v44 = vpop.xlane.xlu1 %961  ;;  %vm949_vm6 = vcmp.eq.f32.partialorder %v946_v32, %v2650_v7  ;;  %v871_v32 = vshll.u32 %v870_v18, 16 }
 0x29c   : > { %v950_v9 = vsel %vm949_vm6, %v945_v8, inf  ;;  %vm963_vm7 = vcmp.eq.f32.partialorder %v960_v33, %v2652_v44 }
 0x29d   : > { %951 = vmin.xlane.f32.xlu0 %v950_v9  ;;  %v964_v50 = vsel %vm963_vm7, %v959_v57, inf }
 0x29e   : > { %965 = vmin.xlane.f32.xlu1 %v964_v50 }
 0x2f9   : > { %v882_v11 = vpop.xlane.xlu1 %881 }
 0x2fa   : > { %v883_v39 = vcvt.f32.s32 %v882_v11 }
 0x2fc   : > { %v886_v19 = vadd.s32 %v885_v15, %v883_v39 }
 0x2fe   : > { %vm972_vm8 = vcmp.eq.s32.totalorder %v2528_v63, %v886_v19  ;;  %v980_v24 = vand.u32 4294967168, %v886_v19 }
 0x2ff   : > { %v2660_v26 = vsel %vm972_vm8, 2139095040, %v2528_v63  ;;  %v926_v63 = vcvt.f32.s32 %v2640_v61 }
 0x300   : > { %v996_v27 = vadd.f32 1e-08, %v980_v24  ;;  %v1050_v28 = vshra.s32 %v2660_v26, 16 }
 0x301   : > { %v868_v29 = vpop.xlane.xlu0 %867  ;;  %v927_v11 = vshll.u32 %v926_v63, 16 }
 0x302   : > { %2154 = vrcp.f32 %v996_v27  ;;  %v869_v33 = vcvt.f32.s32 %v868_v29  ;;  %v2663_v34 = vcvt.s32.f32 %v1050_v28 }
 0x304   : > { %v872_v13 = vadd.s32 %v871_v32, %v869_v33  ;;  %1053 = vmin.xlane.f32.xlu1 %v2663_v34 }
 0x306   : > { %vm971_vm9 = vcmp.eq.s32.totalorder %v2538_v16, %v872_v13  ;;  %v979_v47 = vand.u32 4294967168, %v872_v13  ;;  %v896_v31 = vpop.xlane.xlu0 %895 }
 0x307   : > { %v897_v23 = vcvt.f32.s32 %v896_v31  ;;  %v2670_v48 = vsel %vm971_vm9, 2139095040, %v2538_v16  ;;  %v968_v31 = vcvt.f32.s32 %v2652_v44 }
 0x308   : > { %v995_v52 = vadd.f32 1e-08, %v979_v47  ;;  %v1036_v12 = vshra.s32 %v2670_v48, 16  ;;  %v941_v47 = vshll.u32 %v940_v40, 16 }
 0x309   : > { %v900_v54 = vadd.s32 %v899_v49, %v897_v23  ;;  %v910_v22 = vpop.xlane.xlu1 %909  ;;  %v969_v2 = vshll.u32 %v968_v31, 16 }
 0x30a   : > { %2156 = vrcp.f32 %v995_v52  ;;  %v911_v55 = vcvt.f32.s32 %v910_v22  ;;  %v2673_v14 = vcvt.s32.f32 %v1036_v12 }
 0x30b   : > { %vm973_vm10 = vcmp.eq.s32.totalorder %v2547_v30, %v900_v54  ;;  %v981_v6 = vand.u32 4294967168, %v900_v54 }
 0x30c   : > { %v2155_v59 = vpop.eup %2154  ;;  %v914_v60 = vadd.s32 %v913_v3, %v911_v55  ;;  %1039 = vmin.xlane.f32.xlu0 %v2673_v14  ;;  %v2680_v37 = vsel %vm973_vm10, 2139095040, %v2547_v30 }
 0x30d   : > { %v997_v62 = vadd.f32 1e-08, %v981_v6  ;;  %v1064_v0 = vshra.s32 %v2680_v37, 16  ;;  %v1012_v38 = vsel %vm972_vm8, %v2155_v59, 0.0 }
 0x30e   : > { %vm974_vm11 = vcmp.eq.s32.totalorder %v2559_v58, %v914_v60  ;;  %v982_v1 = vand.u32 4294967168, %v914_v60  ;;  %v2687_v4 = vadd.f32 %v1012_v38, %v2553_v35 }
 0x30f   : > { %2158 = vrcp.f32 %v997_v62  ;;  %v2689_v42 = vcvt.s32.f32 %v1064_v0  ;;  %v2694_v5 = vsel %vm974_vm11, 2139095040, %v2559_v58 }
 0x310   : > { %v998_v8 = vadd.f32 1e-08, %v982_v1  ;;  %v1078_v57 = vshra.s32 %v2694_v5, 16 }
 0x311   : > { %1067 = vmin.xlane.f32.xlu0 %v2689_v42 }
 0x312   : > { %2160 = vrcp.f32 %v998_v8  ;;  %v2699_v9 = vcvt.s32.f32 %v1078_v57 }
 0x314   : > { %v2157_v35 = vpop.eup %2156  ;;  %1081 = vmin.xlane.f32.xlu1 %v2699_v9 }
 0x315   : > { %v924_v50 = vpop.xlane.xlu0 %923  ;;  %v1011_v10 = vsel %vm971_vm9, %v2157_v35, 0.0 }
 0x316   : > { %v925_v15 = vcvt.f32.s32 %v924_v50  ;;  %v2705_v39 = vadd.f32 %v1011_v10, %v2571_v46 }
 0x318   : > { %v928_v19 = vadd.s32 %v927_v11, %v925_v15 }
 0x319   : > { %v2159_v18 = vpop.eup %2158 }
 0x31a   : > { %vm975_vm12 = vcmp.eq.s32.totalorder %v2581_v53, %v928_v19  ;;  %v983_v61 = vand.u32 4294967168, %v928_v19  ;;  %v1013_v24 = vsel %vm973_vm10, %v2159_v18, 0.0 }
 0x31b   : > { %v2713_v27 = vsel %vm975_vm12, 2139095040, %v2581_v53  ;;  %v2716_v16 = vadd.f32 %v1013_v24, %v2576_v41  ;;  %v954_v41 = vcvt.f32.s32 %v2650_v7 }
 0x31c   : > { %v2161_v28 = vpop.eup %2160  ;;  %v999_v29 = vadd.f32 1e-08, %v983_v61  ;;  %v1092_v46 = vshra.s32 %v2713_v27, 16 }
 0x31d   : > { %v1014_v32 = vsel %vm974_vm11, %v2161_v28, 0.0  ;;  %v955_v12 = vshll.u32 %v954_v41, 16  ;;  %v1077_v41 = vand.u32 65535, %v2694_v5 }
 0x31e   : > { %2162 = vrcp.f32 %v999_v29  ;;  %v2721_v33 = vcvt.s32.f32 %v1092_v46  ;;  %v2724_v30 = vadd.f32 %v1014_v32, %v2586_v56 }
 0x31f   : > { %v1079_v31 = vcvt.s32.f32 %v1077_v41 }
 0x320   : > { %1095 = vmin.xlane.f32.xlu0 %v2721_v33 }
 0x327   : > { %v938_v13 = vpop.xlane.xlu1 %937 }
 0x328   : > { %v2163_v25 = vpop.eup %2162  ;;  %v939_v49 = vcvt.f32.s32 %v938_v13 }
 0x329   : > { %v1015_v58 = vsel %vm975_vm12, %v2163_v25, 0.0 }
 0x32a   : > { %v942_v23 = vadd.s32 %v941_v47, %v939_v49  ;;  %v952_v52 = vpop.xlane.xlu0 %951  ;;  %v2733_v56 = vadd.f32 %v1015_v58, %v2596_v20  ;;  %v1091_v49 = vand.u32 65535, %v2713_v27  ;;  %v2115_v58 = vld [vmem:[%s2408_s15] sm:$0xff]  }
 0x32b   : > { %v953_v54 = vcvt.f32.s32 %v952_v52  ;;  %v966_v22 = vpop.xlane.xlu1 %965  ;;  %1962 = vmatprep.subr.bf16.mxu0 %v2115_v58  ;;  %v2116_v52 = vld [vmem:[%s2408_s15 + $0x8] sm:$0xff]  }
 0x32c   : > { %vm976_vm13 = vcmp.eq.s32.totalorder %v2602_v51, %v942_v23  ;;  %v984_v7 = vand.u32 4294967168, %v942_v23  ;;  %v967_v3 = vcvt.f32.s32 %v966_v22  ;;  %1963 = vmatpush3.bf16.msra.mxu0 %v2115_v58  ;;  %v2119_v22 = vld [vmem:[%s2408_s15 + $0x20] sm:$0xff]  }
 0x32d   : > { %v956_v55 = vadd.s32 %v955_v12, %v953_v54  ;;  %v2739_v44 = vsel %vm976_vm13, 2139095040, %v2602_v51  ;;  %v1049_v51 = vand.u32 65535, %v2660_v26  ;;  %1964 = vmatprep.subr.bf16.mxu0 %v2116_v52  ;;  %v2118_v54 = vld [vmem:[%s2408_s15 + $0x18] sm:$0xff]  }
 0x32e   : > { %v1000_v53 = vadd.f32 1e-08, %v984_v7  ;;  %v970_v6 = vadd.s32 %v969_v2, %v967_v3  ;;  %v1106_v59 = vshra.s32 %v2739_v44, 16  ;;  %v1105_v2 = vand.u32 65535, %v2739_v44  ;;  %v2120_v7 = vld [vmem:[%s2408_s15 + $0x28] sm:$0xff]  }
 0x32f   : > { %vm977_vm14 = vcmp.eq.s32.totalorder %v2610_v17, %v956_v55  ;;  %v985_v20 = vand.u32 4294967168, %v956_v55 }
 0x330   : > { %2164 = vrcp.f32 %v1000_v53  ;;  %vm978_vm15 = vcmp.eq.s32.totalorder %v2615_v21, %v970_v6  ;;  %v986_v60 = vand.u32 4294967168, %v970_v6  ;;  %v2744_v62 = vcvt.s32.f32 %v1106_v59  ;;  %1965 = vmatpush3.bf16.msra.mxu0 %v2116_v52  ;;  %v2121_v59 = vld [vmem:[%s2408_s15 + $0x30] sm:$0xff]  }
 0x331   : > { %v1001_v0 = vadd.f32 1e-08, %v985_v20  ;;  %v2749_v38 = vsel %vm977_vm14, 2139095040, %v2610_v17  ;;  %v2754_v1 = vsel %vm978_vm15, 2139095040, %v2615_v21  ;;  %v1035_v17 = vand.u32 65535, %v2670_v48 }
 0x332   : > { %v1002_v8 = vadd.f32 1e-08, %v986_v60  ;;  %1109 = vmin.xlane.f32.xlu1 %v2744_v62  ;;  %v1120_v57 = vshra.s32 %v2749_v38, 16  ;;  %v1134_v63 = vshra.s32 %v2754_v1, 16  ;;  %v1063_v21 = vand.u32 65535, %v2680_v37 }
 0x333   : > { %2166 = vrcp.f32 %v1001_v0  ;;  %v1037_v40 = vcvt.s32.f32 %v1035_v17  ;;  %v1107_v3 = vcvt.s32.f32 %v1105_v2  ;;  %v1119_v55 = vand.u32 65535, %v2749_v38 }
 0x334   : > { %2168 = vrcp.f32 %v1002_v8  ;;  %v2759_v35 = vcvt.s32.f32 %v1120_v57  ;;  %v2761_v50 = vcvt.s32.f32 %v1134_v63  ;;  %v1133_v53 = vand.u32 65535, %v2754_v1  ;;  %v2122_v63 = vld [vmem:[%s2408_s15 + $0x38] sm:$0xff]  }
 0x335   : > { %v1121_v0 = vcvt.s32.f32 %v1119_v55 }
 0x336   : > { %1123 = vmin.xlane.f32.xlu0 %v2759_v35  ;;  %1137 = vmin.xlane.f32.xlu1 %v2761_v50  ;;  %v1135_v8 = vcvt.s32.f32 %v1133_v53 }
 0x33a   : > { %v2165_v10 = vpop.eup %2164 }
 0x33b   : > { %v1016_v11 = vsel %vm976_vm13, %v2165_v10, 0.0 }
 0x33c   : > { %v2768_v15 = vadd.f32 %v1016_v11, %v2621_v36  ;;  %v1051_v36 = vcvt.s32.f32 %v1049_v51 }
 0x33d   : > { %v2167_v19 = vpop.eup %2166 }
 0x33e   : > { %v2169_v18 = vpop.eup %2168  ;;  %v1017_v61 = vsel %vm977_vm14, %v2167_v19, 0.0 }
 0x33f   : > { %v2773_v24 = vadd.f32 %v1017_v61, %v2625_v45  ;;  %v1018_v28 = vsel %vm978_vm15, %v2169_v18, 0.0 }
 0x340   : > { %v2778_v29 = vadd.f32 %v1018_v28, %v2629_v43 }
 0x391   : > { %v2781_v46 = vpop.xlane.xlu1 %1053 }
 0x392   : > { %vm1055_vm0 = vcmp.eq.f32.partialorder %v2663_v34, %v2781_v46  ;;  %v1065_v34 = vcvt.s32.f32 %v1063_v21  ;;  %v1060_v10 = vcvt.f32.s32 %v2781_v46 }
 0x393   : > { %v1056_v32 = vsel %vm1055_vm0, %v1051_v36, inf  ;;  %vm1389_vm0 = vcmask 130048  }
 0x394   : > { %1057 = vmin.xlane.f32.xlu1 %v1056_v32  ;;  %v1061_v19 = vshll.u32 %v1060_v10, 16 }
 0x399   : > { %v2786_v45 = vpop.xlane.xlu0 %1039 }
 0x39a   : > { %vm1041_vm1 = vcmp.eq.f32.partialorder %v2673_v14, %v2786_v45 }
 0x39b   : > { %v1042_v43 = vsel %vm1041_vm1, %v1037_v40, inf  ;;  %vm1479_vm1 = vcmask 261120  }
 0x39c   : > { %1043 = vmin.xlane.f32.xlu0 %v1042_v43 }
 0x39e   : > { %v2792_v13 = vpop.xlane.xlu0 %1067 }
 0x39f   : > { %vm1069_vm2 = vcmp.eq.f32.partialorder %v2689_v42, %v2792_v13  ;;  %v1093_v42 = vcvt.s32.f32 %v1091_v49  ;;  %v1074_v17 = vcvt.f32.s32 %v2792_v13 }
 0x3a0   : > { %v1070_v25 = vsel %vm1069_vm2, %v1065_v34, inf }
 0x3a1   : > { %1071 = vmin.xlane.f32.xlu0 %v1070_v25  ;;  %v2796_v47 = vpop.xlane.xlu1 %1081  ;;  %v1075_v46 = vshll.u32 %v1074_v17, 16 }
 0x3a2   : > { %vm1083_vm3 = vcmp.eq.f32.partialorder %v2699_v9, %v2796_v47  ;;  %v2117_v9 = vld [vmem:[%s2408_s15 + $0x10] sm:$0xff]   ;;  %v1088_v21 = vcvt.f32.s32 %v2796_v47  ;;  %s427_s15 = scalar_lea.vmem %s2960_s2, %s1924_s27 }
 0x3a3   : > { %v1084_v14 = vsel %vm1083_vm3, %v1079_v31, inf  ;;  %1966 = vmatprep.subr.bf16.mxu0 %v2117_v9 }
 0x3a4   : > { %1085 = vmin.xlane.f32.xlu1 %v1084_v14  ;;  %1967 = vmatpush3.bf16.msra.mxu0 %v2117_v9  ;;  %v1089_v49 = vshll.u32 %v1088_v21, 16 }
 0x3a5   : > { %1968 = vmatprep.subr.bf16.mxu0 %v2118_v54 }
 0x3a8   : > { %1969 = vmatpush3.bf16.msra.mxu0 %v2118_v54 }
 0x3a9   : > { %1970 = vmatprep.subr.bf16.mxu0 %v2119_v22 }
 0x3ac   : > { %1971 = vmatpush3.bf16.msra.mxu0 %v2119_v22 }
 0x3ad   : > { %v2802_v23 = vpop.xlane.xlu0 %1095  ;;  %1972 = vmatprep.subr.bf16.mxu0 %v2120_v7 }
 0x3ae   : > { %vm1097_vm4 = vcmp.eq.f32.partialorder %v2721_v33, %v2802_v23  ;;  %v1102_v22 = vcvt.f32.s32 %v2802_v23 }
 0x3af   : > { %v1098_v12 = vsel %vm1097_vm4, %v1093_v42, inf }
 0x3b0   : > { %1099 = vmin.xlane.f32.xlu0 %v1098_v12  ;;  %1973 = vmatpush3.bf16.msra.mxu0 %v2120_v7  ;;  %v1103_v55 = vshll.u32 %v1102_v22, 16 }
 0x3b1   : > { %1974 = vmatprep.subr.bf16.mxu0 %v2121_v59 }
 0x3b4   : > { %1975 = vmatpush3.bf16.msra.mxu0 %v2121_v59 }
 0x3b5   : > { %1976 = vmatprep.subr.bf16.mxu0 %v2122_v63 }
 0x3b8   : > { %1977 = vmatpush3.bf16.msra.mxu0 %v2122_v63 }
 0x3bf   : > { %v2812_v33 = vpop.xlane.xlu1 %1109 }
 0x3c0   : > { %vm1111_vm5 = vcmp.eq.f32.partialorder %v2744_v62, %v2812_v33  ;;  %v1116_v10 = vcvt.f32.s32 %v2812_v33 }
 0x3c1   : > { %v1112_v6 = vsel %vm1111_vm5, %v1107_v3, inf }
 0x3c2   : > { %1113 = vmin.xlane.f32.xlu1 %v1112_v6 }
 0x3c3   : > { %v2819_v20 = vpop.xlane.xlu0 %1123  ;;  %v2821_v60 = vpop.xlane.xlu1 %1137 }
 0x3c4   : > { %vm1125_vm6 = vcmp.eq.f32.partialorder %v2759_v35, %v2819_v20  ;;  %vm1139_vm7 = vcmp.eq.f32.partialorder %v2761_v50, %v2821_v60  ;;  %v1046_v35 = vcvt.f32.s32 %v2786_v45 }
 0x3c5   : > { %v1126_v62 = vsel %vm1125_vm6, %v1121_v0, inf  ;;  %v1140_v57 = vsel %vm1139_vm7, %v1135_v8, inf }
 0x3c6   : > { %1127 = vmin.xlane.f32.xlu0 %v1126_v62  ;;  %1141 = vmin.xlane.f32.xlu1 %v1140_v57  ;;  %v1047_v36 = vshll.u32 %v1046_v35, 16 }
 0x421   : > { %v1058_v11 = vpop.xlane.xlu1 %1057 }
 0x422   : > { %v1059_v18 = vcvt.f32.s32 %v1058_v11 }
 0x424   : > { %v1062_v61 = vadd.s32 %v1061_v19, %v1059_v18  ;;  %v1117_v18 = vshll.u32 %v1116_v10, 16 }
 0x426   : > { %v1156_v28 = vand.u32 4294967168, %v1062_v61  ;;  %vm1148_vm8 = vcmp.eq.s32.totalorder %v2660_v26, %v1062_v61 }
 0x428   : > { %v1172_v51 = vadd.f32 1e-08, %v1156_v28 }
 0x429   : > { %v1044_v50 = vpop.xlane.xlu0 %1043 }
 0x42a   : > { %2170 = vrcp.f32 %v1172_v51  ;;  %v1045_v32 = vcvt.f32.s32 %v1044_v50 }
 0x42c   : > { %v1048_v40 = vadd.s32 %v1047_v36, %v1045_v32 }
 0x42e   : > { %v1155_v43 = vand.u32 4294967168, %v1048_v40  ;;  %v1072_v41 = vpop.xlane.xlu0 %1071  ;;  %vm1147_vm9 = vcmp.eq.s32.totalorder %v2670_v48, %v1048_v40 }
 0x42f   : > { %v1073_v34 = vcvt.f32.s32 %v1072_v41 }
 0x430   : > { %v1171_v25 = vadd.f32 1e-08, %v1155_v43 }
 0x431   : > { %v1076_v31 = vadd.s32 %v1075_v46, %v1073_v34  ;;  %v1086_v14 = vpop.xlane.xlu1 %1085 }
 0x432   : > { %2172 = vrcp.f32 %v1171_v25  ;;  %v1087_v45 = vcvt.f32.s32 %v1086_v14 }
 0x433   : > { %v1157_v58 = vand.u32 4294967168, %v1076_v31  ;;  %vm1149_vm10 = vcmp.eq.s32.totalorder %v2680_v37, %v1076_v31  ;;  %v1130_v37 = vcvt.f32.s32 %v2819_v20 }
 0x434   : > { %v2171_v42 = vpop.eup %2170  ;;  %v1090_v52 = vadd.s32 %v1089_v49, %v1087_v45 }
 0x435   : > { %v1173_v12 = vadd.f32 1e-08, %v1157_v58  ;;  %v1188_v13 = vsel %vm1148_vm8, %v2171_v42, 0.0 }
 0x436   : > { %v1158_v9 = vand.u32 4294967168, %v1090_v52  ;;  %v1196_v47 = vadd.f32 %v1188_v13, %v2687_v4  ;;  %vm1150_vm11 = vcmp.eq.s32.totalorder %v2694_v5, %v1090_v52  ;;  %v2128_v52 = vld [vmem:[%s427_s15] sm:$0xff]  }
 0x437   : > { %2174 = vrcp.f32 %v1173_v12  ;;  %v2129_v12 = vld [vmem:[%s427_s15 + $0x8] sm:$0xff]   ;;  %v2130_v13 = vld [vmem:[%s2965_s7] sm:$0xff]  }
 0x438   : > { %v1174_v54 = vadd.f32 1e-08, %v1158_v9  ;;  %1205 = vadd.xlane.f32.xlu1 %v1196_v47 }
 0x43a   : > { %2176 = vrcp.f32 %v1174_v54 }
 0x43c   : > { %v2173_v2 = vpop.eup %2172 }
 0x43d   : > { %v1100_v7 = vpop.xlane.xlu0 %1099  ;;  %v1187_v3 = vsel %vm1147_vm9, %v2173_v2, 0.0 }
 0x43e   : > { %v1101_v53 = vcvt.f32.s32 %v1100_v7  ;;  %v1195_v26 = vadd.f32 %v1187_v3, %v2705_v39 }
 0x440   : > { %v1104_v6 = vadd.s32 %v1103_v55, %v1101_v53  ;;  %1203 = vadd.xlane.f32.xlu0 %v1195_v26  ;;  %v1227_v59 = vpack.c.bf16 %v1196_v47, %v1195_v26 }
 0x441   : > { %v2175_v0 = vpop.eup %2174 }
 0x442   : > { %v1159_v4 = vand.u32 4294967168, %v1104_v6  ;;  %1978 = vmatprep.mubr.bf16.mxu0 %v1227_v59  ;;  %v1189_v8 = vsel %vm1149_vm10, %v2175_v0, 0.0  ;;  %vm1151_vm12 = vcmp.eq.s32.totalorder %v2713_v27, %v1104_v6 }
 0x443   : > { %v1197_v23 = vadd.f32 %v1189_v8, %v2716_v16  ;;  %v1144_v16 = vcvt.f32.s32 %v2821_v60 }
 0x444   : > { %v2177_v62 = vpop.eup %2176  ;;  %v1175_v57 = vadd.f32 1e-08, %v1159_v4 }
 0x445   : > { %1207 = vadd.xlane.f32.xlu0 %v1197_v23  ;;  %v1190_v48 = vsel %vm1150_vm11, %v2177_v62, 0.0  ;;  %v1145_v36 = vshll.u32 %v1144_v16, 16 }
 0x446   : > { %2178 = vrcp.f32 %v1175_v57  ;;  %v1198_v39 = vadd.f32 %v1190_v48, %v2724_v30  ;;  %v1131_v30 = vshll.u32 %v1130_v37, 16  ;;  %v2131_v48 = vld [vmem:[%s2965_s7 + $0x8] sm:$0xff]  }
 0x448   : > { %1209 = vadd.xlane.f32.xlu1 %v1198_v39  ;;  %v1228_v63 = vpack.c.bf16 %v1198_v39, %v1197_v23  ;;  %v2132_v39 = vld [vmem:[%s2965_s7 + $0x10] sm:$0xff]  }
 0x44a   : > { %1979 = vmatmul.mubr.bf16.vlgmr.msra.gmra.mrb[0].mxu0 %v1228_v63  ;;  %v2133_v63 = vld [vmem:[%s2965_s7 + $0x18] sm:$0xff]  }
 0x44f   : > { %v1114_v11 = vpop.xlane.xlu1 %1113 }
 0x450   : > { %v2179_v19 = vpop.eup %2178  ;;  %v1115_v61 = vcvt.f32.s32 %v1114_v11  ;;  %v2134_v11 = vld [vmem:[%s2965_s7 + $0x20] sm:$0xff]  }
 0x451   : > { %v1191_v5 = vsel %vm1151_vm12, %v2179_v19, 0.0 }
 0x452   : > { %v1118_v35 = vadd.s32 %v1117_v18, %v1115_v61  ;;  %v1199_v28 = vadd.f32 %v1191_v5, %v2733_v56 }
 0x453   : > { %v1128_v51 = vpop.xlane.xlu0 %1127  ;;  %v1142_v50 = vpop.xlane.xlu1 %1141 }
 0x454   : > { %v1160_v32 = vand.u32 4294967168, %v1118_v35  ;;  %v1129_v33 = vcvt.f32.s32 %v1128_v51  ;;  %v1143_v17 = vcvt.f32.s32 %v1142_v50  ;;  %1211 = vadd.xlane.f32.xlu0 %v1199_v28  ;;  %vm1152_vm13 = vcmp.eq.s32.totalorder %v2739_v44, %v1118_v35 }
 0x456   : > { %v1176_v20 = vadd.f32 1e-08, %v1160_v32  ;;  %v1132_v40 = vadd.s32 %v1131_v30, %v1129_v33  ;;  %v1146_v21 = vadd.s32 %v1145_v36, %v1143_v17 }
 0x458   : > { %2180 = vrcp.f32 %v1176_v20  ;;  %v1161_v60 = vand.u32 4294967168, %v1132_v40  ;;  %v1162_v43 = vand.u32 4294967168, %v1146_v21  ;;  %vm1153_vm14 = vcmp.eq.s32.totalorder %v2749_v38, %v1132_v40  ;;  %v2124_v38 = vld [vmem:[%s427_s15 + $0x10] sm:$0xff]  }
 0x459   : > { %vm1154_vm15 = vcmp.eq.s32.totalorder %v2754_v1, %v1146_v21  ;;  %v2125_v1 = vld [vmem:[%s427_s15 + $0x18] sm:$0xff]   ;;  %1992 = vmatprep.mubr.msk.bf16.mxu1 %vm1389_vm0, %v2124_v38  ;;  %s2202_s15 = scalar_lea.vmem %s2908_s26, 1024 }
 0x45a   : > { %v1177_v41 = vadd.f32 1e-08, %v1161_v60  ;;  %v1178_v27 = vadd.f32 1e-08, %v1162_v43  ;;  %v2135_v60 = vld [vmem:[%s2965_s7 + $0x28] sm:$0xff]   ;;  %p2203_p12 = scmp.ne.s32.totalorder %s2908_s26, %s2202_s15  ;;  %p2210_p2 = scmp.lt.s32.totalorder %s2208_s24, %s2202_s15 }
 0x45c   : > { %2182 = vrcp.f32 %v1177_v41  ;;  %p2204_p13 = pnand %p2203_p12, %p2378_p4  ;;  %p2211_p3 = por %p2210_p2, %p2209_p1 }
 0x45d   : > { %2184 = vrcp.f32 %v1178_v27 }
 0x45e   : > { %p2205_p0 = pneg %p2204_p13 }
 0x460   : > { %p2212_p5 = pnand %p2211_p3, %p2205_p0 }
 0x462   : > { %v2181_v46 = vpop.eup %2180 }
 0x463   : > { %v1192_v56 = vsel %vm1152_vm13, %v2181_v46, 0.0  ;;  %v2136_v46 = vld [vmem:[%s2965_s7 + $0x30] sm:$0xff]  }
 0x464   : > { %v1200_v34 = vadd.f32 %v1192_v56, %v2768_v15  ;;  %v2123_v15 = vld [vmem:[%s2963_s5] sm:$0xff]   ;;  %v2137_v56 = vld [vmem:[%s2965_s7 + $0x38] sm:$0xff]  }
 0x465   : > { %2032 = vmatprep.subr.bf16.mxu1 %v2123_v15  ;;  %1986 = vmatprep.subr.bf16.mxu0 %v2123_v15 }
 0x466   : > { %v2183_v25 = vpop.eup %2182  ;;  %1213 = vadd.xlane.f32.xlu1 %v1200_v34  ;;  %v1229_v31 = vpack.c.bf16 %v1200_v34, %v1199_v28  ;;  %2033 = vmatpush3.bf16.msra.mxu1 %v2123_v15  ;;  %v1908_v34 = vld [vmem:[%s2964_s6] ss:$0 sm:$0xff] }
 0x467   : > { %v2185_v14 = vpop.eup %2184  ;;  %v1193_v49 = vsel %vm1153_vm14, %v2183_v25, 0.0  ;;  %1987 = vmatpush3.bf16.msra.mxu0 %v2123_v15 }
 0x468   : > { %1982 = vmatprep.mubr.bf16.mxu0 %v1229_v31  ;;  %v1201_v45 = vadd.f32 %v1193_v49, %v2773_v24  ;;  %v1194_v58 = vsel %vm1154_vm15, %v2185_v14, 0.0  ;;  %v2126_v24 = vld [vmem:[%s2962_s4] sm:$0xff]  }
 0x469   : > { %v1202_v42 = vadd.f32 %v1194_v58, %v2778_v29  ;;  %1993 = vmatmul.mubr.msk.bf16.vlgmr.msra.gmra.mrb[0].mxu1 %vm1389_vm0, %v2125_v1  ;;  %1996 = vmatprep.subr.bf16.mxu1 %v2126_v24  ;;  %v2127_v29 = vld [vmem:[%s2962_s4 + $0x8] sm:$0xff]  }
 0x46a   : > { %1215 = vadd.xlane.f32.xlu0 %v1201_v45  ;;  %1997 = vmatpush3.bf16.msra.mxu1 %v2126_v24 }
 0x46b   : > { %1217 = vadd.xlane.f32.xlu1 %v1202_v42  ;;  %v1230_v44 = vpack.c.bf16 %v1202_v42, %v1201_v45  ;;  %1998 = vmatprep.subr.bf16.mxu1 %v2127_v29 }
 0x46d   : > { %1983 = vmatmul.mubr.bf16.gmra.mrb[4].mxu0 %v1230_v44 }
 0x46e   : > { %1988 = vmatprep.mubr.msk.bf16.mxu0 %vm1389_vm0, %v2128_v52  ;;  %1999 = vmatpush3.bf16.msra.mxu1 %v2127_v29 }
 0x46f   : > { %2008 = vmatprep.subr.bf16.mxu1 %v2130_v13 }
 0x475   : > { %1989 = vmatmul.mubr.msk.bf16.vlgmr.msra.gmra.mrb[8].mxu0 %vm1389_vm0, %v2129_v12 }
 0x4c5   : > { %v1206_v47 = vpop.xlane.xlu1 %1205 }
 0x4c6   : > { %2186 = vrcp.f32 %v1206_v47 }
 0x4cd   : > { %v1204_v9 = vpop.xlane.xlu0 %1203 }
 0x4d0   : > { %v2187_v2 = vpop.eup %2186 }
 0x4d2   : > { %v1208_v54 = vpop.xlane.xlu0 %1207 }
 0x4d3   : > { %2188 = vrcp.f32 %v1208_v54 }
 0x4d5   : > { %v1210_v22 = vpop.xlane.xlu1 %1209 }
 0x4d6   : > { %2190 = vrcp.f32 %v1210_v22 }
 0x4d7   : > { %2192 = vrcp.f32 %v1204_v9 }
 0x4dd   : > { %v2189_v3 = vpop.eup %2188 }
 0x4e0   : > { %v2191_v53 = vpop.eup %2190 }
 0x4e1   : > { %v2193_v6 = vpop.eup %2192  ;;  %v1212_v37 = vpop.xlane.xlu0 %1211 }
 0x4e2   : > { %2194 = vrcp.f32 %v1212_v37 }
 0x4ec   : > { %v2195_v16 = vpop.eup %2194 }
 0x4f3   : > { %v1214_v10 = vpop.xlane.xlu1 %1213 }
 0x4f7   : > { %v1216_v19 = vpop.xlane.xlu0 %1215 }
 0x4f8   : > { %v1218_v18 = vpop.xlane.xlu1 %1217  ;;  %2196 = vrcp.f32 %v1216_v19 }
 0x4f9   : > { %2198 = vrcp.f32 %v1218_v18 }
 0x4fa   : > { %2200 = vrcp.f32 %v1214_v10 }
 0x502   : > { %v2197_v5 = vpop.eup %2196 }
 0x503   : > { %v2199_v28 = vpop.eup %2198 }
 0x504   : > { %v2201_v51 = vpop.eup %2200 }
 0x51d   : > { %v1980_v7 = vpop.f32.mrb[0].mxu0 }
 0x51e   : > { %v1313_v55 = vpop.f32.mrb[1].mxu0  ;;  %v1346_v59 = vmul.f32 %v2189_v3, %v1980_v7 }
 0x51f   : > { %v1981_v26 = vpop.f32.mrb[2].mxu0  ;;  %v1344_v8 = vmul.f32 %v2193_v6, %v1313_v55 }
 0x520   : > { %v1347_v0 = vmul.f32 %v2191_v53, %v1981_v26  ;;  %v1316_v4 = vpop.f32.mrb[3].mxu0 }
 0x521   : > { %v1345_v23 = vmul.f32 %v2187_v2, %v1316_v4 }
 0x522   : > { %v1360_v62 = vpack.c.bf16 %v1347_v0, %v1346_v59 }
 0x523   : > { %v1359_v57 = vpack.c.bf16 %v1345_v23, %v1344_v8 }
 0x525   : > { %2000 = vmatprep.mubr.msk.bf16.mxu1 %vm1479_vm1, %v1359_v57 }
 0x526   : > { %2001 = vmatmul.mubr.msk.bf16.vlgmr.msra.gmra.mrb[4].mxu1 %vm1479_vm1, %v1360_v62  ;;  %v1909_v62 = vld [vmem:[%s2966_s8] ss:$0 sm:$0xff] }
 0x527   : > { %2009 = vmatpush3.bf16.msra.mxu1 %v2130_v13 }
 0x528   : > { %2010 = vmatprep.subr.bf16.mxu1 %v2131_v48 }
 0x52b   : > { %2011 = vmatpush3.bf16.msra.mxu1 %v2131_v48 }
 0x52c   : > { %2012 = vmatprep.subr.bf16.mxu1 %v2132_v39 }
 0x52f   : > { %2013 = vmatpush3.bf16.msra.mxu1 %v2132_v39 }
 0x530   : > { %2014 = vmatprep.subr.bf16.mxu1 %v2133_v63 }
 0x533   : > { %2015 = vmatpush3.bf16.msra.mxu1 %v2133_v63 }
 0x534   : > { %2016 = vmatprep.subr.bf16.mxu1 %v2134_v11 }
 0x537   : > { %2017 = vmatpush3.bf16.msra.mxu1 %v2134_v11 }
 0x538   : > { %2018 = vmatprep.subr.bf16.mxu1 %v2135_v60 }
 0x53b   : > { %2019 = vmatpush3.bf16.msra.mxu1 %v2135_v60 }
 0x53c   : > { %2020 = vmatprep.subr.bf16.mxu1 %v2136_v46 }
 0x53f   : > { %2021 = vmatpush3.bf16.msra.mxu1 %v2136_v46 }
 0x540   : > { %v1984_v61 = vpop.f32.mrb[4].mxu0  ;;  %2022 = vmatprep.subr.bf16.mxu1 %v2137_v56 }
 0x541   : > { %v1329_v35 = vpop.f32.mrb[5].mxu0  ;;  %v1350_v50 = vmul.f32 %v2197_v5, %v1984_v61 }
 0x542   : > { %v1985_v30 = vpop.f32.mrb[6].mxu0  ;;  %v1348_v33 = vmul.f32 %v2195_v16, %v1329_v35 }
 0x543   : > { %v1351_v36 = vmul.f32 %v2199_v28, %v1985_v30  ;;  %v1332_v32 = vpop.f32.mrb[7].mxu0  ;;  %2023 = vmatpush3.bf16.msra.mxu1 %v2137_v56 }
 0x544   : > { %v1349_v17 = vmul.f32 %v2201_v51, %v1332_v32 }
 0x545   : > { %v1362_v20 = vpack.c.bf16 %v1351_v36, %v1350_v50 }
 0x546   : > { %v1361_v40 = vpack.c.bf16 %v1349_v17, %v1348_v33 }
 0x548   : > { %2004 = vmatprep.mubr.msk.bf16.mxu1 %vm1479_vm1, %v1361_v40  ;;  %v1990_v21 = vpop.f32.mrb[8].mxu0 }
 0x549   : > { %2005 = vmatmul.mubr.msk.bf16.gmra.mrb[0].mxu1 %vm1479_vm1, %v1362_v20  ;;  %v1436_v43 = vpop.f32.mrb[9].mxu0 }
 0x54a   : > { %v1991_v41 = vpop.f32.mrb[10].mxu0 }
 0x54b   : > { %v1439_v27 = vpop.f32.mrb[11].mxu0 }
 0x5f9   : > { %v2002_v25 = vpop.f32.mrb[4].mxu1 }
 0x5fa   : > { %v1535_v31 = vadd.f32 %v2002_v25, %v1990_v21  ;;  %v1526_v14 = vpop.f32.mrb[5].mxu1 }
 0x5fb   : > { %v1527_v49 = vadd.f32 %v1526_v14, %v1436_v43  ;;  %v2003_v45 = vpop.f32.mrb[6].mxu1 }
 0x5fc   : > { %v1565_v58 = vadd.f32 %v1908_v34, %v1535_v31  ;;  %v1538_v42 = vadd.f32 %v2003_v45, %v1991_v41  ;;  %v1529_v44 = vpop.f32.mrb[7].mxu1 }
 0x5fd   : > { %v1563_v15 = vadd.f32 %v1908_v34, %v1527_v49  ;;  %v1530_v38 = vadd.f32 %v1529_v44, %v1439_v27 }
 0x5fe   : > { %v1566_v1 = vadd.f32 %v1908_v34, %v1538_v42  ;;  %v1573_v29 = vmax.f32 %v1565_v58, 0.0 }
 0x5ff   : > { %v1564_v24 = vadd.f32 %v1908_v34, %v1530_v38  ;;  %v1571_v12 = vmax.f32 %v1563_v15, 0.0 }
 0x600   : > { %v1574_v52 = vmax.f32 %v1566_v1, 0.0 }
 0x601   : > { %v1572_v13 = vmax.f32 %v1564_v24, 0.0 }
 0x602   : > { %v1597_v9 = vpack.c.bf16 %v1574_v52, %v1573_v29 }
 0x603   : > { %v1596_v47 = vpack.c.bf16 %v1572_v13, %v1571_v12 }
 0x605   : > { %2024 = vmatprep.mubr.bf16.mxu1 %v1596_v47 }
 0x606   : > { %2025 = vmatmul.mubr.bf16.vlgmr.msra.gmra.mrb[8].mxu1 %v1597_v9 }
 0x61c   : > { %v2006_v54 = vpop.f32.mrb[0].mxu1 }
 0x61d   : > { %v1569_v22 = vadd.f32 %v2006_v54, %v1908_v34  ;;  %v1542_v2 = vpop.f32.mrb[1].mxu1 }
 0x61e   : > { %v1567_v7 = vadd.f32 %v1908_v34, %v1542_v2  ;;  %v2007_v3 = vpop.f32.mrb[2].mxu1 }
 0x61f   : > { %v1570_v55 = vadd.f32 %v2007_v3, %v1908_v34  ;;  %v1545_v53 = vpop.f32.mrb[3].mxu1  ;;  %v1577_v6 = vmax.f32 %v1569_v22, 0.0 }
 0x620   : > { %v1568_v26 = vadd.f32 %v1908_v34, %v1545_v53  ;;  %v1575_v0 = vmax.f32 %v1567_v7, 0.0 }
 0x621   : > { %v1578_v59 = vmax.f32 %v1570_v55, 0.0 }
 0x622   : > { %v1576_v4 = vmax.f32 %v1568_v26, 0.0 }
 0x623   : > { %v1599_v8 = vpack.c.bf16 %v1578_v59, %v1577_v6 }
 0x624   : > { %v1598_v23 = vpack.c.bf16 %v1576_v4, %v1575_v0 }
 0x626   : > { %2028 = vmatprep.mubr.bf16.mxu1 %v1598_v23 }
 0x627   : > { %2029 = vmatmul.mubr.bf16.gmra.mrb[12].mxu1 %v1599_v8 }
 0x6d9   : > { %v2026_v57 = vpop.f32.mrb[8].mxu1 }
 0x6da   : > { %v1697_v48 = vadd.f32 %v2026_v57, %v1909_v62  ;;  %v1688_v39 = vpop.f32.mrb[9].mxu1 }
 0x6db   : > { %v1689_v63 = vadd.f32 %v1909_v62, %v1688_v39  ;;  %v2027_v10 = vpop.f32.mrb[10].mxu1 }
 0x6dc   : > { %v1721_v37 = vmax.f32 %v1697_v48, 0.0  ;;  %v1700_v11 = vadd.f32 %v2027_v10, %v1909_v62  ;;  %v1691_v19 = vpop.f32.mrb[11].mxu1 }
 0x6dd   : > { %v1719_v18 = vmax.f32 %v1689_v63, 0.0  ;;  %v1692_v16 = vadd.f32 %v1909_v62, %v1691_v19 }
 0x6de   : > { %1729 = vst [vmem:[%s404_s23 + $0x10] sm:$0xff] %v1721_v37  ;;  %v1722_v61 = vmax.f32 %v1700_v11, 0.0 }
 0x6df   : > { %1727 = vst [vmem:[%s404_s23] sm:$0xff] %v1719_v18  ;;  %v1720_v5 = vmax.f32 %v1692_v16, 0.0 }
 0x6e0   : > { %1730 = vst [vmem:[%s404_s23 + $0x18] sm:$0xff] %v1722_v61 }
 0x6e1   : > { %1728 = vst [vmem:[%s404_s23 + $0x8] sm:$0xff] %v1720_v5 }
 0x6fa   : > { %v2030_v35 = vpop.f32.mrb[12].mxu1 }
 0x6fb   : > { %v1713_v28 = vadd.f32 %v2030_v35, %v1909_v62  ;;  %v1704_v30 = vpop.f32.mrb[13].mxu1 }
 0x6fc   : > { %v1705_v51 = vadd.f32 %v1909_v62, %v1704_v30  ;;  %v2031_v50 = vpop.f32.mrb[14].mxu1 }
 0x6fd   : > { %v1725_v36 = vmax.f32 %v1713_v28, 0.0  ;;  %v1716_v32 = vadd.f32 %v2031_v50, %v1909_v62  ;;  %v1707_v33 = vpop.f32.mrb[15].mxu1 }
 0x6fe   : > { %v1723_v17 = vmax.f32 %v1705_v51, 0.0  ;;  %v1708_v20 = vadd.f32 %v1909_v62, %v1707_v33 }
 0x6ff   : > { %1733 = vst [vmem:[%s404_s23 + $0x30] sm:$0xff] %v1725_v36  ;;  %v1726_v40 = vmax.f32 %v1716_v32, 0.0 }
 0x700   : > { %1731 = vst [vmem:[%s404_s23 + $0x20] sm:$0xff] %v1723_v17  ;;  %v1724_v21 = vmax.f32 %v1708_v20, 0.0 }
 0x701   : > { %1734 = vst [vmem:[%s404_s23 + $0x38] sm:$0xff] %v1726_v40 }
 0x702   : > { %1732 = vst [vmem:[%s404_s23 + $0x28] sm:$0xff] %v1724_v21 }
 0x703   : > { %2215 = shalt.err (!%p2212_p5)
}
 0x704   : > { %s2216_s16 = scalar_lea.hbm %s2906_s29, 1024  ;;  %s2220_s27 = scalar_lea.hbm %s2967_s9, 2048 }
 0x705   : > { %p2217_p6 = scmp.ne.s32.totalorder %s2906_s29, %s2216_s16  ;;  %p2221_p10 = scmp.lt.u32.totalorder %s2906_s29, %s2967_s9 }
 0x706   : > { %p2222_p11 = scmp.lt.u32.totalorder %s2220_s27, %s2216_s16  ;;  %p2224_p13 = scmp.lt.u32.totalorder %s2216_s16, %s2906_s29 }
 0x707   : > { %p2218_p7 = pnand %p2217_p6, %p2378_p4 }
 0x708   : > { %p2223_p12 = por %p2222_p11, %p2221_p10 }
 0x709   : > { %p2219_p9 = pneg %p2218_p7 }
 0x70a   : > { %p2225_p0 = por %p2224_p13, %p2223_p12 }
 0x70c   : > { %p2226_p1 = pnand %p2225_p0, %p2219_p9 }
 0x70e   : > { %2229 = shalt.err (!%p2226_p1)
}
 0x70f   : > { %s2286_s15 = smov 128   ;;  %s2287_s20 = smov 8  }
 0x710   : > { %2042 = dma.vmem_to_hbm [thread:$0]  (%p2378_p4), %s2908_s26, 1024, %s2906_s29, %s2912_s12, %s2286_s15, %s2286_s15, %s2287_s20  }
 0x711 PF: > { %p2048_p2 = scmp.ge.s32.totalorder %s2280_s14, 2  ;;  %s1766_s24 = sand.u32 1, %s2260_s30  }
 0x712   : > { %s1767_s16 = scalar_lea.sflag [#allocation3], %s1766_s24 }
 0x713   : > { %p2045_p3 = pnand %p2048_p2, %p2385_p8 }
 0x715   : > { %2255 = dma.done.wait (!%p2045_p3), %s1767_s16, 1024  }
 0x716   : > { %2257 = vsyncadd (!%p2045_p3), %s1767_s16, 4294966272  ;;  %s22_s14 = sadd.s32 1, %s2280_s14   ;;  %s2970_s30 = smov %s2264_s10 }
 0x717   : > { %p19_p5 = scmp.ge.s32.totalorder %s22_s14, 4   ;;  %s2971_s10 = smov %s2268_s11 }
 0x718   : > { %s2972_s11 = smov %s2391_s22  ;;  %s2973_s12 = smov %s2276_s13 }
 0x719   : > { %s2974_s13 = smov %s2976_s17  ;;  %21 = sbr.rel (!%p19_p5) target bundleno = 4 (0x4), region = 100 }
 0x720   :  { %1772 = vsyncpa [#allocation3], 1 }
 0x721   :  { %1774 = vsyncpa [#allocation3 + $0x1], 1 }

</bundles_post_ra>
